<compile_context>
chip_gen: v5e
topology: v5e:2x2
jax: 0.10.0
libtpu: 0.0.40
codegen_flags: <defaults>
</compile_context>

<pallas_src>
import functools

import jax
import jax.numpy as jnp
import numpy as np
from jax.experimental import pallas as pl
from jax.experimental.pallas import tpu as pltpu

# Static architecture of SpatialPath: (kernel_size, stride, padding) per block.
_SPATIAL_PATH_CFG = ((7, 2, 3), (3, 2, 1), (3, 2, 1), (1, 1, 0))

# Target rows (TOH*OW) of output per kernel step: keeps the bf16 patch tile +
# f32 output tile (double-buffered) well under v7x's 64 MiB VMEM while
# amortizing per-step overhead.  48 MiB scoped VMEM is safe on v5e/v6e/v7x.
_TARGET_M = 512
_VMEM_LIMIT_BYTES = 48 * 1024 * 1024


def _round_up(v, m):
    return ((v + m - 1) // m) * m


def _choose_toh(oh, ow):
    """Pick output rows per strip: largest divisor of OH whose tile is legal
    ((TOH*OW) % 8 == 0 or full) and <= _TARGET_M rows; fall back to the
    smallest legal tile."""
    cands = [d for d in range(1, oh + 1)
             if oh % d == 0 and ((d * ow) % 8 == 0 or d == oh)]
    small = [d for d in cands if d * ow <= _TARGET_M]
    return max(small) if small else min(cands)


# ----------------------------- Pallas kernel --------------------------------
def _conv_bn_kernel(x_ref, w_ref, scale_ref, shift_ref, o_ref, *,
                    ks, stride, toh, ow, cinp):
    """Fused im2col-in-VMEM conv + BN affine for one (batch, row-strip) tile.

    x_ref:     (1, s*s*(toh+qmax), ow+qmax, cinp)  bf16 phase-decomposed window
    w_ref:     (1, ks*ks*cinp, coutp)              bf16 weight, SE already folded in
    scale_ref: (1, coutp)  f32  BN scale  = gamma / sqrt(var + eps)
    shift_ref: (1, coutp)  f32  BN shift  = beta - mean * scale
    o_ref:     (1, toh*ow, coutp) f32
    """
    qmax = (ks - 1) // stride
    rw = toh + qmax                       # phase-rows per window
    m = toh * ow
    xw = x_ref[0]                         # (s*s*rw, ow+qmax, cinp) bf16

    # Build the (M, KH*KW*Cin) patch matrix in VMEM with unit-stride slices
    # (the stride was removed by the phase decomposition in the wrapper).
    cols = []
    for i in range(ks):
        for j in range(ks):
            pi, qi = i % stride, i // stride
            pj, qj = j % stride, j // stride
            base = (pi * stride + pj) * rw
            win = xw[base + qi: base + qi + toh, qj: qj + ow, :]   # (toh, ow, cinp)
            cols.append(win.reshape(m, cinp))
    patches = cols[0] if len(cols) == 1 else jnp.concatenate(cols, axis=1)

    # Single MXU matmul: bf16 x bf16 -> f32 accumulation.
    y = jnp.dot(patches, w_ref[0], preferred_element_type=jnp.float32)  # (m, coutp)
    # Inference-mode BatchNorm as per-channel affine (f32).
    y = y * scale_ref[...] + shift_ref[...]
    o_ref[...] = y[None, :, :].astype(o_ref.dtype)


# ------------------------------ JAX glue -------------------------------------
def _build_windows(x_nhwc, *, ks, stride, pad, toh, cinp):
    """Phase-decomposed, halo'd row windows: (N*T, s*s*(toh+qmax), ow+qmax, cinp) bf16.

    Element [(n*T+t), (pi*s+pj)*rw + r, cq, c] = xpad[n, (t*toh + r)*s + pi, cq*s + pj, c]
    so every conv tap becomes a unit-stride slice inside the kernel.
    """
    n, h, w_sp, c = x_nhwc.shape
    s = stride
    oh = (h + 2 * pad - ks) // s + 1
    ow = (w_sp + 2 * pad - ks) // s + 1
    qmax = (ks - 1) // s
    rw = toh + qmax
    t = oh // toh
    wq = ow + qmax
    hp, wp = (oh + qmax) * s, (ow + qmax) * s

    xpad = jnp.pad(x_nhwc, ((0, 0), (pad, pad), (pad, pad), (0, cinp - c)))
    # pad or crop spatially to exactly (hp, wp) so the phase reshape is rectangular
    xpad = xpad[:, :hp, :wp, :]
    xpad = jnp.pad(xpad, ((0, 0), (0, hp - xpad.shape[1]),
                          (0, wp - xpad.shape[2]), (0, 0)))

    # space-to-depth phase decomposition: (n, s, s, oh+qmax, ow+qmax, cinp)
    xq = xpad.reshape(n, oh + qmax, s, ow + qmax, s, cinp).transpose(0, 2, 4, 1, 3, 5)

    if qmax == 0:
        win = xq.reshape(n, s, s, t, toh, wq, cinp)
    else:
        main = xq[:, :, :, :t * toh].reshape(n, s, s, t, toh, wq, cinp)
        idx = (np.arange(t)[:, None] + 1) * toh + np.arange(qmax)[None, :]  # static
        halo = xq[:, :, :, idx]                                  # (n,s,s,t,qmax,wq,cinp)
        win = jnp.concatenate([main, halo], axis=4)              # (n,s,s,t,rw,wq,cinp)

    win = win.transpose(0, 3, 1, 2, 4, 5, 6)                     # (n,t,s,s,rw,wq,cinp)
    return win.reshape(n * t, s * s * rw, wq, cinp).astype(jnp.bfloat16)


def _conv_bn_se_layer(x_nhwc, w_oihw, bn_scale, bn_shift, *, ks, stride, pad):
    """One ConvBNReLU block (SE scale folded into weight -> conv -> BN)."""
    n, h, w_sp, c_in = x_nhwc.shape
    cout, cin_w, _, _ = w_oihw.shape
    cinp = _round_up(max(c_in, cin_w), 8)        # stem: 3 -> 8; others already 128-mult
    coutp = _round_up(cout, 128)                 # lane-dense output channels

    oh = (h + 2 * pad - ks) // stride + 1
    ow = (w_sp + 2 * pad - ks) // stride + 1
    toh = _choose_toh(oh, ow)
    t = oh // toh
    qmax = (ks - 1) // stride
    ph = stride * stride * (toh + qmax)
    wq = ow + qmax
    m = toh * ow
    kc = ks * ks * cinp

    # Channel attention (AdaptiveAvgPool2d(1) + Sigmoid): tiny XLA pre-pass.
    se = jax.nn.sigmoid(jnp.mean(x_nhwc, axis=(1, 2)))           # (N, c_in) f32
    se = jnp.pad(se, ((0, 0), (0, cinp - c_in)))                 # padded chans hit zero weights

    # Conv weight: OIHW -> (ks, ks, cinp, coutp), tap-major / cin-minor flatten,
    # SE folded in per batch, cast to bf16 for the MXU.
    w_hwio = jnp.transpose(w_oihw, (2, 3, 1, 0))                 # (ks, ks, cin, cout)
    w_padded = jnp.zeros((ks, ks, cinp, coutp), jnp.float32).at[:, :, :cin_w, :cout].set(w_hwio)
    w_flat = w_padded.reshape(kc, coutp)
    se_k = jnp.tile(se, (1, ks * ks))                            # (N, kc), tap-major
    w_se = (w_flat[None, :, :] * se_k[:, :, None]).astype(jnp.bfloat16)   # (N, kc, coutp)

    # BN inference affine, lane-dense padded.
    scale = jnp.pad(bn_scale, (0, coutp - cout)).reshape(1, coutp)
    shift = jnp.pad(bn_shift, (0, coutp - cout)).reshape(1, coutp)

    xwin = _build_windows(x_nhwc, ks=ks, stride=stride, pad=pad, toh=toh, cinp=cinp)

    kern = functools.partial(_conv_bn_kernel, ks=ks, stride=stride,
                             toh=toh, ow=ow, cinp=cinp)
    out = pl.pallas_call(
        kern,
        out_shape=jax.ShapeDtypeStruct((n, oh * ow, coutp), jnp.float32),
        grid=(n, t),
        in_specs=[
            pl.BlockSpec((1, ph, wq, cinp), lambda b, i: (b * t + i, 0, 0, 0)),
            pl.BlockSpec((1, kc, coutp), lambda b, i: (b, 0, 0)),   # resident across strips
            pl.BlockSpec((1, coutp), lambda b, i: (0, 0)),
            pl.BlockSpec((1, coutp), lambda b, i: (0, 0)),
        ],
        out_specs=pl.BlockSpec((1, m, coutp), lambda b, i: (b, i, 0)),
        compiler_params=pltpu.CompilerParams(
            dimension_semantics=("parallel", "parallel"),
            vmem_limit_bytes=_VMEM_LIMIT_BYTES),
    )(xwin, w_se, scale, shift)
    return out.reshape(n, oh, ow, coutp)


@jax.jit
def spatial_path_forward(x_nchw, params):
    """SpatialPath forward. Input NCHW (PyTorch convention), output NCHW."""
    x = jnp.transpose(x_nchw, (0, 2, 3, 1))      # NHWC for the kernels
    for p, (ks, stride, pad) in zip(params, _SPATIAL_PATH_CFG):
        x = _conv_bn_se_layer(x, p["w"], p["scale"], p["shift"],
                              ks=ks, stride=stride, pad=pad)
    nout = params[-1]["w"].shape[0]
    x = x[..., :nout]                            # drop lane-padding channels
    return jnp.transpose(x, (0, 3, 1, 2))


# --------------------------- parameter setup --------------------------------
def _make_layer_params(key, cin, cout, ks):
    kw_, kg, kb, km, kv = jax.random.split(key, 5)
    fan_in = cin * ks * ks
    # kaiming_normal_(a=1): std = sqrt(2 / ((1 + a^2) * fan_in)) = sqrt(1/fan_in)
    w = jax.random.normal(kw_, (cout, cin, ks, ks), jnp.float32) * np.sqrt(1.0 / fan_in)
    gamma = 1.0 + 0.1 * jax.random.normal(kg, (cout,), jnp.float32)
    beta = 0.1 * jax.random.normal(kb, (cout,), jnp.float32)
    rmean = 0.05 * jax.random.normal(km, (cout,), jnp.float32)
    rvar = 1.0 + 0.1 * jnp.abs(jax.random.normal(kv, (cout,), jnp.float32))
    eps = 1e-5
    scale = gamma / jnp.sqrt(rvar + eps)
    shift = beta - rmean * scale
    return dict(w=w, scale=scale, shift=shift)


def make_spatial_path_params(key, nout=128):
    k1, k2, k3, k4 = jax.random.split(key, 4)
    mid = nout // 2
    return [
        _make_layer_params(k1, 3, mid, 7),
        _make_layer_params(k2, mid, mid, 3),
        _make_layer_params(k3, mid, mid, 3),
        _make_layer_params(k4, mid, nout, 1),
    ]


# --------------------------- pure-JAX references ------------------------------
def _im2col_ref(x, ks, stride, pad):
    n, h, w, c = x.shape
    xp = jnp.pad(x, ((0, 0), (pad, pad), (pad, pad), (0, 0)))
    oh = (h + 2 * pad - ks) // stride + 1
    ow = (w + 2 * pad - ks) // stride + 1
    cols = []
    for i in range(ks):
        for j in range(ks):
            cols.append(xp[:, i:i + stride * oh:stride, j:j + stride * ow:stride, :])
    p = jnp.stack(cols, axis=3)                  # (n, oh, ow, ks*ks, c)
    return p.reshape(n, oh * ow, ks * ks * c), oh, ow


def _ref_bf16(x_nchw, params):
    """Same quantization / math as the kernel path (bf16 MXU inputs, f32 accum)."""
    x = jnp.transpose(x_nchw, (0, 2, 3, 1)).astype(jnp.float32)
    for p, (ks, stride, pad) in zip(params, _SPATIAL_PATH_CFG):
        n = x.shape[0]
        cout, cin, _, _ = p["w"].shape
        se = jax.nn.sigmoid(jnp.mean(x, axis=(1, 2)))                    # (n, cin)
        w_flat = jnp.transpose(p["w"], (2, 3, 1, 0)).reshape(ks * ks * cin, cout)
        w_se = (w_flat[None] * jnp.tile(se, (1, ks * ks))[:, :, None]).astype(jnp.bfloat16)
        patches, oh, ow = _im2col_ref(x, ks, stride, pad)
        y = jnp.einsum("nmk,nko->nmo", patches.astype(jnp.bfloat16), w_se,
                       preferred_element_type=jnp.float32)
        y = y * p["scale"].reshape(1, 1, cout) + p["shift"].reshape(1, 1, cout)
        x = y.reshape(n, oh, ow, cout)
    return jnp.transpose(x, (0, 3, 1, 2))


def _ref_exact(x_nchw, params):
    """Faithful f32 semantics of the PyTorch module (inference-mode BN)."""
    x = jnp.transpose(x_nchw, (0, 2, 3, 1)).astype(jnp.float32)
    for p, (ks, stride, pad) in zip(params, _SPATIAL_PATH_CFG):
        se = jax.nn.sigmoid(jnp.mean(x, axis=(1, 2), keepdims=True))
        xs = x * se
        y = jax.lax.conv_general_dilated(
            xs, p["w"], (stride, stride), [(pad, pad)] * 2,
            dimension_numbers=("NHWC", "OIHW", "NHWC"),
            precision=jax.lax.Precision.HIGHEST)
        x = y * p["scale"].reshape(1, 1, 1, -1) + p["shift"].reshape(1, 1, 1, -1)
    return jnp.transpose(x, (0, 3, 1, 2))


# --------------------------------- main --------------------------------------
if __name__ == "__main__":
    key = jax.random.PRNGKey(0)
    kx, kp = jax.random.split(key)

    # small shapes: batch=2, in_chan=3 (module hardcodes 3), spatial=16, nout=32
    nout = 32
    x = jax.random.normal(kx, (2, 3, 16, 16), jnp.float32)   # NCHW input
    params = make_spatial_path_params(kp, nout=nout)

    out = jax.block_until_ready(spatial_path_forward(x, params))
    assert out.shape == (2, nout, 2, 2), out.shape

    # 1) tight check vs. a reference using the identical bf16-input / f32-accum math
    ref_q = jax.block_until_ready(_ref_bf16(x, params))
    np.testing.assert_allclose(np.asarray(out), np.asarray(ref_q),
                               rtol=5e-3, atol=5e-3)
    # 2) sanity check vs. the faithful f32 module semantics (bf16 MXU inputs
    #    introduce ~0.1-1% error, well inside this tolerance)
    ref_f = jax.block_until_ready(_ref_exact(x, params))
    np.testing.assert_allclose(np.asarray(out), np.asarray(ref_f),
                               rtol=5e-2, atol=5e-2)

    print("KERNEL_OK")
</pallas_src>

<mosaic_0001>
module attributes {stable_mosaic.version = 11 : i64} {
  func.func @_conv_bn_kernel(%arg0: i32, %arg1: i32, %arg2: memref<1x44x11x8xbf16, #tpu.memory_space<vmem>>, %arg3: memref<1x392x128xbf16, #tpu.memory_space<vmem>>, %arg4: memref<1x128xf32, #tpu.memory_space<vmem>>, %arg5: memref<1x128xf32, #tpu.memory_space<vmem>>, %arg6: memref<1x64x128xf32, #tpu.memory_space<vmem>>) attributes {dimension_semantics = [#tpu.dimension_semantics<parallel>, #tpu.dimension_semantics<parallel>], iteration_bounds = array<i64: 2, 1>, scalar_prefetch = 0 : i64, scratch_operands = 0 : i64, tpu.core_type = #tpu.core_type<tc>, window_params = [{transform_indices = @transform_0, window_bounds = array<i64: 1, 44, 11, 8>}, {transform_indices = @transform_1, window_bounds = array<i64: 1, 392, 128>}, {pipeline_mode = #tpu.pipeline_mode<synchronous>, transform_indices = @transform_2, window_bounds = array<i64: 1, 128>}, {pipeline_mode = #tpu.pipeline_mode<synchronous>, transform_indices = @transform_3, window_bounds = array<i64: 1, 128>}, {transform_indices = @transform_4, window_bounds = array<i64: 1, 64, 128>}]} {
    %c0 = arith.constant 0 : index
    %c0_0 = arith.constant 0 : index
    %c0_1 = arith.constant 0 : index
    %c0_2 = arith.constant 0 : index
    %0 = vector.load %arg2[%c0, %c0_0, %c0_1, %c0_2] : memref<1x44x11x8xbf16, #tpu.memory_space<vmem>>, vector<1x44x11x8xbf16>
    %1 = vector.shape_cast %0 : vector<1x44x11x8xbf16> to vector<44x11x8xbf16>
    %2 = vector.extract_strided_slice %1 {offsets = [0, 0, 0], sizes = [8, 8, 8], strides = [1, 1, 1]} : vector<44x11x8xbf16> to vector<8x8x8xbf16>
    %3 = vector.shape_cast %2 : vector<8x8x8xbf16> to vector<64x8xbf16>
    %4 = vector.extract_strided_slice %1 {offsets = [11, 0, 0], sizes = [8, 8, 8], strides = [1, 1, 1]} : vector<44x11x8xbf16> to vector<8x8x8xbf16>
    %5 = vector.shape_cast %4 : vector<8x8x8xbf16> to vector<64x8xbf16>
    %6 = vector.extract_strided_slice %1 {offsets = [0, 1, 0], sizes = [8, 8, 8], strides = [1, 1, 1]} : vector<44x11x8xbf16> to vector<8x8x8xbf16>
    %7 = vector.shape_cast %6 : vector<8x8x8xbf16> to vector<64x8xbf16>
    %8 = vector.extract_strided_slice %1 {offsets = [11, 1, 0], sizes = [8, 8, 8], strides = [1, 1, 1]} : vector<44x11x8xbf16> to vector<8x8x8xbf16>
    %9 = vector.shape_cast %8 : vector<8x8x8xbf16> to vector<64x8xbf16>
    %10 = vector.extract_strided_slice %1 {offsets = [0, 2, 0], sizes = [8, 8, 8], strides = [1, 1, 1]} : vector<44x11x8xbf16> to vector<8x8x8xbf16>
    %11 = vector.shape_cast %10 : vector<8x8x8xbf16> to vector<64x8xbf16>
    %12 = vector.extract_strided_slice %1 {offsets = [11, 2, 0], sizes = [8, 8, 8], strides = [1, 1, 1]} : vector<44x11x8xbf16> to vector<8x8x8xbf16>
    %13 = vector.shape_cast %12 : vector<8x8x8xbf16> to vector<64x8xbf16>
    %14 = vector.extract_strided_slice %1 {offsets = [0, 3, 0], sizes = [8, 8, 8], strides = [1, 1, 1]} : vector<44x11x8xbf16> to vector<8x8x8xbf16>
    %15 = vector.shape_cast %14 : vector<8x8x8xbf16> to vector<64x8xbf16>
    %16 = vector.extract_strided_slice %1 {offsets = [22, 0, 0], sizes = [8, 8, 8], strides = [1, 1, 1]} : vector<44x11x8xbf16> to vector<8x8x8xbf16>
    %17 = vector.shape_cast %16 : vector<8x8x8xbf16> to vector<64x8xbf16>
    %18 = vector.extract_strided_slice %1 {offsets = [33, 0, 0], sizes = [8, 8, 8], strides = [1, 1, 1]} : vector<44x11x8xbf16> to vector<8x8x8xbf16>
    %19 = vector.shape_cast %18 : vector<8x8x8xbf16> to vector<64x8xbf16>
    %20 = vector.extract_strided_slice %1 {offsets = [22, 1, 0], sizes = [8, 8, 8], strides = [1, 1, 1]} : vector<44x11x8xbf16> to vector<8x8x8xbf16>
    %21 = vector.shape_cast %20 : vector<8x8x8xbf16> to vector<64x8xbf16>
    %22 = vector.extract_strided_slice %1 {offsets = [33, 1, 0], sizes = [8, 8, 8], strides = [1, 1, 1]} : vector<44x11x8xbf16> to vector<8x8x8xbf16>
    %23 = vector.shape_cast %22 : vector<8x8x8xbf16> to vector<64x8xbf16>
    %24 = vector.extract_strided_slice %1 {offsets = [22, 2, 0], sizes = [8, 8, 8], strides = [1, 1, 1]} : vector<44x11x8xbf16> to vector<8x8x8xbf16>
    %25 = vector.shape_cast %24 : vector<8x8x8xbf16> to vector<64x8xbf16>
    %26 = vector.extract_strided_slice %1 {offsets = [33, 2, 0], sizes = [8, 8, 8], strides = [1, 1, 1]} : vector<44x11x8xbf16> to vector<8x8x8xbf16>
    %27 = vector.shape_cast %26 : vector<8x8x8xbf16> to vector<64x8xbf16>
    %28 = vector.extract_strided_slice %1 {offsets = [22, 3, 0], sizes = [8, 8, 8], strides = [1, 1, 1]} : vector<44x11x8xbf16> to vector<8x8x8xbf16>
    %29 = vector.shape_cast %28 : vector<8x8x8xbf16> to vector<64x8xbf16>
    %30 = vector.extract_strided_slice %1 {offsets = [1, 0, 0], sizes = [8, 8, 8], strides = [1, 1, 1]} : vector<44x11x8xbf16> to vector<8x8x8xbf16>
    %31 = vector.shape_cast %30 : vector<8x8x8xbf16> to vector<64x8xbf16>
    %32 = vector.extract_strided_slice %1 {offsets = [12, 0, 0], sizes = [8, 8, 8], strides = [1, 1, 1]} : vector<44x11x8xbf16> to vector<8x8x8xbf16>
    %33 = vector.shape_cast %32 : vector<8x8x8xbf16> to vector<64x8xbf16>
    %34 = vector.extract_strided_slice %1 {offsets = [1, 1, 0], sizes = [8, 8, 8], strides = [1, 1, 1]} : vector<44x11x8xbf16> to vector<8x8x8xbf16>
    %35 = vector.shape_cast %34 : vector<8x8x8xbf16> to vector<64x8xbf16>
    %36 = vector.extract_strided_slice %1 {offsets = [12, 1, 0], sizes = [8, 8, 8], strides = [1, 1, 1]} : vector<44x11x8xbf16> to vector<8x8x8xbf16>
    %37 = vector.shape_cast %36 : vector<8x8x8xbf16> to vector<64x8xbf16>
    %38 = vector.extract_strided_slice %1 {offsets = [1, 2, 0], sizes = [8, 8, 8], strides = [1, 1, 1]} : vector<44x11x8xbf16> to vector<8x8x8xbf16>
    %39 = vector.shape_cast %38 : vector<8x8x8xbf16> to vector<64x8xbf16>
    %40 = vector.extract_strided_slice %1 {offsets = [12, 2, 0], sizes = [8, 8, 8], strides = [1, 1, 1]} : vector<44x11x8xbf16> to vector<8x8x8xbf16>
    %41 = vector.shape_cast %40 : vector<8x8x8xbf16> to vector<64x8xbf16>
    %42 = vector.extract_strided_slice %1 {offsets = [1, 3, 0], sizes = [8, 8, 8], strides = [1, 1, 1]} : vector<44x11x8xbf16> to vector<8x8x8xbf16>
    %43 = vector.shape_cast %42 : vector<8x8x8xbf16> to vector<64x8xbf16>
    %44 = vector.extract_strided_slice %1 {offsets = [23, 0, 0], sizes = [8, 8, 8], strides = [1, 1, 1]} : vector<44x11x8xbf16> to vector<8x8x8xbf16>
    %45 = vector.shape_cast %44 : vector<8x8x8xbf16> to vector<64x8xbf16>
    %46 = vector.extract_strided_slice %1 {offsets = [34, 0, 0], sizes = [8, 8, 8], strides = [1, 1, 1]} : vector<44x11x8xbf16> to vector<8x8x8xbf16>
    %47 = vector.shape_cast %46 : vector<8x8x8xbf16> to vector<64x8xbf16>
    %48 = vector.extract_strided_slice %1 {offsets = [23, 1, 0], sizes = [8, 8, 8], strides = [1, 1, 1]} : vector<44x11x8xbf16> to vector<8x8x8xbf16>
    %49 = vector.shape_cast %48 : vector<8x8x8xbf16> to vector<64x8xbf16>
    %50 = vector.extract_strided_slice %1 {offsets = [34, 1, 0], sizes = [8, 8, 8], strides = [1, 1, 1]} : vector<44x11x8xbf16> to vector<8x8x8xbf16>
    %51 = vector.shape_cast %50 : vector<8x8x8xbf16> to vector<64x8xbf16>
    %52 = vector.extract_strided_slice %1 {offsets = [23, 2, 0], sizes = [8, 8, 8], strides = [1, 1, 1]} : vector<44x11x8xbf16> to vector<8x8x8xbf16>
    %53 = vector.shape_cast %52 : vector<8x8x8xbf16> to vector<64x8xbf16>
    %54 = vector.extract_strided_slice %1 {offsets = [34, 2, 0], sizes = [8, 8, 8], strides = [1, 1, 1]} : vector<44x11x8xbf16> to vector<8x8x8xbf16>
    %55 = vector.shape_cast %54 : vector<8x8x8xbf16> to vector<64x8xbf16>
    %56 = vector.extract_strided_slice %1 {offsets = [23, 3, 0], sizes = [8, 8, 8], strides = [1, 1, 1]} : vector<44x11x8xbf16> to vector<8x8x8xbf16>
    %57 = vector.shape_cast %56 : vector<8x8x8xbf16> to vector<64x8xbf16>
    %58 = vector.extract_strided_slice %1 {offsets = [2, 0, 0], sizes = [8, 8, 8], strides = [1, 1, 1]} : vector<44x11x8xbf16> to vector<8x8x8xbf16>
    %59 = vector.shape_cast %58 : vector<8x8x8xbf16> to vector<64x8xbf16>
    %60 = vector.extract_strided_slice %1 {offsets = [13, 0, 0], sizes = [8, 8, 8], strides = [1, 1, 1]} : vector<44x11x8xbf16> to vector<8x8x8xbf16>
    %61 = vector.shape_cast %60 : vector<8x8x8xbf16> to vector<64x8xbf16>
    %62 = vector.extract_strided_slice %1 {offsets = [2, 1, 0], sizes = [8, 8, 8], strides = [1, 1, 1]} : vector<44x11x8xbf16> to vector<8x8x8xbf16>
    %63 = vector.shape_cast %62 : vector<8x8x8xbf16> to vector<64x8xbf16>
    %64 = vector.extract_strided_slice %1 {offsets = [13, 1, 0], sizes = [8, 8, 8], strides = [1, 1, 1]} : vector<44x11x8xbf16> to vector<8x8x8xbf16>
    %65 = vector.shape_cast %64 : vector<8x8x8xbf16> to vector<64x8xbf16>
    %66 = vector.extract_strided_slice %1 {offsets = [2, 2, 0], sizes = [8, 8, 8], strides = [1, 1, 1]} : vector<44x11x8xbf16> to vector<8x8x8xbf16>
    %67 = vector.shape_cast %66 : vector<8x8x8xbf16> to vector<64x8xbf16>
    %68 = vector.extract_strided_slice %1 {offsets = [13, 2, 0], sizes = [8, 8, 8], strides = [1, 1, 1]} : vector<44x11x8xbf16> to vector<8x8x8xbf16>
    %69 = vector.shape_cast %68 : vector<8x8x8xbf16> to vector<64x8xbf16>
    %70 = vector.extract_strided_slice %1 {offsets = [2, 3, 0], sizes = [8, 8, 8], strides = [1, 1, 1]} : vector<44x11x8xbf16> to vector<8x8x8xbf16>
    %71 = vector.shape_cast %70 : vector<8x8x8xbf16> to vector<64x8xbf16>
    %72 = vector.extract_strided_slice %1 {offsets = [24, 0, 0], sizes = [8, 8, 8], strides = [1, 1, 1]} : vector<44x11x8xbf16> to vector<8x8x8xbf16>
    %73 = vector.shape_cast %72 : vector<8x8x8xbf16> to vector<64x8xbf16>
    %74 = vector.extract_strided_slice %1 {offsets = [35, 0, 0], sizes = [8, 8, 8], strides = [1, 1, 1]} : vector<44x11x8xbf16> to vector<8x8x8xbf16>
    %75 = vector.shape_cast %74 : vector<8x8x8xbf16> to vector<64x8xbf16>
    %76 = vector.extract_strided_slice %1 {offsets = [24, 1, 0], sizes = [8, 8, 8], strides = [1, 1, 1]} : vector<44x11x8xbf16> to vector<8x8x8xbf16>
    %77 = vector.shape_cast %76 : vector<8x8x8xbf16> to vector<64x8xbf16>
    %78 = vector.extract_strided_slice %1 {offsets = [35, 1, 0], sizes = [8, 8, 8], strides = [1, 1, 1]} : vector<44x11x8xbf16> to vector<8x8x8xbf16>
    %79 = vector.shape_cast %78 : vector<8x8x8xbf16> to vector<64x8xbf16>
    %80 = vector.extract_strided_slice %1 {offsets = [24, 2, 0], sizes = [8, 8, 8], strides = [1, 1, 1]} : vector<44x11x8xbf16> to vector<8x8x8xbf16>
    %81 = vector.shape_cast %80 : vector<8x8x8xbf16> to vector<64x8xbf16>
    %82 = vector.extract_strided_slice %1 {offsets = [35, 2, 0], sizes = [8, 8, 8], strides = [1, 1, 1]} : vector<44x11x8xbf16> to vector<8x8x8xbf16>
    %83 = vector.shape_cast %82 : vector<8x8x8xbf16> to vector<64x8xbf16>
    %84 = vector.extract_strided_slice %1 {offsets = [24, 3, 0], sizes = [8, 8, 8], strides = [1, 1, 1]} : vector<44x11x8xbf16> to vector<8x8x8xbf16>
    %85 = vector.shape_cast %84 : vector<8x8x8xbf16> to vector<64x8xbf16>
    %86 = vector.extract_strided_slice %1 {offsets = [3, 0, 0], sizes = [8, 8, 8], strides = [1, 1, 1]} : vector<44x11x8xbf16> to vector<8x8x8xbf16>
    %87 = vector.shape_cast %86 : vector<8x8x8xbf16> to vector<64x8xbf16>
    %88 = vector.extract_strided_slice %1 {offsets = [14, 0, 0], sizes = [8, 8, 8], strides = [1, 1, 1]} : vector<44x11x8xbf16> to vector<8x8x8xbf16>
    %89 = vector.shape_cast %88 : vector<8x8x8xbf16> to vector<64x8xbf16>
    %90 = vector.extract_strided_slice %1 {offsets = [3, 1, 0], sizes = [8, 8, 8], strides = [1, 1, 1]} : vector<44x11x8xbf16> to vector<8x8x8xbf16>
    %91 = vector.shape_cast %90 : vector<8x8x8xbf16> to vector<64x8xbf16>
    %92 = vector.extract_strided_slice %1 {offsets = [14, 1, 0], sizes = [8, 8, 8], strides = [1, 1, 1]} : vector<44x11x8xbf16> to vector<8x8x8xbf16>
    %93 = vector.shape_cast %92 : vector<8x8x8xbf16> to vector<64x8xbf16>
    %94 = vector.extract_strided_slice %1 {offsets = [3, 2, 0], sizes = [8, 8, 8], strides = [1, 1, 1]} : vector<44x11x8xbf16> to vector<8x8x8xbf16>
    %95 = vector.shape_cast %94 : vector<8x8x8xbf16> to vector<64x8xbf16>
    %96 = vector.extract_strided_slice %1 {offsets = [14, 2, 0], sizes = [8, 8, 8], strides = [1, 1, 1]} : vector<44x11x8xbf16> to vector<8x8x8xbf16>
    %97 = vector.shape_cast %96 : vector<8x8x8xbf16> to vector<64x8xbf16>
    %98 = vector.extract_strided_slice %1 {offsets = [3, 3, 0], sizes = [8, 8, 8], strides = [1, 1, 1]} : vector<44x11x8xbf16> to vector<8x8x8xbf16>
    %99 = vector.shape_cast %98 : vector<8x8x8xbf16> to vector<64x8xbf16>
    %100 = tpu.concatenate %3, %5, %7, %9, %11, %13, %15, %17, %19, %21, %23, %25, %27, %29, %31, %33 in 1 : vector<64x8xbf16>, vector<64x8xbf16>, vector<64x8xbf16>, vector<64x8xbf16>, vector<64x8xbf16>, vector<64x8xbf16>, vector<64x8xbf16>, vector<64x8xbf16>, vector<64x8xbf16>, vector<64x8xbf16>, vector<64x8xbf16>, vector<64x8xbf16>, vector<64x8xbf16>, vector<64x8xbf16>, vector<64x8xbf16>, vector<64x8xbf16> -> vector<64x128xbf16>
    %101 = tpu.concatenate %35, %37, %39, %41, %43, %45, %47, %49, %51, %53, %55, %57, %59, %61, %63, %65 in 1 : vector<64x8xbf16>, vector<64x8xbf16>, vector<64x8xbf16>, vector<64x8xbf16>, vector<64x8xbf16>, vector<64x8xbf16>, vector<64x8xbf16>, vector<64x8xbf16>, vector<64x8xbf16>, vector<64x8xbf16>, vector<64x8xbf16>, vector<64x8xbf16>, vector<64x8xbf16>, vector<64x8xbf16>, vector<64x8xbf16>, vector<64x8xbf16> -> vector<64x128xbf16>
    %102 = tpu.concatenate %67, %69, %71, %73, %75, %77, %79, %81, %83, %85, %87, %89, %91, %93, %95, %97 in 1 : vector<64x8xbf16>, vector<64x8xbf16>, vector<64x8xbf16>, vector<64x8xbf16>, vector<64x8xbf16>, vector<64x8xbf16>, vector<64x8xbf16>, vector<64x8xbf16>, vector<64x8xbf16>, vector<64x8xbf16>, vector<64x8xbf16>, vector<64x8xbf16>, vector<64x8xbf16>, vector<64x8xbf16>, vector<64x8xbf16>, vector<64x8xbf16> -> vector<64x128xbf16>
    %103 = tpu.concatenate %100, %101, %102, %99 in 1 : vector<64x128xbf16>, vector<64x128xbf16>, vector<64x128xbf16>, vector<64x8xbf16> -> vector<64x392xbf16>
    %c0_3 = arith.constant 0 : index
    %c0_4 = arith.constant 0 : index
    %c0_5 = arith.constant 0 : index
    %104 = vector.load %arg3[%c0_3, %c0_4, %c0_5] : memref<1x392x128xbf16, #tpu.memory_space<vmem>>, vector<1x392x128xbf16>
    %105 = vector.shape_cast %104 : vector<1x392x128xbf16> to vector<392x128xbf16>
    %cst = arith.constant dense<0.000000e+00> : vector<64x128xf32>
    %106 = tpu.matmul %103, %105, %cst {dimension_numbers = #tpu.dot_dimension_numbers<[1], [0], [0], [1], [0, 0, 1, 1], [], []>} : vector<64x392xbf16>, vector<392x128xbf16>, vector<64x128xf32> -> vector<64x128xf32>
    %c0_6 = arith.constant 0 : index
    %c0_7 = arith.constant 0 : index
    %107 = vector.load %arg4[%c0_6, %c0_7] : memref<1x128xf32, #tpu.memory_space<vmem>>, vector<1x128xf32>
    %108 = vector.broadcast %107 : vector<1x128xf32> to vector<64x128xf32>
    %109 = arith.mulf %106, %108 : vector<64x128xf32>
    %c0_8 = arith.constant 0 : index
    %c0_9 = arith.constant 0 : index
    %110 = vector.load %arg5[%c0_8, %c0_9] : memref<1x128xf32, #tpu.memory_space<vmem>>, vector<1x128xf32>
    %111 = vector.broadcast %110 : vector<1x128xf32> to vector<64x128xf32>
    %112 = arith.addf %109, %111 : vector<64x128xf32>
    %113 = vector.shape_cast %112 : vector<64x128xf32> to vector<1x64x128xf32>
    %c0_10 = arith.constant 0 : index
    %c0_11 = arith.constant 0 : index
    %c0_12 = arith.constant 0 : index
    %114 = vector.load %arg6[%c0_10, %c0_11, %c0_12] : memref<1x64x128xf32, #tpu.memory_space<vmem>>, vector<1x64x128xf32>
    tpu.vector_store %arg6[%c0_10, %c0_11, %c0_12], %113 {strides = array<i32>} : memref<1x64x128xf32, #tpu.memory_space<vmem>>, vector<1x64x128xf32>,
    return
  }
  func.func @transform_0(%arg0: i32, %arg1: i32) -> (i32, i32, i32, i32) {
    %c1_i32 = arith.constant 1 : i32
    %0 = arith.muli %arg0, %c1_i32 : i32
    %1 = arith.addi %0, %arg1 : i32
    %c0_i32 = arith.constant 0 : i32
    %c0_i32_0 = arith.constant 0 : i32
    %c0_i32_1 = arith.constant 0 : i32
    %c0_i32_2 = arith.constant 0 : i32
    return %1, %c0_i32, %c0_i32_0, %c0_i32_1 : i32, i32, i32, i32
  }
  func.func @transform_1(%arg0: i32, %arg1: i32) -> (i32, i32, i32) {
    %c0_i32 = arith.constant 0 : i32
    %c0_i32_0 = arith.constant 0 : i32
    %c0_i32_1 = arith.constant 0 : i32
    return %arg0, %c0_i32, %c0_i32_0 : i32, i32, i32
  }
  func.func @transform_2(%arg0: i32, %arg1: i32) -> (i32, i32) {
    %c0_i32 = arith.constant 0 : i32
    %c0_i32_0 = arith.constant 0 : i32
    %c0_i32_1 = arith.constant 0 : i32
    return %c0_i32, %c0_i32_0 : i32, i32
  }
  func.func @transform_3(%arg0: i32, %arg1: i32) -> (i32, i32) {
    %c0_i32 = arith.constant 0 : i32
    %c0_i32_0 = arith.constant 0 : i32
    %c0_i32_1 = arith.constant 0 : i32
    return %c0_i32, %c0_i32_0 : i32, i32
  }
  func.func @transform_4(%arg0: i32, %arg1: i32) -> (i32, i32, i32) {
    %c0_i32 = arith.constant 0 : i32
    %c0_i32_0 = arith.constant 0 : i32
    return %arg0, %arg1, %c0_i32 : i32, i32, i32
  }
}

module attributes {stable_mosaic.version = 11 : i64} {
  func.func @_conv_bn_kernel(%arg0: i32, %arg1: i32, %arg2: memref<1x20x5x128xbf16, #tpu.memory_space<vmem>>, %arg3: memref<1x1152x128xbf16, #tpu.memory_space<vmem>>, %arg4: memref<1x128xf32, #tpu.memory_space<vmem>>, %arg5: memref<1x128xf32, #tpu.memory_space<vmem>>, %arg6: memref<1x16x128xf32, #tpu.memory_space<vmem>>) attributes {dimension_semantics = [#tpu.dimension_semantics<parallel>, #tpu.dimension_semantics<parallel>], iteration_bounds = array<i64: 2, 1>, scalar_prefetch = 0 : i64, scratch_operands = 0 : i64, tpu.core_type = #tpu.core_type<tc>, window_params = [{transform_indices = @transform_0, window_bounds = array<i64: 1, 20, 5, 128>}, {transform_indices = @transform_1, window_bounds = array<i64: 1, 1152, 128>}, {pipeline_mode = #tpu.pipeline_mode<synchronous>, transform_indices = @transform_2, window_bounds = array<i64: 1, 128>}, {pipeline_mode = #tpu.pipeline_mode<synchronous>, transform_indices = @transform_3, window_bounds = array<i64: 1, 128>}, {transform_indices = @transform_4, window_bounds = array<i64: 1, 16, 128>}]} {
    %c0 = arith.constant 0 : index
    %c0_0 = arith.constant 0 : index
    %c0_1 = arith.constant 0 : index
    %c0_2 = arith.constant 0 : index
    %0 = vector.load %arg2[%c0, %c0_0, %c0_1, %c0_2] : memref<1x20x5x128xbf16, #tpu.memory_space<vmem>>, vector<1x20x5x128xbf16>
    %1 = vector.shape_cast %0 : vector<1x20x5x128xbf16> to vector<20x5x128xbf16>
    %2 = vector.extract_strided_slice %1 {offsets = [0, 0, 0], sizes = [4, 4, 128], strides = [1, 1, 1]} : vector<20x5x128xbf16> to vector<4x4x128xbf16>
    %3 = vector.shape_cast %2 : vector<4x4x128xbf16> to vector<16x128xbf16>
    %4 = vector.extract_strided_slice %1 {offsets = [5, 0, 0], sizes = [4, 4, 128], strides = [1, 1, 1]} : vector<20x5x128xbf16> to vector<4x4x128xbf16>
    %5 = vector.shape_cast %4 : vector<4x4x128xbf16> to vector<16x128xbf16>
    %6 = vector.extract_strided_slice %1 {offsets = [0, 1, 0], sizes = [4, 4, 128], strides = [1, 1, 1]} : vector<20x5x128xbf16> to vector<4x4x128xbf16>
    %7 = vector.shape_cast %6 : vector<4x4x128xbf16> to vector<16x128xbf16>
    %8 = vector.extract_strided_slice %1 {offsets = [10, 0, 0], sizes = [4, 4, 128], strides = [1, 1, 1]} : vector<20x5x128xbf16> to vector<4x4x128xbf16>
    %9 = vector.shape_cast %8 : vector<4x4x128xbf16> to vector<16x128xbf16>
    %10 = vector.extract_strided_slice %1 {offsets = [15, 0, 0], sizes = [4, 4, 128], strides = [1, 1, 1]} : vector<20x5x128xbf16> to vector<4x4x128xbf16>
    %11 = vector.shape_cast %10 : vector<4x4x128xbf16> to vector<16x128xbf16>
    %12 = vector.extract_strided_slice %1 {offsets = [10, 1, 0], sizes = [4, 4, 128], strides = [1, 1, 1]} : vector<20x5x128xbf16> to vector<4x4x128xbf16>
    %13 = vector.shape_cast %12 : vector<4x4x128xbf16> to vector<16x128xbf16>
    %14 = vector.extract_strided_slice %1 {offsets = [1, 0, 0], sizes = [4, 4, 128], strides = [1, 1, 1]} : vector<20x5x128xbf16> to vector<4x4x128xbf16>
    %15 = vector.shape_cast %14 : vector<4x4x128xbf16> to vector<16x128xbf16>
    %16 = vector.extract_strided_slice %1 {offsets = [6, 0, 0], sizes = [4, 4, 128], strides = [1, 1, 1]} : vector<20x5x128xbf16> to vector<4x4x128xbf16>
    %17 = vector.shape_cast %16 : vector<4x4x128xbf16> to vector<16x128xbf16>
    %18 = vector.extract_strided_slice %1 {offsets = [1, 1, 0], sizes = [4, 4, 128], strides = [1, 1, 1]} : vector<20x5x128xbf16> to vector<4x4x128xbf16>
    %19 = vector.shape_cast %18 : vector<4x4x128xbf16> to vector<16x128xbf16>
    %20 = tpu.concatenate %3, %5, %7, %9, %11, %13, %15, %17, %19 in 1 : vector<16x128xbf16>, vector<16x128xbf16>, vector<16x128xbf16>, vector<16x128xbf16>, vector<16x128xbf16>, vector<16x128xbf16>, vector<16x128xbf16>, vector<16x128xbf16>, vector<16x128xbf16> -> vector<16x1152xbf16>
    %c0_3 = arith.constant 0 : index
    %c0_4 = arith.constant 0 : index
    %c0_5 = arith.constant 0 : index
    %21 = vector.load %arg3[%c0_3, %c0_4, %c0_5] : memref<1x1152x128xbf16, #tpu.memory_space<vmem>>, vector<1x1152x128xbf16>
    %22 = vector.shape_cast %21 : vector<1x1152x128xbf16> to vector<1152x128xbf16>
    %cst = arith.constant dense<0.000000e+00> : vector<16x128xf32>
    %23 = tpu.matmul %20, %22, %cst {dimension_numbers = #tpu.dot_dimension_numbers<[1], [0], [0], [1], [0, 0, 1, 1], [], []>} : vector<16x1152xbf16>, vector<1152x128xbf16>, vector<16x128xf32> -> vector<16x128xf32>
    %c0_6 = arith.constant 0 : index
    %c0_7 = arith.constant 0 : index
    %24 = vector.load %arg4[%c0_6, %c0_7] : memref<1x128xf32, #tpu.memory_space<vmem>>, vector<1x128xf32>
    %25 = vector.broadcast %24 : vector<1x128xf32> to vector<16x128xf32>
    %26 = arith.mulf %23, %25 : vector<16x128xf32>
    %c0_8 = arith.constant 0 : index
    %c0_9 = arith.constant 0 : index
    %27 = vector.load %arg5[%c0_8, %c0_9] : memref<1x128xf32, #tpu.memory_space<vmem>>, vector<1x128xf32>
    %28 = vector.broadcast %27 : vector<1x128xf32> to vector<16x128xf32>
    %29 = arith.addf %26, %28 : vector<16x128xf32>
    %30 = vector.shape_cast %29 : vector<16x128xf32> to vector<1x16x128xf32>
    %c0_10 = arith.constant 0 : index
    %c0_11 = arith.constant 0 : index
    %c0_12 = arith.constant 0 : index
    %31 = vector.load %arg6[%c0_10, %c0_11, %c0_12] : memref<1x16x128xf32, #tpu.memory_space<vmem>>, vector<1x16x128xf32>
    tpu.vector_store %arg6[%c0_10, %c0_11, %c0_12], %30 {strides = array<i32>} : memref<1x16x128xf32, #tpu.memory_space<vmem>>, vector<1x16x128xf32>,
    return
  }
  func.func @transform_0(%arg0: i32, %arg1: i32) -> (i32, i32, i32, i32) {
    %c1_i32 = arith.constant 1 : i32
    %0 = arith.muli %arg0, %c1_i32 : i32
    %1 = arith.addi %0, %arg1 : i32
    %c0_i32 = arith.constant 0 : i32
    %c0_i32_0 = arith.constant 0 : i32
    %c0_i32_1 = arith.constant 0 : i32
    %c0_i32_2 = arith.constant 0 : i32
    return %1, %c0_i32, %c0_i32_0, %c0_i32_1 : i32, i32, i32, i32
  }
  func.func @transform_1(%arg0: i32, %arg1: i32) -> (i32, i32, i32) {
    %c0_i32 = arith.constant 0 : i32
    %c0_i32_0 = arith.constant 0 : i32
    %c0_i32_1 = arith.constant 0 : i32
    return %arg0, %c0_i32, %c0_i32_0 : i32, i32, i32
  }
  func.func @transform_2(%arg0: i32, %arg1: i32) -> (i32, i32) {
    %c0_i32 = arith.constant 0 : i32
    %c0_i32_0 = arith.constant 0 : i32
    %c0_i32_1 = arith.constant 0 : i32
    return %c0_i32, %c0_i32_0 : i32, i32
  }
  func.func @transform_3(%arg0: i32, %arg1: i32) -> (i32, i32) {
    %c0_i32 = arith.constant 0 : i32
    %c0_i32_0 = arith.constant 0 : i32
    %c0_i32_1 = arith.constant 0 : i32
    return %c0_i32, %c0_i32_0 : i32, i32
  }
  func.func @transform_4(%arg0: i32, %arg1: i32) -> (i32, i32, i32) {
    %c0_i32 = arith.constant 0 : i32
    %c0_i32_0 = arith.constant 0 : i32
    return %arg0, %arg1, %c0_i32 : i32, i32, i32
  }
}

module attributes {stable_mosaic.version = 11 : i64} {
  func.func @_conv_bn_kernel(%arg0: i32, %arg1: i32, %arg2: memref<1x12x3x128xbf16, #tpu.memory_space<vmem>>, %arg3: memref<1x1152x128xbf16, #tpu.memory_space<vmem>>, %arg4: memref<1x128xf32, #tpu.memory_space<vmem>>, %arg5: memref<1x128xf32, #tpu.memory_space<vmem>>, %arg6: memref<1x4x128xf32, #tpu.memory_space<vmem>>) attributes {dimension_semantics = [#tpu.dimension_semantics<parallel>, #tpu.dimension_semantics<parallel>], iteration_bounds = array<i64: 2, 1>, scalar_prefetch = 0 : i64, scratch_operands = 0 : i64, tpu.core_type = #tpu.core_type<tc>, window_params = [{transform_indices = @transform_0, window_bounds = array<i64: 1, 12, 3, 128>}, {transform_indices = @transform_1, window_bounds = array<i64: 1, 1152, 128>}, {pipeline_mode = #tpu.pipeline_mode<synchronous>, transform_indices = @transform_2, window_bounds = array<i64: 1, 128>}, {pipeline_mode = #tpu.pipeline_mode<synchronous>, transform_indices = @transform_3, window_bounds = array<i64: 1, 128>}, {transform_indices = @transform_4, window_bounds = array<i64: 1, 4, 128>}]} {
    %c0 = arith.constant 0 : index
    %c0_0 = arith.constant 0 : index
    %c0_1 = arith.constant 0 : index
    %c0_2 = arith.constant 0 : index
    %0 = vector.load %arg2[%c0, %c0_0, %c0_1, %c0_2] : memref<1x12x3x128xbf16, #tpu.memory_space<vmem>>, vector<1x12x3x128xbf16>
    %1 = vector.shape_cast %0 : vector<1x12x3x128xbf16> to vector<12x3x128xbf16>
    %2 = vector.extract_strided_slice %1 {offsets = [0, 0, 0], sizes = [2, 2, 128], strides = [1, 1, 1]} : vector<12x3x128xbf16> to vector<2x2x128xbf16>
    %3 = vector.shape_cast %2 : vector<2x2x128xbf16> to vector<4x128xbf16>
    %4 = vector.extract_strided_slice %1 {offsets = [3, 0, 0], sizes = [2, 2, 128], strides = [1, 1, 1]} : vector<12x3x128xbf16> to vector<2x2x128xbf16>
    %5 = vector.shape_cast %4 : vector<2x2x128xbf16> to vector<4x128xbf16>
    %6 = vector.extract_strided_slice %1 {offsets = [0, 1, 0], sizes = [2, 2, 128], strides = [1, 1, 1]} : vector<12x3x128xbf16> to vector<2x2x128xbf16>
    %7 = vector.shape_cast %6 : vector<2x2x128xbf16> to vector<4x128xbf16>
    %8 = vector.extract_strided_slice %1 {offsets = [6, 0, 0], sizes = [2, 2, 128], strides = [1, 1, 1]} : vector<12x3x128xbf16> to vector<2x2x128xbf16>
    %9 = vector.shape_cast %8 : vector<2x2x128xbf16> to vector<4x128xbf16>
    %10 = vector.extract_strided_slice %1 {offsets = [9, 0, 0], sizes = [2, 2, 128], strides = [1, 1, 1]} : vector<12x3x128xbf16> to vector<2x2x128xbf16>
    %11 = vector.shape_cast %10 : vector<2x2x128xbf16> to vector<4x128xbf16>
    %12 = vector.extract_strided_slice %1 {offsets = [6, 1, 0], sizes = [2, 2, 128], strides = [1, 1, 1]} : vector<12x3x128xbf16> to vector<2x2x128xbf16>
    %13 = vector.shape_cast %12 : vector<2x2x128xbf16> to vector<4x128xbf16>
    %14 = vector.extract_strided_slice %1 {offsets = [1, 0, 0], sizes = [2, 2, 128], strides = [1, 1, 1]} : vector<12x3x128xbf16> to vector<2x2x128xbf16>
    %15 = vector.shape_cast %14 : vector<2x2x128xbf16> to vector<4x128xbf16>
    %16 = vector.extract_strided_slice %1 {offsets = [4, 0, 0], sizes = [2, 2, 128], strides = [1, 1, 1]} : vector<12x3x128xbf16> to vector<2x2x128xbf16>
    %17 = vector.shape_cast %16 : vector<2x2x128xbf16> to vector<4x128xbf16>
    %18 = vector.extract_strided_slice %1 {offsets = [1, 1, 0], sizes = [2, 2, 128], strides = [1, 1, 1]} : vector<12x3x128xbf16> to vector<2x2x128xbf16>
    %19 = vector.shape_cast %18 : vector<2x2x128xbf16> to vector<4x128xbf16>
    %20 = tpu.concatenate %3, %5, %7, %9, %11, %13, %15, %17, %19 in 1 : vector<4x128xbf16>, vector<4x128xbf16>, vector<4x128xbf16>, vector<4x128xbf16>, vector<4x128xbf16>, vector<4x128xbf16>, vector<4x128xbf16>, vector<4x128xbf16>, vector<4x128xbf16> -> vector<4x1152xbf16>
    %c0_3 = arith.constant 0 : index
    %c0_4 = arith.constant 0 : index
    %c0_5 = arith.constant 0 : index
    %21 = vector.load %arg3[%c0_3, %c0_4, %c0_5] : memref<1x1152x128xbf16, #tpu.memory_space<vmem>>, vector<1x1152x128xbf16>
    %22 = vector.shape_cast %21 : vector<1x1152x128xbf16> to vector<1152x128xbf16>
    %cst = arith.constant dense<0.000000e+00> : vector<4x128xf32>
    %23 = tpu.matmul %20, %22, %cst {dimension_numbers = #tpu.dot_dimension_numbers<[1], [0], [0], [1], [0, 0, 1, 1], [], []>} : vector<4x1152xbf16>, vector<1152x128xbf16>, vector<4x128xf32> -> vector<4x128xf32>
    %c0_6 = arith.constant 0 : index
    %c0_7 = arith.constant 0 : index
    %24 = vector.load %arg4[%c0_6, %c0_7] : memref<1x128xf32, #tpu.memory_space<vmem>>, vector<1x128xf32>
    %25 = vector.broadcast %24 : vector<1x128xf32> to vector<4x128xf32>
    %26 = arith.mulf %23, %25 : vector<4x128xf32>
    %c0_8 = arith.constant 0 : index
    %c0_9 = arith.constant 0 : index
    %27 = vector.load %arg5[%c0_8, %c0_9] : memref<1x128xf32, #tpu.memory_space<vmem>>, vector<1x128xf32>
    %28 = vector.broadcast %27 : vector<1x128xf32> to vector<4x128xf32>
    %29 = arith.addf %26, %28 : vector<4x128xf32>
    %30 = vector.shape_cast %29 : vector<4x128xf32> to vector<1x4x128xf32>
    %c0_10 = arith.constant 0 : index
    %c0_11 = arith.constant 0 : index
    %c0_12 = arith.constant 0 : index
    %31 = vector.load %arg6[%c0_10, %c0_11, %c0_12] : memref<1x4x128xf32, #tpu.memory_space<vmem>>, vector<1x4x128xf32>
    tpu.vector_store %arg6[%c0_10, %c0_11, %c0_12], %30 {strides = array<i32>} : memref<1x4x128xf32, #tpu.memory_space<vmem>>, vector<1x4x128xf32>,
    return
  }
  func.func @transform_0(%arg0: i32, %arg1: i32) -> (i32, i32, i32, i32) {
    %c1_i32 = arith.constant 1 : i32
    %0 = arith.muli %arg0, %c1_i32 : i32
    %1 = arith.addi %0, %arg1 : i32
    %c0_i32 = arith.constant 0 : i32
    %c0_i32_0 = arith.constant 0 : i32
    %c0_i32_1 = arith.constant 0 : i32
    %c0_i32_2 = arith.constant 0 : i32
    return %1, %c0_i32, %c0_i32_0, %c0_i32_1 : i32, i32, i32, i32
  }
  func.func @transform_1(%arg0: i32, %arg1: i32) -> (i32, i32, i32) {
    %c0_i32 = arith.constant 0 : i32
    %c0_i32_0 = arith.constant 0 : i32
    %c0_i32_1 = arith.constant 0 : i32
    return %arg0, %c0_i32, %c0_i32_0 : i32, i32, i32
  }
  func.func @transform_2(%arg0: i32, %arg1: i32) -> (i32, i32) {
    %c0_i32 = arith.constant 0 : i32
    %c0_i32_0 = arith.constant 0 : i32
    %c0_i32_1 = arith.constant 0 : i32
    return %c0_i32, %c0_i32_0 : i32, i32
  }
  func.func @transform_3(%arg0: i32, %arg1: i32) -> (i32, i32) {
    %c0_i32 = arith.constant 0 : i32
    %c0_i32_0 = arith.constant 0 : i32
    %c0_i32_1 = arith.constant 0 : i32
    return %c0_i32, %c0_i32_0 : i32, i32
  }
  func.func @transform_4(%arg0: i32, %arg1: i32) -> (i32, i32, i32) {
    %c0_i32 = arith.constant 0 : i32
    %c0_i32_0 = arith.constant 0 : i32
    return %arg0, %arg1, %c0_i32 : i32, i32, i32
  }
}

module attributes {stable_mosaic.version = 11 : i64} {
  func.func @_conv_bn_kernel(%arg0: i32, %arg1: i32, %arg2: memref<1x2x2x128xbf16, #tpu.memory_space<vmem>>, %arg3: memref<1x128x128xbf16, #tpu.memory_space<vmem>>, %arg4: memref<1x128xf32, #tpu.memory_space<vmem>>, %arg5: memref<1x128xf32, #tpu.memory_space<vmem>>, %arg6: memref<1x4x128xf32, #tpu.memory_space<vmem>>) attributes {dimension_semantics = [#tpu.dimension_semantics<parallel>, #tpu.dimension_semantics<parallel>], iteration_bounds = array<i64: 2, 1>, scalar_prefetch = 0 : i64, scratch_operands = 0 : i64, tpu.core_type = #tpu.core_type<tc>, window_params = [{transform_indices = @transform_0, window_bounds = array<i64: 1, 2, 2, 128>}, {transform_indices = @transform_1, window_bounds = array<i64: 1, 128, 128>}, {pipeline_mode = #tpu.pipeline_mode<synchronous>, transform_indices = @transform_2, window_bounds = array<i64: 1, 128>}, {pipeline_mode = #tpu.pipeline_mode<synchronous>, transform_indices = @transform_3, window_bounds = array<i64: 1, 128>}, {transform_indices = @transform_4, window_bounds = array<i64: 1, 4, 128>}]} {
    %c0 = arith.constant 0 : index
    %c0_0 = arith.constant 0 : index
    %c0_1 = arith.constant 0 : index
    %c0_2 = arith.constant 0 : index
    %0 = vector.load %arg2[%c0, %c0_0, %c0_1, %c0_2] : memref<1x2x2x128xbf16, #tpu.memory_space<vmem>>, vector<1x2x2x128xbf16>
    %1 = vector.shape_cast %0 : vector<1x2x2x128xbf16> to vector<2x2x128xbf16>
    %2 = vector.shape_cast %1 : vector<2x2x128xbf16> to vector<4x128xbf16>
    %c0_3 = arith.constant 0 : index
    %c0_4 = arith.constant 0 : index
    %c0_5 = arith.constant 0 : index
    %3 = vector.load %arg3[%c0_3, %c0_4, %c0_5] : memref<1x128x128xbf16, #tpu.memory_space<vmem>>, vector<1x128x128xbf16>
    %4 = vector.shape_cast %3 : vector<1x128x128xbf16> to vector<128x128xbf16>
    %cst = arith.constant dense<0.000000e+00> : vector<4x128xf32>
    %5 = tpu.matmul %2, %4, %cst {dimension_numbers = #tpu.dot_dimension_numbers<[1], [0], [0], [1], [0, 0, 1, 1], [], []>} : vector<4x128xbf16>, vector<128x128xbf16>, vector<4x128xf32> -> vector<4x128xf32>
    %c0_6 = arith.constant 0 : index
    %c0_7 = arith.constant 0 : index
    %6 = vector.load %arg4[%c0_6, %c0_7] : memref<1x128xf32, #tpu.memory_space<vmem>>, vector<1x128xf32>
    %7 = vector.broadcast %6 : vector<1x128xf32> to vector<4x128xf32>
    %8 = arith.mulf %5, %7 : vector<4x128xf32>
    %c0_8 = arith.constant 0 : index
    %c0_9 = arith.constant 0 : index
    %9 = vector.load %arg5[%c0_8, %c0_9] : memref<1x128xf32, #tpu.memory_space<vmem>>, vector<1x128xf32>
    %10 = vector.broadcast %9 : vector<1x128xf32> to vector<4x128xf32>
    %11 = arith.addf %8, %10 : vector<4x128xf32>
    %12 = vector.shape_cast %11 : vector<4x128xf32> to vector<1x4x128xf32>
    %c0_10 = arith.constant 0 : index
    %c0_11 = arith.constant 0 : index
    %c0_12 = arith.constant 0 : index
    %13 = vector.load %arg6[%c0_10, %c0_11, %c0_12] : memref<1x4x128xf32, #tpu.memory_space<vmem>>, vector<1x4x128xf32>
    tpu.vector_store %arg6[%c0_10, %c0_11, %c0_12], %12 {strides = array<i32>} : memref<1x4x128xf32, #tpu.memory_space<vmem>>, vector<1x4x128xf32>,
    return
  }
  func.func @transform_0(%arg0: i32, %arg1: i32) -> (i32, i32, i32, i32) {
    %c1_i32 = arith.constant 1 : i32
    %0 = arith.muli %arg0, %c1_i32 : i32
    %1 = arith.addi %0, %arg1 : i32
    %c0_i32 = arith.constant 0 : i32
    %c0_i32_0 = arith.constant 0 : i32
    %c0_i32_1 = arith.constant 0 : i32
    %c0_i32_2 = arith.constant 0 : i32
    return %1, %c0_i32, %c0_i32_0, %c0_i32_1 : i32, i32, i32, i32
  }
  func.func @transform_1(%arg0: i32, %arg1: i32) -> (i32, i32, i32) {
    %c0_i32 = arith.constant 0 : i32
    %c0_i32_0 = arith.constant 0 : i32
    %c0_i32_1 = arith.constant 0 : i32
    return %arg0, %c0_i32, %c0_i32_0 : i32, i32, i32
  }
  func.func @transform_2(%arg0: i32, %arg1: i32) -> (i32, i32) {
    %c0_i32 = arith.constant 0 : i32
    %c0_i32_0 = arith.constant 0 : i32
    %c0_i32_1 = arith.constant 0 : i32
    return %c0_i32, %c0_i32_0 : i32, i32
  }
  func.func @transform_3(%arg0: i32, %arg1: i32) -> (i32, i32) {
    %c0_i32 = arith.constant 0 : i32
    %c0_i32_0 = arith.constant 0 : i32
    %c0_i32_1 = arith.constant 0 : i32
    return %c0_i32, %c0_i32_0 : i32, i32
  }
  func.func @transform_4(%arg0: i32, %arg1: i32) -> (i32, i32, i32) {
    %c0_i32 = arith.constant 0 : i32
    %c0_i32_0 = arith.constant 0 : i32
    return %arg0, %arg1, %c0_i32 : i32, i32, i32
  }
}

</mosaic_0001>

<bundles_post_ra>
// kernel: spatial_path_forward.5
= control target key start
LH: loop header
LB: loop body
LE: loop exit
PB: predicated region body
PF: predicated region fallthrough
CT: control target
= control target key end

     0   :  { %s1821_s15 = smov 0   ;;  %s1823_s16 = smov 0   ;;  %s2063_s0 = inlined_call_operand.vmem [shape: bf16[2,20,5,128], index: 0, kind: input, shape index: {}]   ;;  %s2064_s1 = inlined_call_operand.vmem [shape: bf16[2,1152,128], index: 1, kind: input, shape index: {}]   ;;  %s2065_s2 = inlined_call_operand.vmem [shape: f32[1,128], index: 2, kind: input, shape index: {}]   ;;  %s2066_s3 = inlined_call_operand.vmem [shape: f32[1,128], index: 3, kind: input, shape index: {}]   ;;  %s2067_s4 = inlined_call_operand.vmem [shape: f32[2,16,128], index: 4, kind: output, shape index: {}]  }
   0x1   :  { %s1825_s17 = smov 0  }
   0x2 LB: > { %s26_s18 = sadd.s32 1, %s1790_s16  ;;  %p1376_p0 = scmp.ge.s32.totalorder %s1794_s17, 1  ;;  %s1794_s17 = sphi %s1825_s17, %s14_s17   ;;  %s1790_s16 = sphi %s1823_s16, %s2075_s16   ;;  %s1786_s15 = sphi %s1821_s15, %s2074_s15  }
   0x3   : > { %p28_p1 = scmp.ge.s32.totalorder %s26_s18, 2  ;;  %p190_p2 = scmp.lt.s32.totalorder %s1794_s17, 3 }
   0x5   : > { %s2077_s18 = smov (%p28_p1, %s26_s18), 0  ;;  %p191_p3 = pnand %p1376_p0, %p190_p2 }
   0x6   : > { %p227_p4 = scmp.lt.s32.totalorder (!%p191_p3), %s1786_s15, 1 }
   0x7   : > { %194 = sbr.rel (%p191_p3) target bundleno = 265 (0x109), region = 36 }
   0xc   : > { %s2079_s15 = smov (!%p227_p4, %s1786_s15), 1  ;;  %vm274_vm0 = vcmask 1041408   ;;  %vm278_vm1 = vcmask 1043458   ;;  %vm300_vm2 = vsmask.f32 1280 }
   0xd   : > { %s1745_s19 = smul.u32 576, %s2079_s15  ;;  %vm301_vm3 = vsmask.f32 3336  ;;  %vm303_vm4 = vsmask.f32 5392  ;;  %s1671_s29 = sshll.u32 %s2079_s15, 4 }
   0xe   : > { %s1744_s23 = smul.u32 80, %s2079_s15  ;;  %vm1928_vm5 = vmor %vm300_vm2, %vm301_vm3  ;;  %vm305_vm7 = vsmask.f32 7448  ;;  %s246_s8 = scalar_lea.vmem %s2067_s4, %s1671_s29 }
   0xf   : > { %s1845_s22 = scalar_lea.vmem %s2064_s1, %s1745_s19  ;;  %vm1939_vm6 = vmor %vm1928_vm5, %vm303_vm4 }
  0x10   : > { %v1679_v0 = vld [vmem:[%s1845_s22 + $0x38] sm:$0xff]  ;;  %v1678_v4 = vld [vmem:[%s1845_s22 + $0x30] sm:$0xff]  ;;  %v1677_v8 = vld [vmem:[%s1845_s22 + $0x28] sm:$0xff]  ;;  %s1867_s26 = scalar_lea.vmem %s2063_s0, %s1744_s23 }
  0x11   : > { %v1695_v1 = vld [vmem:[%s1845_s22 + $0xb8] sm:$0xff]  ;;  %1139 = vmatpush.bf16.msra.mxu0 %v1679_v0  ;;  %v1694_v5 = vld [vmem:[%s1845_s22 + $0xb0] sm:$0xff]  ;;  %v1693_v9 = vld [vmem:[%s1845_s22 + $0xa8] sm:$0xff] }
  0x12   : > { %v1687_v2 = vld [vmem:[%s1845_s22 + $0x78] sm:$0xff]  ;;  %1167 = vmatpush.bf16.msra.mxu2 %v1695_v1  ;;  %v1686_v6 = vld [vmem:[%s1845_s22 + $0x70] sm:$0xff]  ;;  %v1685_v10 = vld [vmem:[%s1845_s22 + $0x68] sm:$0xff] }
  0x13   : > { %v1703_v3 = vld [vmem:[%s1845_s22 + $0xf8] sm:$0xff]  ;;  %1153 = vmatpush.bf16.msra.mxu1 %v1687_v2  ;;  %v1702_v7 = vld [vmem:[%s1845_s22 + $0xf0] sm:$0xff]  ;;  %v1701_v11 = vld [vmem:[%s1845_s22 + $0xe8] sm:$0xff] }
  0x14   : > { %1181 = vmatpush.bf16.msra.mxu3 %v1703_v3  ;;  %v1676_v12 = vld [vmem:[%s1845_s22 + $0x20] sm:$0xff]  ;;  %v1675_v16 = vld [vmem:[%s1845_s22 + $0x18] sm:$0xff]  ;;  %v1878_v22 = vld [vmem:[%s1867_s26 + $0x8] sm:$0x7] }
  0x15   : > { %1140 = vmatpush.bf16.msra.mxu0 %v1678_v4  ;;  %v1692_v13 = vld [vmem:[%s1845_s22 + $0xa0] sm:$0xff]  ;;  %v1691_v17 = vld [vmem:[%s1845_s22 + $0x98] sm:$0xff]  ;;  %v1881_v23 = vld [vmem:[%s1867_s26 + $0xc] sm:$0x7]  ;;  %468 = vst [vmem:[#allocation1 + $0x2] ss:$4 sm:$0xff] %v1878_v22 }
  0x16   : > { %1168 = vmatpush.bf16.msra.mxu2 %v1694_v5  ;;  %v1684_v14 = vld [vmem:[%s1845_s22 + $0x60] sm:$0xff]  ;;  %v1683_v18 = vld [vmem:[%s1845_s22 + $0x58] sm:$0xff]  ;;  %v1674_v24 = vld [vmem:[%s1845_s22 + $0x10] sm:$0xff]  ;;  %470 = vst [vmem:[#allocation1 + $0x3] ss:$4 sm:$0xff] %v1881_v23  ;;  %v272_v30 = vrot.slane %v1878_v22, 2 }
  0x17   : > { %1154 = vmatpush.bf16.msra.mxu1 %v1686_v6  ;;  %v1700_v15 = vld [vmem:[%s1845_s22 + $0xe0] sm:$0xff]  ;;  %v1699_v19 = vld [vmem:[%s1845_s22 + $0xd8] sm:$0xff]  ;;  %v1690_v25 = vld [vmem:[%s1845_s22 + $0x90] sm:$0xff]  ;;  %v273_v31 = vrot.slane %v1881_v23, 2 }
  0x18   : > { %1182 = vmatpush.bf16.msra.mxu3 %v1702_v7  ;;  %v248_v20 = vld [vmem:[%s1867_s26] sm:$0x7]  ;;  %v1875_v21 = vld [vmem:[%s1867_s26 + $0x4] sm:$0x7]  ;;  %v1682_v26 = vld [vmem:[%s1845_s22 + $0x50] sm:$0xff]  ;;  %v290_v38 = vsel %vm274_vm0, %v1878_v22, %v272_v30  ;;  %v291_v43 = vsel %vm278_vm1, %v1878_v22, %v272_v30 }
  0x19   : > { %1141 = vmatpush.bf16.msra.mxu0 %v1677_v8  ;;  %464 = vst [vmem:[#allocation1] ss:$4 sm:$0xff] %v248_v20  ;;  %v1698_v27 = vld [vmem:[%s1845_s22 + $0xd0] sm:$0xff]  ;;  %v270_v28 = vrot.slane %v248_v20, 2  ;;  %v271_v29 = vrot.slane %v1875_v21, 2  ;;  %v1673_v36 = vld [vmem:[%s1845_s22 + $0x8] sm:$0xff]  ;;  %v297_v49 = vsel %vm278_vm1, %v1881_v23, %v273_v31  ;;  %v296_v55 = vsel %vm274_vm0, %v1881_v23, %v273_v31  ;;  %vm1952_vm8 = vmor %vm1939_vm6, %vm305_vm7 }
  0x1a   : > { %1169 = vmatpush.bf16.msra.mxu2 %v1693_v9  ;;  %466 = vst [vmem:[#allocation1 + $0x1] ss:$4 sm:$0xff] %v1875_v21  ;;  %v1689_v37 = vld [vmem:[%s1845_s22 + $0x88] sm:$0xff]  ;;  %v253_v41 = vld [vmem:[%s1867_s26 + $0x14] sm:$0x7]  ;;  %v1672_v45 = vld [vmem:[%s1845_s22] sm:$0xff] }
  0x1b   : > { %1155 = vmatpush.bf16.msra.mxu1 %v1685_v10  ;;  %v277_v32 = vsel %vm274_vm0, %v248_v20, %v270_v28  ;;  %v279_v33 = vsel %vm278_vm1, %v248_v20, %v270_v28  ;;  %v284_v34 = vsel %vm274_vm0, %v1875_v21, %v271_v29  ;;  %v285_v35 = vsel %vm278_vm1, %v1875_v21, %v271_v29  ;;  %v1681_v39 = vld [vmem:[%s1845_s22 + $0x48] sm:$0xff]  ;;  %v1688_v46 = vld [vmem:[%s1845_s22 + $0x80] sm:$0xff]  ;;  %v1911_v47 = vld [vmem:[%s1867_s26 + $0x18] sm:$0x7] }
  0x1c   : > { %1183 = vmatpush.bf16.msra.mxu3 %v1701_v11  ;;  %v1697_v40 = vld [vmem:[%s1845_s22 + $0xc8] sm:$0xff]  ;;  %v281_v42 = vrot.slane %v279_v33, 2  ;;  %v307_v44 = vshrl.u32 %v277_v32, 16  ;;  %v287_v48 = vrot.slane %v285_v35, 2  ;;  %v310_v50 = vshll.u32 %v277_v32, 16  ;;  %v1711_v52 = vld [vmem:[%s1845_s22 + $0x138] sm:$0xff] }
  0x1d   : > { %1142 = vmatpush.bf16.msra.mxu0 %v1676_v12  ;;  %v320_v51 = vshrl.u32 %v284_v34, 16  ;;  %v1727_v53 = vld [vmem:[%s1845_s22 + $0x1b8] sm:$0xff]  ;;  %v323_v57 = vshll.u32 %v284_v34, 16  ;;  %v333_v58 = vshrl.u32 %v290_v38, 16  ;;  %v1680_v59 = vld [vmem:[%s1845_s22 + $0x40] sm:$0xff]  ;;  %v293_v61 = vrot.slane %v291_v43, 2 }
  0x1e   : > { %1170 = vmatpush.bf16.msra.mxu2 %v1692_v13  ;;  %v1918_v54 = vld [vmem:[%s1867_s26 + $0x1c] sm:$0x7]  ;;  %v309_v56 = vrot.slane %v307_v44, 6  ;;  %v1924_v60 = vld [vmem:[%s1867_s26 + $0x20] sm:$0x7]  ;;  %v312_v62 = vrot.slane %v310_v50, 7 }
  0x1f   : > { %1156 = vmatpush.bf16.msra.mxu1 %v1684_v14  ;;  %v322_v63 = vrot.slane %v320_v51, 6  ;;  %v336_v0 = vshll.u32 %v290_v38, 16  ;;  %v299_v2 = vrot.slane %v297_v49, 2  ;;  %v325_v4 = vrot.slane %v323_v57, 7  ;;  %v1696_v6 = vld [vmem:[%s1845_s22 + $0xc0] sm:$0xff]  ;;  %v1719_v11 = vld [vmem:[%s1845_s22 + $0x178] sm:$0xff] }
  0x20   : > { %1184 = vmatpush.bf16.msra.mxu3 %v1700_v15  ;;  %v335_v5 = vrot.slane %v333_v58, 6  ;;  %v313_v7 = vor.u32 %v312_v62, %v309_v56  ;;  %v316_v8 = vshll.u32 %v281_v42, 16  ;;  %v346_v10 = vshrl.u32 %v296_v55, 16  ;;  %v1735_v12 = vld [vmem:[%s1845_s22 + $0x1f8] sm:$0xff]  ;;  %v1710_v20 = vld [vmem:[%s1845_s22 + $0x130] sm:$0xff]  ;;  %v1725_v38 = vld [vmem:[%s1845_s22 + $0x1a8] sm:$0xff] }
  0x21   : > { %1143 = vmatpush.bf16.msra.mxu0 %v1675_v16  ;;  %v471_v1 = vld.sshfl [vmem:[#allocation1] sm:$0xff pattern:$0x73625140]  ;;  %v338_v9 = vrot.slane %v336_v0, 7  ;;  %v326_v13 = vor.u32 %v325_v4, %v322_v63  ;;  %v329_v14 = vshll.u32 %v287_v48, 16  ;;  %v349_v15 = vshll.u32 %v296_v55, 16 }
  0x22   : > { %1171 = vmatpush.bf16.msra.mxu2 %v1691_v17  ;;  %474 = vst [vmem:[#allocation1] ss:$4 sm:$0xff] %v253_v41  ;;  %v318_v28 = vrot.slane %v316_v8, 7  ;;  %v1718_v29 = vld [vmem:[%s1845_s22 + $0x170] sm:$0xff]  ;;  %v1717_v42 = vld [vmem:[%s1845_s22 + $0x168] sm:$0xff]  ;;  %v1708_v48 = vld [vmem:[%s1845_s22 + $0x120] sm:$0xff] }
  0x23   : > { %1157 = vmatpush.bf16.msra.mxu1 %v1683_v18  ;;  %477 = vst [vmem:[#allocation1 + $0x1] ss:$4 sm:$0xff] %v1911_v47  ;;  %v339_v17 = vor.u32 %v338_v9, %v335_v5  ;;  %v342_v18 = vshll.u32 %v293_v61, 16  ;;  %v1734_v30 = vld [vmem:[%s1845_s22 + $0x1f0] sm:$0xff]  ;;  %v327_v32 = vrot.slane %v326_v13, 2  ;;  %v331_v33 = vrot.slane %v329_v14, 7 }
  0x24   : > { %1185 = vmatpush.bf16.msra.mxu3 %v1699_v19  ;;  %v348_v19 = vrot.slane %v346_v10, 6  ;;  %480 = vst [vmem:[#allocation1 + $0x2] ss:$4 sm:$0xff] %v1918_v54  ;;  %v1733_v43 = vld [vmem:[%s1845_s22 + $0x1e8] sm:$0xff]  ;;  %v1724_v49 = vld [vmem:[%s1845_s22 + $0x1a0] sm:$0xff]  ;;  %v1723_v55 = vld [vmem:[%s1845_s22 + $0x198] sm:$0xff] }
  0x25   : > { %1144 = vmatpush.bf16.msra.mxu0 %v1674_v24  ;;  %v1726_v24 = vld [vmem:[%s1845_s22 + $0x1b0] sm:$0xff]  ;;  %483 = vst [vmem:[#allocation1 + $0x3] ss:$4 sm:$0xff] %v1924_v60  ;;  %v340_v35 = vrot.slane %v339_v17, 2  ;;  %v1964_v44 = vsel %vm1952_vm8, %v327_v32, %v331_v33  ;;  %v1716_v51 = vld [vmem:[%s1845_s22 + $0x160] sm:$0xff]  ;;  %v1715_v57 = vld [vmem:[%s1845_s22 + $0x158] sm:$0xff] }
  0x26   : > { %1172 = vmatpush.bf16.msra.mxu2 %v1690_v25  ;;  %v351_v25 = vrot.slane %v349_v15, 7  ;;  %v258_v56 = vld [vmem:[%s1867_s26 + $0x28] sm:$0x7]  ;;  %v1731_v58 = vld [vmem:[%s1845_s22 + $0x1d8] sm:$0xff]  ;;  %v260_v62 = vld [vmem:[%s1867_s26 + $0x30] sm:$0x7] }
  0x27   : > { %1158 = vmatpush.bf16.msra.mxu1 %v1682_v26  ;;  %v355_v26 = vshll.u32 %v299_v2, 16  ;;  %v363_v61 = vrot.slane %v258_v56, 2  ;;  %v1706_v63 = vld [vmem:[%s1845_s22 + $0x110] sm:$0xff]  ;;  %v365_v3 = vrot.slane %v260_v62, 2  ;;  %v1705_v9 = vld [vmem:[%s1845_s22 + $0x108] sm:$0xff] }
  0x28   : > { %1186 = vmatpush.bf16.msra.mxu3 %v1698_v27  ;;  %v314_v27 = vrot.slane %v313_v7, 2  ;;  %v352_v34 = vor.u32 %v351_v25, %v348_v19  ;;  %v1722_v0 = vld [vmem:[%s1845_s22 + $0x190] sm:$0xff]  ;;  %v1721_v10 = vld [vmem:[%s1845_s22 + $0x188] sm:$0xff]  ;;  %v1704_v25 = vld [vmem:[%s1845_s22 + $0x100] sm:$0xff] }
  0x29   : > { %1145 = vmatpush.bf16.msra.mxu0 %v1673_v36  ;;  %v344_v36 = vrot.slane %v342_v18, 7  ;;  %v261_v2 = vld [vmem:[%s1867_s26 + $0x34] sm:$0x7]  ;;  %v369_v8 = vsel %vm274_vm0, %v258_v56, %v363_v61  ;;  %v1713_v13 = vld [vmem:[%s1845_s22 + $0x148] sm:$0xff]  ;;  %v370_v15 = vsel %vm278_vm1, %v258_v56, %v363_v61 }
  0x2a   : > { %1173 = vmatpush.bf16.msra.mxu2 %v1689_v37  ;;  %v1709_v37 = vld [vmem:[%s1845_s22 + $0x128] sm:$0xff]  ;;  %v319_v41 = vsel %vm1952_vm8, %v314_v27, %v318_v28  ;;  %v1714_v5 = vld [vmem:[%s1845_s22 + $0x150] sm:$0xff]  ;;  %v366_v7 = vrot.slane %v261_v2, 2  ;;  %v391_v17 = vshrl.u32 %v369_v8, 16  ;;  %v394_v18 = vshll.u32 %v369_v8, 16 }
  0x2b   : > { %1159 = vmatpush.bf16.msra.mxu1 %v1681_v39  ;;  %v353_v39 = vrot.slane %v352_v34, 2  ;;  %v1729_v14 = vld [vmem:[%s1845_s22 + $0x1c8] sm:$0xff]  ;;  %v382_v27 = vsel %vm278_vm1, %v260_v62, %v365_v3  ;;  %v372_v32 = vrot.slane %v370_v15, 2 }
  0x2c   : > { %1187 = vmatpush.bf16.msra.mxu3 %v1697_v40  ;;  %v357_v40 = vrot.slane %v355_v26, 7  ;;  %v387_v16 = vsel %vm274_vm0, %v261_v2, %v366_v7  ;;  %v1720_v26 = vld [vmem:[%s1845_s22 + $0x180] sm:$0xff]  ;;  %v1737_v31 = vld [vmem:[%s1845_s22 + $0x208] sm:$0xff] }
  0x2d   : > { %1146 = vmatpush.bf16.msra.mxu0 %v1672_v45  ;;  %v1968_v45 = vsel %vm1952_vm8, %v340_v35, %v344_v36  ;;  %v430_v33 = vshrl.u32 %v387_v16, 16  ;;  %v433_v34 = vshll.u32 %v387_v16, 16  ;;  %v1712_v35 = vld [vmem:[%s1845_s22 + $0x140] sm:$0xff]  ;;  %v400_v61 = vshll.u32 %v372_v32, 16 }
  0x2e   : > { %1174 = vmatpush.bf16.msra.mxu2 %v1688_v46  ;;  %v484_v46 = vld.sshfl [vmem:[#allocation1] sm:$0xff pattern:$0x73625140]  ;;  %v1974_v50 = vsel %vm1952_vm8, %v353_v39, %v357_v40  ;;  %v396_v39 = vrot.slane %v394_v18, 7 }
  0x2f   : > { %1160 = vmatpush.bf16.msra.mxu1 %v1680_v59  ;;  %487 = vst [vmem:[#allocation1] ss:$4 sm:$0xff] %v319_v41  ;;  %v259_v59 = vld [vmem:[%s1867_s26 + $0x2c] sm:$0x7]  ;;  %v1728_v40 = vld [vmem:[%s1845_s22 + $0x1c0] sm:$0xff] }
  0x30   : > { %1188 = vmatpush.bf16.msra.mxu3 %v1696_v6  ;;  %1147 = vmatmul.bf16.vlgmr.msra.gmra.mxu0 %v471_v1  ;;  %490 = vst [vmem:[#allocation1 + $0x1] ss:$4 sm:$0xff] %v1964_v44  ;;  %v364_v1 = vrot.slane %v259_v59, 2  ;;  %v1730_v6 = vld [vmem:[%s1845_s22 + $0x1d0] sm:$0xff]  ;;  %v262_v41 = vld [vmem:[%s1867_s26 + $0x3c] sm:$0x7] }
  0x31   : > { %1195 = vmatpush.bf16.msrb.mxu0 %v1711_v52  ;;  %v1732_v52 = vld [vmem:[%s1845_s22 + $0x1e0] sm:$0xff]  ;;  %493 = vst [vmem:[#allocation1 + $0x2] ss:$4 sm:$0xff] %v1968_v45 }
  0x32   : > { %1223 = vmatpush.bf16.msrb.mxu2 %v1727_v53  ;;  %1161 = vmatmul.bf16.vlgmr.msra.gmra.mxu1 %v484_v46  ;;  %496 = vst [vmem:[#allocation1 + $0x3] ss:$4 sm:$0xff] %v1974_v50  ;;  %v1707_v53 = vld [vmem:[%s1845_s22 + $0x118] sm:$0xff]  ;;  %v376_v19 = vsel %vm278_vm1, %v259_v59, %v364_v1 }
  0x33   : > { %1209 = vmatpush.bf16.msrb.mxu1 %v1719_v11  ;;  %v375_v11 = vsel %vm274_vm0, %v259_v59, %v364_v1  ;;  %v378_v36 = vrot.slane %v376_v19, 2  ;;  %v252_v1 = vld [vmem:[%s1867_s26 + $0x10] sm:$0x7] }
  0x34   : > { %1237 = vmatpush.bf16.msrb.mxu3 %v1735_v12  ;;  %v381_v12 = vsel %vm274_vm0, %v260_v62, %v365_v3 }
  0x35   : > { %1196 = vmatpush.bf16.msrb.mxu0 %v1710_v20  ;;  %v404_v20 = vshrl.u32 %v375_v11, 16  ;;  %v417_v28 = vshrl.u32 %v381_v12, 16 }
  0x36   : > { %1224 = vmatpush.bf16.msrb.mxu2 %v1726_v24  ;;  %v407_v24 = vshll.u32 %v375_v11, 16 }
  0x37   : > { %1210 = vmatpush.bf16.msrb.mxu1 %v1718_v29  ;;  %v420_v29 = vshll.u32 %v381_v12, 16 }
  0x38   : > { %1238 = vmatpush.bf16.msrb.mxu3 %v1734_v30  ;;  %v1743_v30 = vld [vmem:[%s1845_s22 + $0x238] sm:$0xff]  ;;  %v409_v46 = vrot.slane %v407_v24, 7 }
  0x39   : > { %1197 = vmatpush.bf16.msrb.mxu0 %v1709_v37  ;;  %v497_v4 = vld.sshfl [vmem:[#allocation1] sm:$0xff pattern:$0x73625140]  ;;  %v388_v37 = vsel %vm278_vm1, %v261_v2, %v366_v7  ;;  %v402_v7 = vrot.slane %v400_v61, 7 }
  0x3a   : > { %1225 = vmatpush.bf16.msrb.mxu2 %v1725_v38  ;;  %499 = vst [vmem:[#allocation1] ss:$4 sm:$0xff] %v258_v56  ;;  %v393_v38 = vrot.slane %v391_v17, 6  ;;  %v432_v56 = vrot.slane %v430_v33, 6 }
  0x3b   : > { %1211 = vmatpush.bf16.msrb.mxu1 %v1717_v42  ;;  %1175 = vmatmul.bf16.vlgmr.msra.gmra.mxu2 %v497_v4  ;;  %501 = vst [vmem:[#allocation1 + $0x1] ss:$4 sm:$0xff] %v259_v59  ;;  %v384_v42 = vrot.slane %v382_v27, 2  ;;  %v1742_v27 = vld [vmem:[%s1845_s22 + $0x230] sm:$0xff] }
  0x3c   : > { %1239 = vmatpush.bf16.msrb.mxu3 %v1733_v43  ;;  %503 = vst [vmem:[#allocation1 + $0x2] ss:$4 sm:$0xff] %v260_v62  ;;  %v406_v43 = vrot.slane %v404_v20, 6  ;;  %v397_v59 = vor.u32 %v396_v39, %v393_v38  ;;  %v413_v62 = vshll.u32 %v378_v36, 16  ;;  %v1739_v38 = vld [vmem:[%s1845_s22 + $0x218] sm:$0xff] }
  0x3d   : > { %1198 = vmatpush.bf16.msrb.mxu0 %v1708_v48  ;;  %505 = vst [vmem:[#allocation1 + $0x3] ss:$4 sm:$0xff] %v261_v2  ;;  %v263_v48 = vld [vmem:[%s1867_s26 + $0x40] sm:$0x7] }
  0x3e   : > { %1226 = vmatpush.bf16.msrb.mxu2 %v1724_v49  ;;  %v264_v49 = vld [vmem:[%s1867_s26 + $0x44] sm:$0x7]  ;;  %v415_v8 = vrot.slane %v413_v62, 7 }
  0x3f   : > { %1212 = vmatpush.bf16.msrb.mxu1 %v1716_v51  ;;  %v419_v51 = vrot.slane %v417_v28, 6 }
  0x40   : > { %1240 = vmatpush.bf16.msrb.mxu3 %v1732_v52  ;;  %v422_v52 = vrot.slane %v420_v29, 7 }
  0x41   : > { %1199 = vmatpush.bf16.msrb.mxu0 %v1707_v53 }
  0x42   : > { %1227 = vmatpush.bf16.msrb.mxu2 %v1723_v55  ;;  %v390_v55 = vrot.slane %v388_v37, 2  ;;  %v423_v2 = vor.u32 %v422_v52, %v419_v51  ;;  %v1740_v37 = vld [vmem:[%s1845_s22 + $0x220] sm:$0xff] }
  0x43   : > { %1213 = vmatpush.bf16.msrb.mxu1 %v1715_v57  ;;  %v435_v57 = vrot.slane %v433_v34, 7 }
  0x44   : > { %1241 = vmatpush.bf16.msrb.mxu3 %v1731_v58  ;;  %v506_v53 = vld.sshfl [vmem:[#allocation1] sm:$0xff pattern:$0x73625140]  ;;  %v265_v58 = vld [vmem:[%s1867_s26 + $0x48] sm:$0x7]  ;;  %v439_v4 = vshll.u32 %v390_v55, 16 }
  0x45   : > { %1200 = vmatpush.bf16.msrb.mxu0 %v1706_v63  ;;  %1189 = vmatmul.bf16.vlgmr.msra.gmra.mxu3 %v506_v53  ;;  %509 = vst [vmem:[#allocation1] ss:$4 sm:$0xff] %v262_v41  ;;  %v410_v63 = vor.u32 %v409_v46, %v406_v43  ;;  %v436_v3 = vor.u32 %v435_v57, %v432_v56  ;;  %v257_v43 = vld [vmem:[%s1867_s26 + $0x24] sm:$0x7] }
  0x46   : > { %1228 = vmatpush.bf16.msrb.mxu2 %v1722_v0  ;;  %512 = vst [vmem:[#allocation1 + $0x1] ss:$4 sm:$0xff] %v263_v48  ;;  %v426_v0 = vshll.u32 %v384_v42, 16  ;;  %v441_v18 = vrot.slane %v439_v4, 7  ;;  %v1736_v42 = vld [vmem:[%s1845_s22 + $0x200] sm:$0xff] }
  0x47   : > { %1214 = vmatpush.bf16.msrb.mxu1 %v1714_v5  ;;  %515 = vst [vmem:[#allocation1 + $0x2] ss:$4 sm:$0xff] %v264_v49  ;;  %v444_v5 = vrot.slane %v252_v1, 2  ;;  %v437_v17 = vrot.slane %v436_v3, 2  ;;  %v1770_v4 = vld [vmem:[%s2065_s2] ss:$0 sm:$0xff] }
  0x48   : > { %1242 = vmatpush.bf16.msrb.mxu3 %v1730_v6  ;;  %518 = vst [vmem:[#allocation1 + $0x3] ss:$4 sm:$0xff] %v265_v58  ;;  %v398_v6 = vrot.slane %v397_v59, 2 }
  0x49   : > { %1201 = vmatpush.bf16.msrb.mxu0 %v1705_v9  ;;  %v411_v9 = vrot.slane %v410_v63, 2  ;;  %v447_v11 = vsel %vm274_vm0, %v252_v1, %v444_v5  ;;  %v448_v12 = vsel %vm278_vm1, %v252_v1, %v444_v5  ;;  %v442_v33 = vsel %vm1952_vm8, %v437_v17, %v441_v18 }
  0x4a   : > { %1229 = vmatpush.bf16.msrb.mxu2 %v1721_v10  ;;  %v428_v10 = vrot.slane %v426_v0, 7  ;;  %v451_v15 = vshrl.u32 %v447_v11, 16  ;;  %v454_v16 = vshll.u32 %v447_v11, 16  ;;  %v403_v19 = vsel %vm1952_vm8, %v398_v6, %v402_v7 }
  0x4b   : > { %1215 = vmatpush.bf16.msrb.mxu1 %v1713_v13  ;;  %v424_v13 = vrot.slane %v423_v2, 2 }
  0x4c   : > { %1243 = vmatpush.bf16.msrb.mxu3 %v1729_v14  ;;  %v450_v14 = vrot.slane %v448_v12, 2  ;;  %v453_v20 = vrot.slane %v451_v15, 6  ;;  %v456_v24 = vrot.slane %v454_v16, 7 }
  0x4d   : > { %1202 = vmatpush.bf16.msrb.mxu0 %v1704_v25  ;;  %v429_v29 = vsel %vm1952_vm8, %v424_v13, %v428_v10 }
  0x4e   : > { %1230 = vmatpush.bf16.msrb.mxu2 %v1720_v26  ;;  %v460_v25 = vshll.u32 %v450_v14, 16  ;;  %v416_v26 = vsel %vm1952_vm8, %v411_v9, %v415_v8  ;;  %v1771_v9 = vld [vmem:[%s2066_s3] ss:$0 sm:$0xff] }
  0x4f   : > { %1216 = vmatpush.bf16.msrb.mxu1 %v1712_v35  ;;  %v519_v28 = vld.sshfl [vmem:[#allocation1] sm:$0xff pattern:$0x73625140]  ;;  %v1741_v35 = vld [vmem:[%s1845_s22 + $0x228] sm:$0xff] }
  0x50   : > { %1244 = vmatpush.bf16.msrb.mxu3 %v1728_v40  ;;  %v462_v32 = vrot.slane %v460_v25, 7  ;;  %1203 = vmatmul.bf16.vlgmr.msrb.gmra.mxu0 %v519_v28  ;;  %522 = vst [vmem:[#allocation1] ss:$4 sm:$0xff] %v403_v19  ;;  %v1738_v40 = vld [vmem:[%s1845_s22 + $0x210] sm:$0xff] }
  0x51   : > { %1251 = vmatpush.bf16.msra.mxu0 %v1743_v30  ;;  %v457_v30 = vor.u32 %v456_v24, %v453_v20  ;;  %525 = vst [vmem:[#allocation1 + $0x1] ss:$4 sm:$0xff] %v416_v26 }
  0x52   : > { %528 = vst [vmem:[#allocation1 + $0x2] ss:$4 sm:$0xff] %v429_v29 }
  0x53   : > { %v458_v34 = vrot.slane %v457_v30, 2  ;;  %531 = vst [vmem:[#allocation1 + $0x3] ss:$4 sm:$0xff] %v442_v33 }
  0x55   : > { %1252 = vmatpush.bf16.msra.mxu0 %v1742_v27  ;;  %v463_v36 = vsel %vm1952_vm8, %v458_v34, %v462_v32 }
  0x59   : > { %1253 = vmatpush.bf16.msra.mxu0 %v1741_v35 }
  0x5a   : > { %v532_v39 = vld.sshfl [vmem:[#allocation1] sm:$0xff pattern:$0x73625140] }
  0x5b   : > { %534 = vst [vmem:[#allocation1] ss:$4 sm:$0xff] %v1875_v21  ;;  %1217 = vmatmul.bf16.vlgmr.msrb.gmra.mxu1 %v532_v39 }
  0x5c   : > { %536 = vst [vmem:[#allocation1 + $0x1] ss:$4 sm:$0xff] %v1878_v22 }
  0x5d   : > { %1254 = vmatpush.bf16.msra.mxu0 %v1740_v37  ;;  %538 = vst [vmem:[#allocation1 + $0x2] ss:$4 sm:$0xff] %v1881_v23 }
  0x5e   : > { %540 = vst [vmem:[#allocation1 + $0x3] ss:$4 sm:$0xff] %v252_v1 }
  0x61   : > { %1255 = vmatpush.bf16.msra.mxu0 %v1739_v38 }
  0x65   : > { %1256 = vmatpush.bf16.msra.mxu0 %v1738_v40  ;;  %v541_v41 = vld.sshfl [vmem:[#allocation1] sm:$0xff pattern:$0x73625140] }
  0x66   : > { %1231 = vmatmul.bf16.vlgmr.msrb.gmra.mxu2 %v541_v41  ;;  %543 = vst [vmem:[#allocation1] ss:$4 sm:$0xff] %v1911_v47 }
  0x67   : > { %545 = vst [vmem:[#allocation1 + $0x1] ss:$4 sm:$0xff] %v1918_v54 }
  0x68   : > { %547 = vst [vmem:[#allocation1 + $0x2] ss:$4 sm:$0xff] %v1924_v60 }
  0x69   : > { %1257 = vmatpush.bf16.msra.mxu0 %v1737_v31  ;;  %550 = vst [vmem:[#allocation1 + $0x3] ss:$4 sm:$0xff] %v257_v43 }
  0x6d   : > { %1258 = vmatpush.bf16.msra.mxu0 %v1736_v42 }
  0x70   : > { %v551_v21 = vld.sshfl [vmem:[#allocation1] sm:$0xff pattern:$0x73625140] }
  0x71   : > { %553 = vst [vmem:[#allocation1] ss:$4 sm:$0xff] %v1964_v44  ;;  %1245 = vmatmul.bf16.vlgmr.msrb.gmra.mxu3 %v551_v21 }
  0x72   : > { %555 = vst [vmem:[#allocation1 + $0x1] ss:$4 sm:$0xff] %v1968_v45 }
  0x73   : > { %557 = vst [vmem:[#allocation1 + $0x2] ss:$4 sm:$0xff] %v1974_v50 }
  0x74   : > { %560 = vst [vmem:[#allocation1 + $0x3] ss:$4 sm:$0xff] %v463_v36 }
  0x7b   : > { %v561_v22 = vld.sshfl [vmem:[#allocation1] sm:$0xff pattern:$0x73625140] }
  0x7c   : > { %1259 = vmatmul.bf16.vlgmr.msra.gmra.mxu0 %v561_v22 }
  0xad   : > { %v1148_v23 = vpop.f32.mrf.mxu0 }
  0xaf   : > { %v1162_v47 = vpop.f32.mrf.mxu1 }
  0xb0   : > { %v1163_v54 = vadd.f32 %v1162_v47, %v1148_v23 }
  0xb5   : > { %v1150_v48 = vpop.f32.mrf.mxu0 }
  0xb7   : > { %v1164_v60 = vpop.f32.mrf.mxu1 }
  0xb8   : > { %v1165_v56 = vadd.f32 %v1164_v60, %v1150_v48 }
  0xbe   : > { %v1176_v46 = vpop.f32.mrf.mxu2 }
  0xbf   : > { %v1177_v51 = vadd.f32 %v1176_v46, %v1163_v54 }
  0xc6   : > { %v1178_v52 = vpop.f32.mrf.mxu2 }
  0xc7   : > { %v1179_v58 = vadd.f32 %v1178_v52, %v1165_v56 }
  0xc8   : > { %v1190_v49 = vpop.f32.mrf.mxu3 }
  0xc9   : > { %v1191_v55 = vadd.f32 %v1190_v49, %v1177_v51 }
  0xcd   : > { %v1204_v53 = vpop.f32.mrf.mxu0 }
  0xce   : > { %v1205_v57 = vadd.f32 %v1204_v53, %v1191_v55 }
  0xd0   : > { %v1192_v44 = vpop.f32.mrf.mxu3 }
  0xd1   : > { %v1193_v62 = vadd.f32 %v1192_v44, %v1179_v58 }
  0xd5   : > { %v1206_v61 = vpop.f32.mrf.mxu0 }
  0xd6   : > { %v1207_v1 = vadd.f32 %v1206_v61, %v1193_v62 }
  0xd8   : > { %v1218_v45 = vpop.f32.mrf.mxu1 }
  0xd9   : > { %v1219_v59 = vadd.f32 %v1218_v45, %v1205_v57 }
  0xe0   : > { %v1220_v2 = vpop.f32.mrf.mxu1 }
  0xe1   : > { %v1221_v7 = vadd.f32 %v1220_v2, %v1207_v1 }
  0xe9   : > { %v1232_v50 = vpop.f32.mrf.mxu2 }
  0xea   : > { %v1233_v63 = vadd.f32 %v1232_v50, %v1219_v59 }
  0xf1   : > { %v1234_v5 = vpop.f32.mrf.mxu2 }
  0xf2   : > { %v1235_v10 = vadd.f32 %v1234_v5, %v1221_v7 }
  0xf4   : > { %v1246_v0 = vpop.f32.mrf.mxu3 }
  0xf5   : > { %v1247_v3 = vadd.f32 %v1246_v0, %v1233_v63 }
  0xf9   : > { %v1260_v6 = vpop.f32.mrf.mxu0 }
  0xfa   : > { %v1261_v8 = vadd.f32 %v1260_v6, %v1247_v3 }
  0xfc   : > { %v1269_v11 = vmul.f32 %v1770_v4, %v1261_v8  ;;  %v1248_v12 = vpop.f32.mrf.mxu3 }
  0xfd   : > { %v1249_v14 = vadd.f32 %v1248_v12, %v1235_v10 }
  0xfe   : > { %v1275_v13 = vadd.f32 %v1771_v9, %v1269_v11 }
 0x100   : > { %1277 = vst [vmem:[%s246_s8] sm:$0xff] %v1275_v13 }
 0x101   : > { %v1262_v15 = vpop.f32.mrf.mxu0 }
 0x102   : > { %v1263_v16 = vadd.f32 %v1262_v15, %v1249_v14 }
 0x104   : > { %v1270_v17 = vmul.f32 %v1770_v4, %v1263_v16 }
 0x106   : > { %v1276_v18 = vadd.f32 %v1771_v9, %v1270_v17 }
 0x108   : > { %1278 = vst [vmem:[%s246_s8 + $0x8] sm:$0xff] %v1276_v18 }
 0x109 PF: > { %s14_s17 = sadd.s32 1, %s1794_s17   ;;  %s2074_s15 = smov %s1790_s16 }
 0x10a   : > { %p11_p5 = scmp.ge.s32.totalorder %s14_s17, 4   ;;  %s2075_s16 = smov %s2077_s18 }
 0x10c   :  { %13 = sbr.rel (!%p11_p5) target bundleno = 2 (0x2), region = 96 }

// kernel: spatial_path_forward.6
= control target key start
LH: loop header
LB: loop body
LE: loop exit
PB: predicated region body
PF: predicated region fallthrough
CT: control target
= control target key end

     0   :  { %s1688_s15 = smov 0   ;;  %s1690_s16 = smov 0   ;;  %s1901_s0 = inlined_call_operand.vmem [shape: bf16[2,12,3,128], index: 0, kind: input, shape index: {}]   ;;  %s1902_s1 = inlined_call_operand.vmem [shape: bf16[2,1152,128], index: 1, kind: input, shape index: {}]   ;;  %s1903_s2 = inlined_call_operand.vmem [shape: f32[1,128], index: 2, kind: input, shape index: {}]   ;;  %s1904_s3 = inlined_call_operand.vmem [shape: f32[1,128], index: 3, kind: input, shape index: {}]   ;;  %s1905_s4 = inlined_call_operand.vmem [shape: f32[2,4,128], index: 4, kind: output, shape index: {}]  }
   0x1   :  { %s1692_s17 = smov 0  }
   0x2 LB: > { %s26_s18 = sadd.s32 1, %s1657_s16  ;;  %p1240_p0 = scmp.ge.s32.totalorder %s1661_s17, 1  ;;  %s1661_s17 = sphi %s1692_s17, %s14_s17   ;;  %s1657_s16 = sphi %s1690_s16, %s1915_s16   ;;  %s1653_s15 = sphi %s1688_s15, %s1914_s15  }
   0x3   : > { %p28_p1 = scmp.ge.s32.totalorder %s26_s18, 2  ;;  %p190_p2 = scmp.lt.s32.totalorder %s1661_s17, 3 }
   0x5   : > { %s1917_s18 = smov (%p28_p1, %s26_s18), 0  ;;  %p191_p3 = pnand %p1240_p0, %p190_p2 }
   0x6   : > { %p225_p4 = scmp.lt.s32.totalorder (!%p191_p3), %s1653_s15, 1 }
   0x7   : > { %194 = sbr.rel (%p191_p3) target bundleno = 246 (0xf6), region = 36 }
   0xc   : > { %s1919_s15 = smov (!%p225_p4, %s1653_s15), 1  ;;  %vm291_vm0 = vsmask.f32 256  ;;  %vm292_vm1 = vsmask.f32 1284  ;;  %vm271_vm6 = vcmask 1041409  }
   0xd   : > { %s1612_s19 = smul.u32 576, %s1919_s15  ;;  %vm293_vm2 = vmor %vm291_vm0, %vm292_vm1  ;;  %vm294_vm3 = vsmask.f32 2312  ;;  %vm296_vm5 = vsmask.f32 3340  ;;  %vm273_vm7 = vcmask 1043459  }
   0xe   : > { %s1611_s23 = smul.u32 24, %s1919_s15  ;;  %vm1736_vm4 = vmor %vm293_vm2, %vm294_vm3  ;;  %vm275_vm8 = vcmask 1042433   ;;  %vm298_vm10 = vsmask.f32 4368  ;;  %vm261_vm11 = vcmask 1040384   ;;  %vm265_vm12 = vcmask 1042434  }
   0xf   : > { %s1712_s22 = scalar_lea.vmem %s1902_s1, %s1612_s19  ;;  %vm1750_vm9 = vmor %vm1736_vm4, %vm296_vm5  ;;  %vm300_vm14 = vsmask.f32 5396  ;;  %vm269_vm15 = vcmask 1041408   ;;  %vm302_vm1 = vsmask.f32 6424  ;;  %s1243_s29 = sshll.u32 %s1919_s15, 2 }
  0x10   : > { %v1546_v0 = vld [vmem:[%s1712_s22 + $0x38] sm:$0xff]  ;;  %v1545_v4 = vld [vmem:[%s1712_s22 + $0x30] sm:$0xff]  ;;  %v1544_v8 = vld [vmem:[%s1712_s22 + $0x28] sm:$0xff]  ;;  %s1734_s26 = scalar_lea.vmem %s1901_s0, %s1611_s23  ;;  %vm304_vm3 = vsmask.f32 7452  ;;  %s242_s8 = scalar_lea.vmem %s1905_s4, %s1243_s29 }
  0x11   : > { %v1562_v1 = vld [vmem:[%s1712_s22 + $0xb8] sm:$0xff]  ;;  %1025 = vmatpush.bf16.msra.mxu0 %v1546_v0  ;;  %v1561_v5 = vld [vmem:[%s1712_s22 + $0xb0] sm:$0xff]  ;;  %v1560_v9 = vld [vmem:[%s1712_s22 + $0xa8] sm:$0xff] }
  0x12   : > { %v1570_v2 = vld [vmem:[%s1712_s22 + $0xf8] sm:$0xff]  ;;  %1051 = vmatpush.bf16.msra.mxu2 %v1562_v1  ;;  %v1569_v6 = vld [vmem:[%s1712_s22 + $0xf0] sm:$0xff]  ;;  %v1568_v10 = vld [vmem:[%s1712_s22 + $0xe8] sm:$0xff] }
  0x13   : > { %v1554_v3 = vld [vmem:[%s1712_s22 + $0x78] sm:$0xff]  ;;  %1064 = vmatpush.bf16.msra.mxu3 %v1570_v2  ;;  %v1553_v7 = vld [vmem:[%s1712_s22 + $0x70] sm:$0xff]  ;;  %v1552_v11 = vld [vmem:[%s1712_s22 + $0x68] sm:$0xff] }
  0x14   : > { %1038 = vmatpush.bf16.msra.mxu1 %v1554_v3  ;;  %v1543_v12 = vld [vmem:[%s1712_s22 + $0x20] sm:$0xff]  ;;  %v1542_v17 = vld [vmem:[%s1712_s22 + $0x18] sm:$0xff]  ;;  %v1541_v28 = vld [vmem:[%s1712_s22 + $0x10] sm:$0xff] }
  0x15   : > { %1026 = vmatpush.bf16.msra.mxu0 %v1545_v4  ;;  %v1559_v13 = vld [vmem:[%s1712_s22 + $0xa0] sm:$0xff]  ;;  %v1558_v18 = vld [vmem:[%s1712_s22 + $0x98] sm:$0xff]  ;;  %v1557_v29 = vld [vmem:[%s1712_s22 + $0x90] sm:$0xff] }
  0x16   : > { %1052 = vmatpush.bf16.msra.mxu2 %v1561_v5  ;;  %v1567_v14 = vld [vmem:[%s1712_s22 + $0xe0] sm:$0xff]  ;;  %v1566_v19 = vld [vmem:[%s1712_s22 + $0xd8] sm:$0xff]  ;;  %v1565_v32 = vld [vmem:[%s1712_s22 + $0xd0] sm:$0xff] }
  0x17   : > { %1065 = vmatpush.bf16.msra.mxu3 %v1569_v6  ;;  %v1551_v15 = vld [vmem:[%s1712_s22 + $0x60] sm:$0xff]  ;;  %v1550_v20 = vld [vmem:[%s1712_s22 + $0x58] sm:$0xff]  ;;  %v1549_v33 = vld [vmem:[%s1712_s22 + $0x50] sm:$0xff] }
  0x18   : > { %1039 = vmatpush.bf16.msra.mxu1 %v1553_v7  ;;  %v243_v21 = vld [vmem:[%s1734_s26] sm:$0x3]  ;;  %v1746_v22 = vld [vmem:[%s1734_s26 + $0x2] sm:$0x3]  ;;  %vm299_vm13 = vmor %vm1750_vm9, %vm298_vm10 }
  0x19   : > { %1027 = vmatpush.bf16.msra.mxu0 %v1544_v8  ;;  %v255_v24 = vrot.slane %v243_v21, 1  ;;  %v256_v25 = vrot.slane %v243_v21, 2  ;;  %v257_v26 = vrot.slane %v243_v21, 3  ;;  %v258_v27 = vrot.slane %v1746_v22, 1  ;;  %394 = vst [vmem:[#allocation1] ss:$9 sm:$0xff] %v243_v21  ;;  %vm1776_vm0 = vmor %vm299_vm13, %vm300_vm14 }
  0x1a   : > { %1053 = vmatpush.bf16.msra.mxu2 %v1560_v9  ;;  %v259_v30 = vrot.slane %v1746_v22, 2  ;;  %v260_v31 = vrot.slane %v1746_v22, 3  ;;  %396 = vst [vmem:[#allocation1 + $0x1] ss:$9 sm:$0xff] %v1746_v22  ;;  %v1540_v39 = vld [vmem:[%s1712_s22 + $0x8] sm:$0xff]  ;;  %v1539_v55 = vld [vmem:[%s1712_s22] sm:$0xff]  ;;  %vm303_vm2 = vmor %vm1776_vm0, %vm302_vm1 }
  0x1b   : > { %1066 = vmatpush.bf16.msra.mxu3 %v1568_v10  ;;  %v272_v34 = vsel %vm271_vm6, %v243_v21, %v255_v24  ;;  %v274_v35 = vsel %vm273_vm7, %v256_v25, %v257_v26  ;;  %v286_v37 = vsel %vm271_vm6, %v1746_v22, %v258_v27  ;;  %v1556_v40 = vld [vmem:[%s1712_s22 + $0x88] sm:$0xff]  ;;  %v264_v41 = vsel %vm261_vm11, %v243_v21, %v255_v24  ;;  %v246_v47 = vld [vmem:[%s1734_s26 + $0x6] sm:$0x3]  ;;  %v1578_v58 = vld [vmem:[%s1712_s22 + $0x138] sm:$0xff] }
  0x1c   : > { %1040 = vmatpush.bf16.msra.mxu1 %v1552_v11  ;;  %v276_v36 = vsel %vm275_vm8, %v272_v34, %v274_v35  ;;  %v287_v38 = vsel %vm273_vm7, %v259_v30, %v260_v31  ;;  %v268_v42 = vsel %vm265_vm12, %v256_v25, %v257_v26  ;;  %v1564_v45 = vld [vmem:[%s1712_s22 + $0xc8] sm:$0xff]  ;;  %v281_v48 = vsel %vm261_vm11, %v1746_v22, %v258_v27  ;;  %v1555_v56 = vld [vmem:[%s1712_s22 + $0x80] sm:$0xff]  ;;  %v1594_v59 = vld [vmem:[%s1712_s22 + $0x1b8] sm:$0xff] }
  0x1d   : > { %1028 = vmatpush.bf16.msra.mxu0 %v1543_v12  ;;  %v288_v43 = vsel %vm275_vm8, %v286_v37, %v287_v38  ;;  %v1548_v46 = vld [vmem:[%s1712_s22 + $0x48] sm:$0xff]  ;;  %v284_v49 = vsel %vm265_vm12, %v259_v30, %v260_v31  ;;  %v278_v51 = vrot.slane %v276_v36, 1  ;;  %v270_v52 = vsel %vm269_vm15, %v264_v41, %v268_v42  ;;  %v1563_v60 = vld [vmem:[%s1712_s22 + $0xc0] sm:$0xff]  ;;  %v1602_v0 = vld [vmem:[%s1712_s22 + $0x1f8] sm:$0xff] }
  0x1e   : > { %1054 = vmatpush.bf16.msra.mxu2 %v1559_v13  ;;  %v1787_v50 = vld [vmem:[%s1734_s26 + $0x8] sm:$0x3]  ;;  %v290_v53 = vrot.slane %v288_v43, 1  ;;  %v285_v57 = vsel %vm269_vm15, %v281_v48, %v284_v49  ;;  %v1547_v61 = vld [vmem:[%s1712_s22 + $0x40] sm:$0xff]  ;;  %v306_v62 = vshrl.u32 %v270_v52, 16  ;;  %v1586_v1 = vld [vmem:[%s1712_s22 + $0x178] sm:$0xff] }
  0x1f   : > { %1067 = vmatpush.bf16.msra.mxu3 %v1567_v14  ;;  %v311_v63 = vshll.u32 %v278_v51, 16  ;;  %vm1802_vm4 = vmor %vm303_vm2, %vm304_vm3  ;;  %v314_v3 = vshrl.u32 %v285_v57, 16  ;;  %v1577_v5 = vld [vmem:[%s1712_s22 + $0x130] sm:$0xff]  ;;  %v1576_v12 = vld [vmem:[%s1712_s22 + $0x128] sm:$0xff] }
  0x20   : > { %1041 = vmatpush.bf16.msra.mxu1 %v1551_v15  ;;  %v319_v4 = vshll.u32 %v290_v53, 16  ;;  %v1593_v6 = vld [vmem:[%s1712_s22 + $0x1b0] sm:$0xff]  ;;  %v1592_v13 = vld [vmem:[%s1712_s22 + $0x1a8] sm:$0xff]  ;;  %v1575_v16 = vld [vmem:[%s1712_s22 + $0x120] sm:$0xff] }
  0x21   : > { %1029 = vmatpush.bf16.msra.mxu0 %v1542_v17  ;;  %v397_v54 = vld [vmem:[#allocation1] sm:$0xff]  ;;  %v313_v7 = vsel %vm1802_vm4, %v306_v62, %v311_v63  ;;  %v1601_v8 = vld [vmem:[%s1712_s22 + $0x1f0] sm:$0xff]  ;;  %v1600_v14 = vld [vmem:[%s1712_s22 + $0x1e8] sm:$0xff] }
  0x22   : > { %1055 = vmatpush.bf16.msra.mxu2 %v1558_v18  ;;  %400 = vst [vmem:[#allocation1] ss:$9 sm:$0xff] %v246_v47  ;;  %v1585_v9 = vld [vmem:[%s1712_s22 + $0x170] sm:$0xff]  ;;  %v1814_v10 = vsel %vm1802_vm4, %v314_v3, %v319_v4  ;;  %v1584_v15 = vld [vmem:[%s1712_s22 + $0x168] sm:$0xff]  ;;  %v1591_v17 = vld [vmem:[%s1712_s22 + $0x1a0] sm:$0xff] }
  0x23   : > { %1068 = vmatpush.bf16.msra.mxu3 %v1566_v19  ;;  %403 = vst [vmem:[#allocation1 + $0x1] ss:$9 sm:$0xff] %v1787_v50  ;;  %v1599_v18 = vld [vmem:[%s1712_s22 + $0x1e0] sm:$0xff]  ;;  %v249_v19 = vld [vmem:[%s1734_s26 + $0xc] sm:$0x3]  ;;  %v1574_v30 = vld [vmem:[%s1712_s22 + $0x118] sm:$0xff] }
  0x24   : > { %1042 = vmatpush.bf16.msra.mxu1 %v1550_v20  ;;  %v1583_v20 = vld [vmem:[%s1712_s22 + $0x160] sm:$0xff]  ;;  %v250_v21 = vld [vmem:[%s1734_s26 + $0xe] sm:$0x3]  ;;  %v324_v23 = vrot.slane %v249_v19, 1  ;;  %v325_v24 = vrot.slane %v249_v19, 2  ;;  %v326_v25 = vrot.slane %v249_v19, 3 }
  0x25   : > { %1030 = vmatpush.bf16.msra.mxu0 %v1541_v28  ;;  %v327_v26 = vrot.slane %v250_v21, 1  ;;  %v328_v27 = vrot.slane %v250_v21, 2  ;;  %v329_v28 = vrot.slane %v250_v21, 3  ;;  %v1590_v31 = vld [vmem:[%s1712_s22 + $0x198] sm:$0xff]  ;;  %v1573_v38 = vld [vmem:[%s1712_s22 + $0x110] sm:$0xff]  ;;  %v1572_v51 = vld [vmem:[%s1712_s22 + $0x108] sm:$0xff] }
  0x26   : > { %1056 = vmatpush.bf16.msra.mxu2 %v1557_v29  ;;  %v337_v34 = vsel %vm271_vm6, %v249_v19, %v324_v23  ;;  %v338_v35 = vsel %vm273_vm7, %v325_v24, %v326_v25  ;;  %v1581_v41 = vld [vmem:[%s1712_s22 + $0x150] sm:$0xff]  ;;  %v332_v42 = vsel %vm261_vm11, %v249_v19, %v324_v23  ;;  %v335_v43 = vsel %vm265_vm12, %v325_v24, %v326_v25  ;;  %v1588_v52 = vld [vmem:[%s1712_s22 + $0x188] sm:$0xff]  ;;  %v1579_v4 = vld [vmem:[%s1712_s22 + $0x140] sm:$0xff] }
  0x27   : > { %1069 = vmatpush.bf16.msra.mxu3 %v1565_v32  ;;  %v1598_v32 = vld [vmem:[%s1712_s22 + $0x1d8] sm:$0xff]  ;;  %v349_v36 = vsel %vm271_vm6, %v250_v21, %v327_v26  ;;  %v350_v37 = vsel %vm273_vm7, %v328_v27, %v329_v28  ;;  %v344_v47 = vsel %vm261_vm11, %v250_v21, %v327_v26  ;;  %v347_v48 = vsel %vm265_vm12, %v328_v27, %v329_v28  ;;  %v252_v49 = vld [vmem:[%s1734_s26 + $0x14] sm:$0x3]  ;;  %v1580_v57 = vld [vmem:[%s1712_s22 + $0x148] sm:$0xff] }
  0x28   : > { %1043 = vmatpush.bf16.msra.mxu1 %v1549_v33  ;;  %v1582_v33 = vld [vmem:[%s1712_s22 + $0x158] sm:$0xff]  ;;  %v351_v44 = vsel %vm275_vm8, %v349_v36, %v350_v37  ;;  %v1605_v23 = vld [vmem:[%s1712_s22 + $0x210] sm:$0xff]  ;;  %v248_v26 = vld [vmem:[%s1734_s26 + $0xa] sm:$0x3] }
  0x29   : > { %1031 = vmatpush.bf16.msra.mxu0 %v1540_v39  ;;  %v1589_v39 = vld [vmem:[%s1712_s22 + $0x190] sm:$0xff] }
  0x2a   : > { %1057 = vmatpush.bf16.msra.mxu2 %v1556_v40  ;;  %v404_v11 = vld [vmem:[#allocation1] sm:$0xff]  ;;  %v339_v40 = vsel %vm275_vm8, %v337_v34, %v338_v35 }
  0x2b   : > { %1070 = vmatpush.bf16.msra.mxu3 %v1564_v45  ;;  %407 = vst [vmem:[#allocation1] ss:$9 sm:$0xff] %v313_v7  ;;  %v251_v45 = vld [vmem:[%s1734_s26 + $0x12] sm:$0x3]  ;;  %v341_v53 = vrot.slane %v339_v40, 1 }
  0x2c   : > { %1044 = vmatpush.bf16.msra.mxu1 %v1548_v46  ;;  %410 = vst [vmem:[#allocation1 + $0x1] ss:$9 sm:$0xff] %v1814_v10  ;;  %v1597_v46 = vld [vmem:[%s1712_s22 + $0x1d0] sm:$0xff] }
  0x2d   : > { %1032 = vmatpush.bf16.msra.mxu0 %v1539_v55  ;;  %v336_v55 = vsel %vm269_vm15, %v332_v42, %v335_v43  ;;  %v359_v63 = vshll.u32 %v341_v53, 16 }
  0x2e   : > { %1058 = vmatpush.bf16.msra.mxu2 %v1555_v56  ;;  %v353_v56 = vrot.slane %v351_v44, 1  ;;  %v354_v62 = vshrl.u32 %v336_v55, 16 }
  0x2f   : > { %1071 = vmatpush.bf16.msra.mxu3 %v1563_v60  ;;  %v1571_v60 = vld [vmem:[%s1712_s22 + $0x100] sm:$0xff] }
  0x30   : > { %1045 = vmatpush.bf16.msra.mxu1 %v1547_v61  ;;  %1033 = vmatmul.bf16.vlgmr.msra.gmra.mxu0 %v397_v54  ;;  %v1587_v61 = vld [vmem:[%s1712_s22 + $0x180] sm:$0xff]  ;;  %v367_v3 = vshll.u32 %v353_v56, 16 }
  0x31   : > { %1077 = vmatpush.bf16.msrb.mxu0 %v1578_v58  ;;  %v348_v58 = vsel %vm269_vm15, %v344_v47, %v347_v48  ;;  %v1637_v56 = vld [vmem:[%s1903_s2] ss:$0 sm:$0xff] }
  0x32   : > { %1103 = vmatpush.bf16.msrb.mxu2 %v1594_v59  ;;  %v1596_v59 = vld [vmem:[%s1712_s22 + $0x1c8] sm:$0xff] }
  0x33   : > { %1116 = vmatpush.bf16.msrb.mxu3 %v1602_v0  ;;  %1046 = vmatmul.bf16.vlgmr.msra.gmra.mxu1 %v404_v11  ;;  %v411_v29 = vld [vmem:[#allocation1] sm:$0xff]  ;;  %v1610_v0 = vld [vmem:[%s1712_s22 + $0x238] sm:$0xff]  ;;  %v1608_v11 = vld [vmem:[%s1712_s22 + $0x228] sm:$0xff] }
  0x34   : > { %1090 = vmatpush.bf16.msrb.mxu1 %v1586_v1  ;;  %1059 = vmatmul.bf16.vlgmr.msra.gmra.mxu2 %v411_v29  ;;  %413 = vst [vmem:[#allocation1] ss:$9 sm:$0xff] %v249_v19  ;;  %v362_v1 = vshrl.u32 %v348_v58, 16  ;;  %v1604_v29 = vld [vmem:[%s1712_s22 + $0x208] sm:$0xff] }
  0x35   : > { %1078 = vmatpush.bf16.msrb.mxu0 %v1577_v5  ;;  %415 = vst [vmem:[#allocation1 + $0x1] ss:$9 sm:$0xff] %v250_v21  ;;  %v1595_v5 = vld [vmem:[%s1712_s22 + $0x1c0] sm:$0xff] }
  0x36   : > { %1104 = vmatpush.bf16.msrb.mxu2 %v1593_v6  ;;  %v361_v6 = vsel %vm1802_vm4, %v354_v62, %v359_v63  ;;  %v369_v7 = vsel %vm1802_vm4, %v362_v1, %v367_v3 }
  0x37   : > { %1117 = vmatpush.bf16.msrb.mxu3 %v1601_v8  ;;  %v1609_v8 = vld [vmem:[%s1712_s22 + $0x230] sm:$0xff] }
  0x38   : > { %1091 = vmatpush.bf16.msrb.mxu1 %v1585_v9 }
  0x39   : > { %1079 = vmatpush.bf16.msrb.mxu0 %v1576_v12  ;;  %v245_v12 = vld [vmem:[%s1734_s26 + $0x4] sm:$0x3] }
  0x3a   : > { %1105 = vmatpush.bf16.msrb.mxu2 %v1592_v13  ;;  %v1607_v13 = vld [vmem:[%s1712_s22 + $0x220] sm:$0xff] }
  0x3b   : > { %1118 = vmatpush.bf16.msrb.mxu3 %v1600_v14  ;;  %v371_v14 = vrot.slane %v245_v12, 1 }
  0x3c   : > { %1092 = vmatpush.bf16.msrb.mxu1 %v1584_v15  ;;  %v416_v54 = vld [vmem:[#allocation1] sm:$0xff]  ;;  %v372_v15 = vrot.slane %v245_v12, 2 }
  0x3d   : > { %1080 = vmatpush.bf16.msrb.mxu0 %v1575_v16  ;;  %419 = vst [vmem:[#allocation1] ss:$9 sm:$0xff] %v251_v45  ;;  %1072 = vmatmul.bf16.vlgmr.msra.gmra.mxu3 %v416_v54  ;;  %v373_v16 = vrot.slane %v245_v12, 3  ;;  %v381_v19 = vsel %vm271_vm6, %v245_v12, %v371_v14  ;;  %v376_v24 = vsel %vm261_vm11, %v245_v12, %v371_v14 }
  0x3e   : > { %1106 = vmatpush.bf16.msrb.mxu2 %v1591_v17  ;;  %422 = vst [vmem:[#allocation1 + $0x1] ss:$9 sm:$0xff] %v252_v49 }
  0x3f   : > { %1119 = vmatpush.bf16.msrb.mxu3 %v1599_v18  ;;  %v1606_v18 = vld [vmem:[%s1712_s22 + $0x218] sm:$0xff]  ;;  %v379_v25 = vsel %vm265_vm12, %v372_v15, %v373_v16 }
  0x40   : > { %1093 = vmatpush.bf16.msrb.mxu1 %v1583_v20  ;;  %v382_v20 = vsel %vm273_vm7, %v372_v15, %v373_v16  ;;  %v380_v28 = vsel %vm269_vm15, %v376_v24, %v379_v25 }
  0x41   : > { %1081 = vmatpush.bf16.msrb.mxu0 %v1574_v30  ;;  %v383_v21 = vsel %vm275_vm8, %v381_v19, %v382_v20  ;;  %v386_v30 = vshrl.u32 %v380_v28, 16 }
  0x42   : > { %1107 = vmatpush.bf16.msrb.mxu2 %v1590_v31  ;;  %v385_v27 = vrot.slane %v383_v21, 1 }
  0x43   : > { %1120 = vmatpush.bf16.msrb.mxu3 %v1598_v32  ;;  %v1603_v32 = vld [vmem:[%s1712_s22 + $0x200] sm:$0xff] }
  0x44   : > { %1094 = vmatpush.bf16.msrb.mxu1 %v1582_v33  ;;  %v391_v31 = vshll.u32 %v385_v27, 16 }
  0x45   : > { %1082 = vmatpush.bf16.msrb.mxu0 %v1573_v38  ;;  %v423_v9 = vld [vmem:[#allocation1] sm:$0xff] }
  0x46   : > { %1108 = vmatpush.bf16.msrb.mxu2 %v1589_v39  ;;  %426 = vst [vmem:[#allocation1] ss:$9 sm:$0xff] %v361_v6  ;;  %v393_v33 = vsel %vm1802_vm4, %v386_v30, %v391_v31 }
  0x47   : > { %1121 = vmatpush.bf16.msrb.mxu3 %v1597_v46  ;;  %429 = vst [vmem:[#allocation1 + $0x1] ss:$9 sm:$0xff] %v369_v7 }
  0x48   : > { %1095 = vmatpush.bf16.msrb.mxu1 %v1581_v41 }
  0x49   : > { %1083 = vmatpush.bf16.msrb.mxu0 %v1572_v51 }
  0x4a   : > { %1109 = vmatpush.bf16.msrb.mxu2 %v1588_v52 }
  0x4b   : > { %1122 = vmatpush.bf16.msrb.mxu3 %v1596_v59  ;;  %v1638_v59 = vld [vmem:[%s1904_s3] ss:$0 sm:$0xff] }
  0x4c   : > { %1096 = vmatpush.bf16.msrb.mxu1 %v1580_v57 }
  0x4d   : > { %1084 = vmatpush.bf16.msrb.mxu0 %v1571_v60 }
  0x4e   : > { %1110 = vmatpush.bf16.msrb.mxu2 %v1587_v61  ;;  %v430_v17 = vld [vmem:[#allocation1] sm:$0xff] }
  0x4f   : > { %1123 = vmatpush.bf16.msrb.mxu3 %v1595_v5  ;;  %432 = vst [vmem:[#allocation1] ss:$9 sm:$0xff] %v1746_v22 }
  0x50   : > { %1097 = vmatpush.bf16.msrb.mxu1 %v1579_v4  ;;  %1085 = vmatmul.bf16.vlgmr.msrb.gmra.mxu0 %v423_v9  ;;  %434 = vst [vmem:[#allocation1 + $0x1] ss:$9 sm:$0xff] %v245_v12 }
  0x51   : > { %1129 = vmatpush.bf16.msra.mxu0 %v1610_v0 }
  0x53   : > { %1098 = vmatmul.bf16.vlgmr.msrb.gmra.mxu1 %v430_v17 }
  0x55   : > { %1130 = vmatpush.bf16.msra.mxu0 %v1609_v8 }
  0x57   : > { %v435_v22 = vld [vmem:[#allocation1] sm:$0xff] }
  0x58   : > { %437 = vst [vmem:[#allocation1] ss:$9 sm:$0xff] %v1787_v50  ;;  %1111 = vmatmul.bf16.vlgmr.msrb.gmra.mxu2 %v435_v22 }
  0x59   : > { %1131 = vmatpush.bf16.msra.mxu0 %v1608_v11  ;;  %440 = vst [vmem:[#allocation1 + $0x1] ss:$9 sm:$0xff] %v248_v26 }
  0x5d   : > { %1132 = vmatpush.bf16.msra.mxu0 %v1607_v13 }
  0x60   : > { %v441_v34 = vld [vmem:[#allocation1] sm:$0xff] }
  0x61   : > { %1133 = vmatpush.bf16.msra.mxu0 %v1606_v18  ;;  %443 = vst [vmem:[#allocation1] ss:$9 sm:$0xff] %v1814_v10  ;;  %1124 = vmatmul.bf16.vlgmr.msrb.gmra.mxu3 %v441_v34 }
  0x62   : > { %446 = vst [vmem:[#allocation1 + $0x1] ss:$9 sm:$0xff] %v393_v33 }
  0x65   : > { %1134 = vmatpush.bf16.msra.mxu0 %v1605_v23 }
  0x69   : > { %1135 = vmatpush.bf16.msra.mxu0 %v1604_v29  ;;  %v447_v50 = vld [vmem:[#allocation1] sm:$0xff] }
  0x6d   : > { %1136 = vmatpush.bf16.msra.mxu0 %v1603_v32 }
  0x70   : > { %1137 = vmatmul.bf16.vlgmr.msra.gmra.mxu0 %v447_v50 }
  0xad   : > { %v1034_v35 = vpop.f32.mrf.mxu0 }
  0xb0   : > { %v1047_v36 = vpop.f32.mrf.mxu1 }
  0xb1   : > { %v1048_v45 = vadd.f32 %v1047_v36, %v1034_v35 }
  0xb5   : > { %v1036_v37 = vpop.f32.mrf.mxu0 }
  0xb7   : > { %v1060_v39 = vpop.f32.mrf.mxu2 }
  0xb8   : > { %v1049_v38 = vpop.f32.mrf.mxu1  ;;  %v1061_v46 = vadd.f32 %v1060_v39, %v1048_v45 }
  0xbf   : > { %v1062_v40 = vpop.f32.mrf.mxu2 }
  0xc0   : > { %v1073_v41 = vpop.f32.mrf.mxu3 }
  0xc1   : > { %v1074_v10 = vadd.f32 %v1073_v41, %v1061_v46 }
  0xc8   : > { %v1075_v43 = vpop.f32.mrf.mxu3 }
  0xcd   : > { %v1086_v42 = vpop.f32.mrf.mxu0 }
  0xce   : > { %v1087_v48 = vadd.f32 %v1086_v42, %v1074_v10 }
  0xd0   : > { %v1099_v44 = vpop.f32.mrf.mxu1 }
  0xd1   : > { %v1100_v51 = vadd.f32 %v1099_v44, %v1087_v48 }
  0xd5   : > { %v1088_v2 = vpop.f32.mrf.mxu0 }
  0xd8   : > { %v1101_v47 = vpop.f32.mrf.mxu1 }
  0xdb   : > { %v1112_v49 = vpop.f32.mrf.mxu2 }
  0xdc   : > { %v1113_v52 = vadd.f32 %v1112_v49, %v1100_v51 }
  0xe3   : > { %v1114_v53 = vpop.f32.mrf.mxu2 }
  0xe4   : > { %v1125_v54 = vpop.f32.mrf.mxu3 }
  0xe5   : > { %v1126_v55 = vadd.f32 %v1125_v54, %v1113_v52 }
  0xec   : > { %v1127_v61 = vpop.f32.mrf.mxu3 }
  0xed   : > { %v1138_v57 = vpop.f32.mrf.mxu0 }
  0xee   : > { %v1139_v58 = vadd.f32 %v1138_v57, %v1126_v55 }
  0xf0   : > { %v1146_v60 = vmul.f32 %v1637_v56, %v1139_v58 }
  0xf2   : > { %v1151_v62 = vadd.f32 %v1638_v59, %v1146_v60 }
  0xf4   : > { %1152 = vst [vmem:[%s242_s8] sm:$0xf] %v1151_v62 }
  0xf5   : > { %v1140_v63 = vpop.f32.mrf.mxu0 }
  0xf6 PF: > { %s14_s17 = sadd.s32 1, %s1661_s17   ;;  %s1914_s15 = smov %s1657_s16 }
  0xf7   : > { %p11_p5 = scmp.ge.s32.totalorder %s14_s17, 4   ;;  %s1915_s16 = smov %s1917_s18 }
  0xf9   :  { %13 = sbr.rel (!%p11_p5) target bundleno = 2 (0x2), region = 78 }

// kernel: spatial_path_forward.4
= control target key start
LH: loop header
LB: loop body
LE: loop exit
PB: predicated region body
PF: predicated region fallthrough
CT: control target
= control target key end

     0   :  { %s3177_s15 = smov 0   ;;  %s3179_s16 = smov 0   ;;  %s5713_s0 = inlined_call_operand.vmem [shape: bf16[2,44,11,8], index: 0, kind: input, shape index: {}]   ;;  %s5714_s1 = inlined_call_operand.vmem [shape: bf16[2,392,128], index: 1, kind: input, shape index: {}]   ;;  %s5715_s2 = inlined_call_operand.vmem [shape: f32[1,128], index: 2, kind: input, shape index: {}]   ;;  %s5716_s3 = inlined_call_operand.vmem [shape: f32[1,128], index: 3, kind: input, shape index: {}]   ;;  %s5717_s4 = inlined_call_operand.vmem [shape: f32[2,64,128], index: 4, kind: output, shape index: {}]  }
   0x1   :  { %s3181_s17 = smov 0  }
   0x2 LB: > { %s26_s18 = sadd.s32 1, %s3131_s16  ;;  %p2888_p0 = scmp.ge.s32.totalorder %s3135_s17, 1  ;;  %s3135_s17 = sphi %s3181_s17, %s14_s17   ;;  %s3131_s16 = sphi %s3179_s16, %s6431_s16   ;;  %s3127_s15 = sphi %s3177_s15, %s6430_s15  }
   0x3   : > { %p28_p1 = scmp.ge.s32.totalorder %s26_s18, 2  ;;  %p190_p2 = scmp.lt.s32.totalorder %s3135_s17, 3 }
   0x5   : > { %s6433_s18 = smov (%p28_p1, %s26_s18), 0  ;;  %p191_p3 = pnand %p2888_p0, %p190_p2 }
   0x7   : > { %194 = sbr.rel (%p191_p3) target bundleno = 806 (0x326), region = 36 }
   0xc   : > { %p227_p4 = scmp.lt.s32.totalorder %s3127_s15, 1  ;;  %vm333_vm0 = vsmask.f32 3328  ;;  %vm334_vm1 = vsmask.f32 7440  ;;  %s3137_s23 = smov 8  }
   0xd   : > { %vm3338_vm2 = vmor %vm333_vm0, %vm334_vm1  ;;  %s3138_s24 = smov 16   ;;  %s3139_s25 = smov 24   ;;  %vm576_vm3 = vcmask 1042432   ;;  %vm577_vm4 = vcmask 1046532   ;;  %vm659_vm6 = vsmask.f32 2304 }
   0xe   : > { %s6435_s15 = smov (!%p227_p4, %s3127_s15), 1  ;;  %vm3523_vm5 = vmor %vm576_vm3, %vm577_vm4  ;;  %s3140_s26 = smov 32   ;;  %vm660_vm7 = vsmask.f32 6416  ;;  %vm5946_vm9 = vcmask 64512   ;;  %vm5947_vm10 = vcmask 130048  }
   0xf   : > { %s3062_s19 = smul.u32 352, %s6435_s15  ;;  %s3141_s27 = smov 40   ;;  %vm3711_vm8 = vmor %vm659_vm6, %vm660_vm7  ;;  %vm1712_vm11 = vcmask 195584   ;;  %vm1721_vm12 = vcmask 261120   ;;  %vm1730_vm13 = vcmask 326656   ;;  %vm1739_vm14 = vcmask 392192  }
  0x10   : > { %s3142_s28 = smov 48   ;;  %s3143_s29 = smov 56   ;;  %vm1748_vm15 = vcmask 457728   ;;  %vm5950_vm0 = vcmask 523264   ;;  %vm5949_vm1 = vcmask 588800   ;;  %vm5948_vm3 = vcmask 654336  }
  0x11   : > { %s3201_s22 = scalar_lea.vmem %s5713_s0, %s3062_s19  ;;  %s3144_s30 = smov 64   ;;  %vm1784_vm4 = vcmask 719872   ;;  %vm1793_vm6 = vcmask 785408   ;;  %vm1802_vm7 = vcmask 850944  }
  0x12   : > { %v3204_v0 = vld [vmem:[%s3201_s22 + $0x78] sm:$0xf]  ;;  %v3207_v1 = vld [vmem:[%s3201_s22 + $0x80] sm:$0xf]  ;;  %v3220_v8 = vld [vmem:[%s3201_s22 + $0x88] sm:$0xf] }
  0x13   : > { %v3210_v2 = vld [vmem:[%s3201_s22 + $0x58] sm:$0xf]  ;;  %v519_v3 = vshrl.u32 %v3207_v1, 16  ;;  %v522_v4 = vshll.u32 %v3207_v1, 16  ;;  %v5721_v5 = vunpack.c.l.b16 %v3204_v0  ;;  %v5724_v6 = vunpack.c.l.b16 %v3207_v1  ;;  %v3217_v7 = vld [vmem:[%s3201_s22 + $0x60] sm:$0xf] }
  0x14   : > { %5951 = vst [vmem:[#allocation2_spill] sm:$0xff] %v3217_v7  ;;  %v505_v9 = vshrl.u32 %v3204_v0, 16  ;;  %v508_v10 = vshll.u32 %v3204_v0, 16  ;;  %v463_v11 = vshrl.u32 %v3217_v7, 16  ;;  %v466_v12 = vshll.u32 %v3217_v7, 16  ;;  %s3145_s5 = smov 72  }
  0x15   : > { %v3227_v13 = vld [vmem:[%s3201_s22 + $0x90] sm:$0xf]  ;;  %v3229_v14 = vrot.slane %v519_v3, 4  ;;  %v3231_v15 = vrot.slane %v522_v4, 5  ;;  %v3237_v16 = vpack.c.b16 %v5724_v6, %v5721_v5  ;;  %v1404_v17 = vunpack.c.l.b16 %v3210_v2  ;;  %v3241_v18 = vld [vmem:[%s3201_s22 + $0x68] sm:$0xf] }
  0x16   : > { %5952 = vst [vmem:[#allocation3_spill] sm:$0xff] %v3227_v13  ;;  %v3244_v19 = vld [vmem:[%s3201_s22 + $0x70] sm:$0xf]  ;;  %v3246_v20 = vrot.slane %v505_v9, 4  ;;  %v3248_v21 = vrot.slane %v508_v10, 5  ;;  %v3250_v22 = vrot.slane %v463_v11, 4  ;;  %v5720_v25 = vunpack.c.l.b16 %v3217_v7 }
  0x17   : > { %5953 = vst [vmem:[#allocation4_spill] sm:$0xff] %v3237_v16  ;;  %v3252_v23 = vrot.slane %v466_v12, 5  ;;  %v3255_v24 = vld [vmem:[%s3201_s22] sm:$0xf]  ;;  %1420 = vrot.lane.b32.xlu1 %v3237_v16, %s3137_s23  ;;  %v449_v26 = vshrl.u32 %v3210_v2, 16  ;;  %v452_v27 = vshll.u32 %v3210_v2, 16  ;;  %v5723_v28 = vunpack.c.l.b16 %v3220_v8 }
  0x18   : > { %5954 = vst [vmem:[#allocation5_spill] sm:$0xff] %v3241_v18  ;;  %v3264_v29 = vld [vmem:[%s3201_s22 + $0x4] sm:$0x3]  ;;  %v5718_v30 = vunpack.c.l.b16 %v3227_v13  ;;  %v5719_v31 = vunpack.c.l.b16 %v3241_v18  ;;  %v5722_v32 = vunpack.c.l.b16 %v3244_v19  ;;  %v3270_v33 = vld [vmem:[%s3201_s22 + $0x8] sm:$0xf]  ;;  %v511_v35 = vor.u32 %v3248_v21, %v3246_v20  ;;  %s3146_s6 = smov 80  }
  0x19   : > { %v3273_v34 = vld [vmem:[%s3201_s22 + $0xc] sm:$0x3]  ;;  %v1412_v36 = vpack.c.b16 %v5720_v25, %v1404_v17  ;;  %v3279_v37 = vrot.slane %v449_v26, 4  ;;  %v3281_v38 = vrot.slane %v452_v27, 5  ;;  %v3284_v39 = vld [vmem:[%s3201_s22 + $0x10] sm:$0xf]  ;;  %v525_v21 = vor.u32 %v3231_v15, %v3229_v14 }
  0x1a   : > { %v5734_v40 = vshrl.u32 %v3255_v24, 16  ;;  %v3291_v41 = vpack.c.b16 %v5718_v30, %v5723_v28  ;;  %v3297_v42 = vpack.c.b16 %v5722_v32, %v5719_v31  ;;  %v3300_v43 = vld [vmem:[%s3201_s22 + $0x14] sm:$0x3]  ;;  %v5733_v44 = vshll.u32 %v3255_v24, 16  ;;  %v3315_v54 = vld [vmem:[%s3201_s22 + $0x30] sm:$0xf] }
  0x1b   : > { %v346_v45 = vshll.u32 %v3264_v29, 16  ;;  %1416 = vrot.lane.b32.xlu0 %v1412_v36, %s3137_s23  ;;  %v5732_v47 = vshrl.u32 %v3270_v33, 16  ;;  %v5731_v48 = vshll.u32 %v3270_v33, 16  ;;  %v360_v49 = vshll.u32 %v3273_v34, 16  ;;  %v3323_v59 = vld [vmem:[%s3201_s22 + $0x34] sm:$0x3] }
  0x1c   : > { %5955 = vst [vmem:[#allocation6_spill] sm:$0xff] %v3291_v41  ;;  %v339_v46 = vrot.slane %v5734_v40, 4  ;;  %v342_v50 = vrot.slane %v5733_v44, 5  ;;  %v5737_v52 = vshrl.u32 %v3284_v39, 16  ;;  %v5736_v53 = vshll.u32 %v3284_v39, 16  ;;  %s3147_s7 = smov 88  }
  0x1d   : > { %5956 = vst [vmem:[#allocation7_spill] sm:$0xff] %v3297_v42  ;;  %v348_v51 = vrot.slane %v346_v45, 5  ;;  %v353_v55 = vrot.slane %v5732_v47, 4  ;;  %v356_v56 = vrot.slane %v5731_v48, 5  ;;  %v362_v57 = vrot.slane %v360_v49, 5  ;;  %s3148_s8 = smov 96  }
  0x1e   : > { %v5735_v58 = vshll.u32 %v3300_v43, 16  ;;  %v343_v60 = vor.u32 %v342_v50, %v339_v46  ;;  %v367_v61 = vrot.slane %v5737_v52, 4  ;;  %v370_v62 = vrot.slane %v5736_v53, 5  ;;  %v3332_v3 = vld [vmem:[%s3201_s22 + $0x38] sm:$0xf]  ;;  %s3149_s9 = smov 104  }
  0x1f   : > { %v3329_v63 = vrot.slane %v346_v45, 6  ;;  %1422 = vrot.lane.b32.xlu1 %v3291_v41, %s3137_s23  ;;  %v357_v9 = vor.u32 %v356_v56, %v353_v55  ;;  %v3344_v11 = vrot.slane %v360_v49, 6  ;;  %v5730_v12 = vshrl.u32 %v3315_v54, 16  ;;  %v3350_v46 = vld [vmem:[%s3201_s22 + $0x3c] sm:$0x3]  ;;  %s3150_s10 = smov 112  }
  0x20   : > { %v376_v10 = vrot.slane %v5735_v58, 5  ;;  %v344_v17 = vrot.slane %v343_v60, 4  ;;  %v371_v26 = vor.u32 %v370_v62, %v367_v61  ;;  %v5729_v27 = vshll.u32 %v3315_v54, 16  ;;  %v3427_v40 = vld [vmem:[%s3201_s22 + $0x7c] sm:$0x3]  ;;  %s3151_s11 = smov 120  }
  0x21   : > { %v5727_v36 = vshll.u32 %v3323_v59, 16  ;;  %v358_v45 = vrot.slane %v357_v9, 4  ;;  %v423_v50 = vrot.slane %v5730_v12, 4  ;;  %v5726_v55 = vshrl.u32 %v3332_v3, 16  ;;  %v3363_v9 = vld [vmem:[%s3201_s22 + $0x20] sm:$0xf] }
  0x22   : > { %v5725_v49 = vshll.u32 %v3332_v3, 16  ;;  %v349_v56 = vsel %vm3338_vm2, %v344_v17, %v348_v51  ;;  %v372_v60 = vrot.slane %v371_v26, 4  ;;  %v426_v61 = vrot.slane %v5729_v27, 5  ;;  %v3374_v26 = vld [vmem:[%s3201_s22 + $0x24] sm:$0x3]  ;;  %s3063_s12 = smul.u32 196, %s6435_s15 }
  0x23   : > { %v432_v62 = vrot.slane %v5727_v36, 5  ;;  %1418 = vrot.lane.b32.xlu0 %v3297_v42, %s3137_s23  ;;  %v363_v30 = vsel %vm3338_vm2, %v358_v45, %v362_v57  ;;  %v1424_v31 = vunpack.c.l.b16 %v349_v56  ;;  %v437_v51 = vrot.slane %v5726_v55, 4  ;;  %v3384_v56 = vld [vmem:[%s3201_s22 + $0x28] sm:$0xf]  ;;  %v3472_v15 = vld [vmem:[%s3201_s22 + $0x74] sm:$0x3] }
  0x24   : > { %v440_v17 = vrot.slane %v5725_v49, 5  ;;  %v377_v25 = vsel %vm3338_vm2, %v372_v60, %v376_v10  ;;  %v3378_v5 = vunpack.c.l.b16 %v363_v30  ;;  %v427_v32 = vor.u32 %v426_v61, %v423_v50  ;;  %v3392_v10 = vld [vmem:[%s3201_s22 + $0x2c] sm:$0x3]  ;;  %s4762_s19 = scalar_lea.vmem %s5714_s1, %s3063_s12 }
  0x25   : > { %v5728_v28 = vshll.u32 %v3350_v46, 16  ;;  %v3381_v57 = vunpack.c.l.b16 %v377_v25  ;;  %v5746_v6 = vshrl.u32 %v3363_v9, 16  ;;  %v5745_v49 = vshll.u32 %v3363_v9, 16 }
  0x26   : > { %5959 = vst [vmem:[#allocation8_spill] sm:$0xff] %v3378_v5  ;;  %v441_v45 = vor.u32 %v440_v17, %v437_v51  ;;  %v1432_v55 = vpack.c.b16 %v3378_v5, %v1424_v31  ;;  %v428_v36 = vrot.slane %v427_v32, 4  ;;  %v5741_v50 = vshll.u32 %v3374_v26, 16  ;;  %v3402_v31 = vld [vmem:[%s3201_s22 + $0x18] sm:$0xf] }
  0x27   : > { %5960 = vst [vmem:[#allocation9_spill] sm:$0xff] %v3381_v57  ;;  %v446_v30 = vrot.slane %v5728_v28, 5  ;;  %v395_v61 = vrot.slane %v5746_v6, 4  ;;  %v398_v51 = vrot.slane %v5745_v49, 5  ;;  %v5739_v25 = vshll.u32 %v3384_v56, 16 }
  0x28   : > { %v442_v60 = vrot.slane %v441_v45, 4  ;;  %1436 = vrot.lane.b32.xlu2 %v1432_v55, %s3138_s24  ;;  %v433_v32 = vsel %vm3338_vm2, %v428_v36, %v432_v62  ;;  %v404_v17 = vrot.slane %v5741_v50, 5  ;;  %v5740_v45 = vshrl.u32 %v3384_v56, 16  ;;  %v3412_v28 = vld [vmem:[%s3201_s22 + $0x1c] sm:$0x3] }
  0x29   : > { %v3416_v12 = vunpack.c.l.b16 %v433_v32  ;;  %v399_v48 = vor.u32 %v398_v51, %v395_v61  ;;  %v5738_v55 = vshll.u32 %v3392_v10, 16  ;;  %v412_v62 = vrot.slane %v5739_v25, 5  ;;  %v3434_v61 = vld [vmem:[%s3201_s22 + $0x84] sm:$0x3]  ;;  %v3453_v50 = vld [vmem:[%s3201_s22 + $0x6c] sm:$0x3] }
  0x2a   : > { %v447_v27 = vsel %vm3338_vm2, %v442_v60, %v446_v30  ;;  %v409_v36 = vrot.slane %v5740_v45, 4  ;;  %v5744_v44 = vshrl.u32 %v3402_v31, 16  ;;  %v5743_v60 = vshll.u32 %v3402_v31, 16 }
  0x2b   : > { %5961 = vst [vmem:[#allocation10_spill] sm:$0xff] %v3416_v12  ;;  %v3419_v47 = vunpack.c.l.b16 %v447_v27  ;;  %v400_v58 = vrot.slane %v399_v48, 4  ;;  %v418_v30 = vrot.slane %v5738_v55, 5  ;;  %v5742_v27 = vshll.u32 %v3412_v28, 16 }
  0x2c   : > { %v413_v32 = vor.u32 %v412_v62, %v409_v36  ;;  %v381_v53 = vrot.slane %v5744_v44, 4  ;;  %v512_v48 = vrot.slane %v511_v35, 4  ;;  %v384_v55 = vrot.slane %v5743_v60, 5 }
  0x2d   : > { %5962 = vst [vmem:[#allocation11_spill] sm:$0xff] %v3419_v47  ;;  %v3438_v51 = vpack.c.b16 %v3419_v47, %v3416_v12  ;;  %v405_v52 = vsel %vm3338_vm2, %v400_v58, %v404_v17  ;;  %v390_v25 = vrot.slane %v5742_v27, 5  ;;  %v514_v45 = vshll.u32 %v3427_v40, 16 }
  0x2e   : > { %v414_v36 = vrot.slane %v413_v32, 4  ;;  %v3457_v20 = vunpack.c.l.b16 %v405_v52  ;;  %v528_v35 = vshll.u32 %v3434_v61, 16  ;;  %v385_v58 = vor.u32 %v384_v55, %v381_v53 }
  0x2f   : > { %5963 = vst [vmem:[#allocation12_spill] sm:$0xff] %v3438_v51  ;;  %1442 = vrot.lane.b32.xlu1 %v3438_v51, %s3138_s24  ;;  %v516_v17 = vrot.slane %v514_v45, 5  ;;  %v477_v62 = vshrl.u32 %v3241_v18, 16  ;;  %v480_v27 = vshll.u32 %v3241_v18, 16  ;;  %v526_v44 = vrot.slane %v525_v21, 4 }
  0x30   : > { %5964 = vst [vmem:[#allocation13_spill] sm:$0xff] %v3457_v20  ;;  %v419_v60 = vsel %vm3338_vm2, %v414_v36, %v418_v30  ;;  %v530_v49 = vrot.slane %v528_v35, 5  ;;  %v486_v52 = vshll.u32 %v3453_v50, 16  ;;  %v386_v6 = vrot.slane %v385_v58, 4  ;;  %v3479_v21 = vld [vmem:[%s3201_s22 + $0x5c] sm:$0x3] }
  0x31   : > { %v3467_v32 = vunpack.c.l.b16 %v419_v60  ;;  %v517_v14 = vsel %vm3338_vm2, %v512_v48, %v516_v17  ;;  %v479_v53 = vrot.slane %v477_v62, 4  ;;  %v482_v30 = vrot.slane %v480_v27, 5  ;;  %v3495_v62 = vld [vmem:[%s3201_s22 + $0x64] sm:$0x3] }
  0x32   : > { %v531_v45 = vsel %vm3338_vm2, %v526_v44, %v530_v49  ;;  %v3476_v55 = vunpack.c.l.b16 %v517_v14  ;;  %v488_v36 = vrot.slane %v486_v52, 5  ;;  %v391_v48 = vsel %vm3338_vm2, %v386_v6, %v390_v25 }
  0x33   : > { %5965 = vst [vmem:[#allocation14_spill] sm:$0xff] %v3467_v32  ;;  %v3483_v60 = vpack.c.b16 %v3467_v32, %v3457_v20  ;;  %v3487_v35 = vunpack.c.l.b16 %v531_v45  ;;  %v491_v58 = vshrl.u32 %v3244_v19, 16  ;;  %v3490_v17 = vunpack.c.l.b16 %v391_v48 }
  0x34   : > { %v483_v44 = vor.u32 %v482_v30, %v479_v53  ;;  %v494_v49 = vshll.u32 %v3244_v19, 16  ;;  %v500_v27 = vshll.u32 %v3472_v15, 16  ;;  %v455_v25 = vor.u32 %v3281_v38, %v3279_v37 }
  0x35   : > { %5966 = vst [vmem:[#allocation15_spill] sm:$0xff] %v3483_v60  ;;  %1440 = vrot.lane.b32.xlu0 %v3483_v60, %s3138_s24  ;;  %v3501_v52 = vpack.c.b16 %v3487_v35, %v3476_v55  ;;  %v493_v6 = vrot.slane %v491_v58, 4  ;;  %v458_v14 = vshll.u32 %v3479_v21, 16  ;;  %v3508_v53 = vpack.c.b16 %v3490_v17, %v3381_v57 }
  0x36   : > { %5967 = vst [vmem:[#allocation16_spill] sm:$0xff] %v3487_v35  ;;  %v484_v45 = vrot.slane %v483_v44, 4  ;;  %v496_v30 = vrot.slane %v494_v49, 5  ;;  %v502_v48 = vrot.slane %v500_v27, 5  ;;  %v456_v51 = vrot.slane %v455_v25, 4 }
  0x37   : > { %5968 = vst [vmem:[#allocation17_spill] sm:$0xff] %v3490_v17  ;;  %1460 = vrot.lane.b32.xlu1 %v3501_v52, %s3139_s25  ;;  %v460_v41 = vrot.slane %v458_v14, 5  ;;  %v469_v58 = vor.u32 %v3252_v23, %v3250_v22  ;;  %v472_v37 = vshll.u32 %v3495_v62, 16  ;;  %1438 = vrot.lane.b32.xlu2 %v3508_v53, %s3138_s24  ;;  %v550_v47 = vshll.u32 %v3227_v13, 16 }
  0x38   : > { %5969 = vst [vmem:[#allocation18_spill] sm:$0xff] %v3501_v52  ;;  %v489_v38 = vsel %vm3338_vm2, %v484_v45, %v488_v36  ;;  %v497_v44 = vor.u32 %v496_v30, %v493_v6  ;;  %v2895_v52 = vrot.slane %v3284_v39, 9  ;;  %v589_v36 = vrot.slane %v3300_v43, 5 }
  0x39   : > { %5970 = vst [vmem:[#allocation19_spill] sm:$0xff] %v3508_v53  ;;  %v3519_v49 = vunpack.c.l.b16 %v489_v38  ;;  %v461_v27 = vsel %vm3338_vm2, %v456_v51, %v460_v41  ;;  %v470_v25 = vrot.slane %v469_v58, 4  ;;  %v474_v14 = vrot.slane %v472_v37, 5 }
  0x3a   : > { %v498_v23 = vrot.slane %v497_v44, 4  ;;  %v1444_v60 = vunpack.c.l.b16 %v461_v27  ;;  %v2896_v45 = vrot.slane %v3402_v31, 9  ;;  %v593_v30 = vrot.slane %v3412_v28, 5 }
  0x3b   : > { %v475_v6 = vsel %vm3338_vm2, %v470_v25, %v474_v14  ;;  %v2893_v41 = vrot.slane %v3255_v24, 9  ;;  %v3540_v37 = vsel %vm3523_vm5, %v2895_v52, %v589_v36  ;;  %v581_v38 = vrot.slane %v3264_v29, 5 }
  0x3c   : > { %v503_v51 = vsel %vm3338_vm2, %v498_v23, %v502_v48  ;;  %v3536_v58 = vunpack.c.l.b16 %v475_v6  ;;  %5973 = vst [vmem:[#allocation20_spill] sm:$0xff] %v3540_v37  ;;  %v3547_v27 = vsel %vm3523_vm5, %v2896_v45, %v593_v30  ;;  %v5752_v25 = vunpack.c.l.b16 %v3540_v37 }
  0x3d   : > { %v3543_v44 = vunpack.c.l.b16 %v503_v51  ;;  %5974 = vst [vmem:[#allocation21_spill] sm:$0xff] %v3547_v27  ;;  %v2894_v14 = vrot.slane %v3270_v33, 9  ;;  %v5751_v23 = vunpack.c.l.b16 %v3547_v27  ;;  %v582_v52 = vsel %vm3523_vm5, %v2893_v41, %v581_v38 }
  0x3e   : > { %v1452_v48 = vpack.c.b16 %v3536_v58, %v1444_v60  ;;  %v585_v36 = vrot.slane %v3273_v34, 5  ;;  %v1464_v45 = vunpack.c.l.b16 %v582_v52  ;;  %v2901_v30 = vrot.slane %v3210_v2, 9 }
  0x3f   : > { %v3558_v6 = vpack.c.b16 %v3543_v44, %v3519_v49  ;;  %v629_v51 = vrot.slane %v3479_v21, 5  ;;  %v3567_v60 = vpack.c.b16 %v5751_v23, %v5752_v25  ;;  %v2902_v38 = vrot.slane %v3217_v7, 9  ;;  %v284_v25 = vld [vmem:[%s3201_s22 + $0x8c] sm:$0x3] }
  0x40   : > { %1456 = vrot.lane.b32.xlu2 %v1452_v48, %s3139_s25  ;;  %v3571_v41 = vsel %vm3523_vm5, %v2894_v14, %v585_v36  ;;  %v633_v52 = vrot.slane %v3495_v62, 5  ;;  %v2899_v48 = vrot.slane %v3315_v54, 9  ;;  %v605_v23 = vrot.slane %v3323_v59, 5 }
  0x41   : > { %5975 = vst [vmem:[#allocation22_spill] sm:$0xff] %v3558_v6  ;;  %1458 = vrot.lane.b32.xlu0 %v3558_v6, %s3139_s25  ;;  %v630_v21 = vsel %vm3523_vm5, %v2901_v30, %v629_v51  ;;  %1478 = vrot.lane.b32.xlu1 %v3567_v60, %s3140_s26  ;;  %v2900_v36 = vrot.slane %v3332_v3, 9  ;;  %v609_v2 = vrot.slane %v3350_v46, 5  ;;  %v5979_v30 = vunpack.c.l.b16 %v3571_v41  ;;  %v286_v6 = vld [vmem:[%s3201_s22 + $0x94] sm:$0x3] }
  0x42   : > { %5976 = vst [vmem:[#allocation23_spill] sm:$0xff] %v3567_v60  ;;  %v3587_v62 = vsel %vm3523_vm5, %v2902_v38, %v633_v52  ;;  %v1484_v14 = vunpack.c.l.b16 %v630_v21  ;;  %v3596_v53 = vsel %vm3523_vm5, %v2899_v48, %v605_v23  ;;  %v533_v60 = vshrl.u32 %v3220_v8, 16 }
  0x43   : > { %5977 = vst [vmem:[#allocation24_spill] sm:$0xff] %v3571_v41  ;;  %v1472_v51 = vpack.c.b16 %v5979_v30, %v1464_v45  ;;  %v5763_v16 = vunpack.c.l.b16 %v3587_v62  ;;  %v3602_v38 = vsel %vm3523_vm5, %v2900_v36, %v609_v2  ;;  %v5767_v52 = vunpack.c.l.b16 %v3596_v53 }
  0x44   : > { %5978 = vst [vmem:[#allocation25_spill] sm:$0xff] %v3587_v62  ;;  %v536_v21 = vshll.u32 %v3220_v8, 16  ;;  %v542_v42 = vshll.u32 %v284_v25, 16  ;;  %v5772_v30 = vunpack.c.l.b16 %v3602_v38  ;;  %v535_v12 = vrot.slane %v533_v60, 4 }
  0x45   : > { %5980 = vst [vmem:[#allocation26_spill] sm:$0xff] %v3596_v53  ;;  %v1492_v45 = vpack.c.b16 %v5763_v16, %v1484_v14  ;;  %v547_v23 = vshrl.u32 %v3227_v13, 16  ;;  %v556_v5 = vshll.u32 %v286_v6, 16  ;;  %v2907_v57 = vrot.slane %v3220_v8, 9 }
  0x46   : > { %5981 = vst [vmem:[#allocation27_spill] sm:$0xff] %v3602_v38  ;;  %v538_v48 = vrot.slane %v536_v21, 5  ;;  %v544_v32 = vrot.slane %v542_v42, 5  ;;  %v3615_v2 = vpack.c.b16 %v5772_v30, %v5767_v52  ;;  %v653_v14 = vrot.slane %v284_v25, 5  ;;  %v4068_v38 = vld [vmem:[%s3201_s22 + $0xb4] sm:$0x3] }
  0x47   : > { %v549_v36 = vrot.slane %v547_v23, 4  ;;  %v552_v20 = vrot.slane %v550_v47, 5  ;;  %v558_v60 = vrot.slane %v556_v5, 5  ;;  %v2908_v17 = vrot.slane %v3227_v13, 9 }
  0x48   : > { %5982 = vst [vmem:[#allocation28_spill] sm:$0xff] %v3615_v2  ;;  %v539_v16 = vor.u32 %v538_v48, %v535_v12  ;;  %v3622_v42 = vsel %vm3523_vm5, %v2907_v57, %v653_v14  ;;  %v657_v21 = vrot.slane %v286_v6, 5  ;;  %v2905_v62 = vrot.slane %v3204_v0, 9 }
  0x49   : > { %1476 = vrot.lane.b32.xlu0 %v1472_v51, %s3140_s26  ;;  %5983 = vst [vmem:[#allocation29_spill] sm:$0xff] %v3622_v42  ;;  %v645_v52 = vrot.slane %v3427_v40, 5  ;;  %1496 = vrot.lane.b32.xlu1 %v1492_v45, %s3141_s27  ;;  %v553_v12 = vor.u32 %v552_v20, %v549_v36  ;;  %v5770_v5 = vunpack.c.l.b16 %v3622_v42  ;;  %v2906_v47 = vrot.slane %v3207_v1, 9 }
  0x4a   : > { %v540_v25 = vrot.slane %v539_v16, 4  ;;  %v3631_v51 = vsel %vm3523_vm5, %v2908_v17, %v657_v21  ;;  %v649_v6 = vrot.slane %v3434_v61, 5  ;;  %v2897_v40 = vrot.slane %v3363_v9, 9 }
  0x4b   : > { %5984 = vst [vmem:[#allocation30_spill] sm:$0xff] %v3631_v51  ;;  %v3635_v57 = vsel %vm3523_vm5, %v2905_v62, %v645_v52  ;;  %v554_v20 = vrot.slane %v553_v12, 4  ;;  %v5768_v45 = vunpack.c.l.b16 %v3631_v51  ;;  %v597_v62 = vrot.slane %v3374_v26, 5 }
  0x4c   : > { %5985 = vst [vmem:[#allocation31_spill] sm:$0xff] %v3635_v57  ;;  %v545_v16 = vsel %vm3338_vm2, %v540_v25, %v544_v32  ;;  %v5769_v23 = vunpack.c.l.b16 %v3635_v57  ;;  %v3647_v17 = vsel %vm3523_vm5, %v2906_v47, %v649_v6  ;;  %v2898_v61 = vrot.slane %v3384_v56, 9 }
  0x4d   : > { %v3643_v48 = vunpack.c.l.b16 %v545_v16  ;;  %5987 = vst [vmem:[#allocation33_spill] sm:$0xff] %v3647_v17  ;;  %v559_v52 = vsel %vm3338_vm2, %v554_v20, %v558_v60  ;;  %v3657_v32 = vpack.c.b16 %v5768_v45, %v5770_v5  ;;  %v5771_v36 = vunpack.c.l.b16 %v3647_v17 }
  0x4e   : > { %v601_v14 = vrot.slane %v3392_v10, 5  ;;  %v3661_v21 = vunpack.c.l.b16 %v559_v52  ;;  %v3665_v25 = vsel %vm3523_vm5, %v2897_v40, %v597_v62  ;;  %v5993_v6 = vshrl.u32 %v3363_v9, 16 }
  0x4f   : > { %5986 = vst [vmem:[#allocation32_spill] sm:$0xff] %v3643_v48  ;;  %v3671_v60 = vpack.c.b16 %v5771_v36, %v5769_v23  ;;  %v5777_v47 = vunpack.c.l.b16 %v3665_v25  ;;  %v5995_v62 = vshll.u32 %v3363_v9, 16  ;;  %v5997_v45 = vshrl.u32 %v3384_v56, 16 }
  0x50   : > { %5988 = vst [vmem:[#allocation34_spill] sm:$0xff] %v3657_v32  ;;  %v3675_v12 = vsel %vm3523_vm5, %v2898_v61, %v601_v14  ;;  %v702_v16 = vrot.slane %v5993_v6, 5  ;;  %v3684_v40 = vpack.c.b16 %v3661_v21, %v3643_v48  ;;  %v706_v61 = vshrl.u32 %v3374_v26, 16 }
  0x51   : > { %5989 = vst [vmem:[#allocation35_spill] sm:$0xff] %v3661_v21  ;;  %1482 = vrot.lane.b32.xlu0 %v3615_v2, %s3140_s26  ;;  %v5778_v20 = vunpack.c.l.b16 %v3675_v12  ;;  %v703_v52 = vrot.slane %v5995_v62, 6  ;;  %1502 = vrot.lane.b32.xlu1 %v3657_v32, %s3141_s27  ;;  %v5996_v14 = vshll.u32 %v3374_v26, 16  ;;  %v712_v23 = vrot.slane %v5997_v45, 5 }
  0x52   : > { %5990 = vst [vmem:[#allocation36_spill] sm:$0xff] %v3665_v25  ;;  %v5998_v5 = vshll.u32 %v3384_v56, 16  ;;  %v716_v30 = vshrl.u32 %v3392_v10, 16  ;;  %1462 = vrot.lane.b32.xlu2 %v3684_v40, %s3139_s25  ;;  %v708_v26 = vrot.slane %v706_v61, 5  ;;  %v6004_v51 = vshll.u32 %v3284_v39, 16 }
  0x53   : > { %5991 = vst [vmem:[#allocation37_spill] sm:$0xff] %v3671_v60  ;;  %v709_v6 = vrot.slane %v5996_v14, 6  ;;  %v3705_v9 = vpack.c.b16 %v5778_v20, %v5777_v47  ;;  %v704_v62 = vor.u32 %v703_v52, %v702_v16  ;;  %v6000_v14 = vshll.u32 %v3392_v10, 16 }
  0x54   : > { %5992 = vst [vmem:[#allocation38_spill] sm:$0xff] %v3675_v12  ;;  %v713_v36 = vrot.slane %v5998_v5, 6  ;;  %v718_v45 = vrot.slane %v716_v30, 5  ;;  %v683_v47 = vrot.slane %v6004_v51, 6  ;;  %v686_v52 = vshrl.u32 %v3300_v43, 16 }
  0x55   : > { %5994 = vst [vmem:[#allocation39_spill] sm:$0xff] %v3684_v40  ;;  %v719_v2 = vrot.slane %v6000_v14, 6  ;;  %v6003_v40 = vshrl.u32 %v3284_v39, 16  ;;  %v705_v20 = vrot.slane %v704_v62, 4  ;;  %v710_v16 = vor.u32 %v709_v6, %v708_v26 }
  0x56   : > { %5999 = vst [vmem:[#allocation40_spill] sm:$0xff] %v3705_v9  ;;  %v714_v5 = vor.u32 %v713_v36, %v712_v23  ;;  %v6005_v10 = vshll.u32 %v3300_v43, 16  ;;  %v6006_v57 = vshrl.u32 %v3402_v31, 16  ;;  %v688_v36 = vrot.slane %v686_v52, 5  ;;  %v3758_v52 = vld [vmem:[%s3201_s22 + $0xc0] sm:$0xf] }
  0x57   : > { %v682_v32 = vrot.slane %v6003_v40, 5  ;;  %v720_v25 = vor.u32 %v719_v2, %v718_v45  ;;  %v3726_v30 = vsel %vm3711_vm8, %v705_v20, %v710_v16  ;;  %v6008_v39 = vshll.u32 %v3402_v31, 16 }
  0x58   : > { %v689_v61 = vrot.slane %v6005_v10, 6  ;;  %v715_v14 = vrot.slane %v714_v5, 4  ;;  %v692_v23 = vrot.slane %v6006_v57, 5  ;;  %6007 = vst [vmem:[#allocation41_spill] sm:$0xff] %v3726_v30  ;;  %v696_v40 = vshrl.u32 %v3412_v28, 16 }
  0x59   : > { %v684_v27 = vor.u32 %v683_v47, %v682_v32  ;;  %v693_v51 = vrot.slane %v6008_v39, 6  ;;  %v5783_v2 = vunpack.c.l.b16 %v3726_v30  ;;  %v6010_v47 = vshll.u32 %v3412_v28, 16  ;;  %1500 = vrot.lane.b32.xlu0 %v3671_v60, %s3141_s27 }
  0x5a   : > { %v3733_v43 = vsel %vm3711_vm8, %v715_v14, %v720_v25  ;;  %v690_v31 = vor.u32 %v689_v61, %v688_v36  ;;  %v698_v62 = vrot.slane %v696_v40, 5  ;;  %v2903_v26 = vrot.slane %v3241_v18, 9  ;;  %1480 = vrot.lane.b32.xlu2 %v3705_v9, %s3140_s26  ;;  %v3770_v14 = vld [vmem:[%s3201_s22 + $0xc8] sm:$0xf] }
  0x5b   : > { %6009 = vst [vmem:[#allocation42_spill] sm:$0xff] %v3733_v43  ;;  %v685_v32 = vrot.slane %v684_v27, 4  ;;  %v699_v57 = vrot.slane %v6010_v47, 6  ;;  %v5782_v20 = vunpack.c.l.b16 %v3733_v43  ;;  %v694_v6 = vor.u32 %v693_v51, %v692_v23 }
  0x5c   : > { %v637_v25 = vrot.slane %v3453_v50, 5  ;;  %v2904_v5 = vrot.slane %v3244_v19, 9  ;;  %v641_v27 = vrot.slane %v3472_v15, 5  ;;  %6015 = vst [vmem:[#allocation47_spill] sm:$0xff] %v3770_v14  ;;  %v676_v23 = vshrl.u32 %v3273_v34, 16 }
  0x5d   : > { %v3751_v28 = vpack.c.b16 %v5782_v20, %v5783_v2  ;;  %v3755_v45 = vsel %vm3711_vm8, %v685_v32, %v690_v31  ;;  %v695_v16 = vrot.slane %v694_v6, 4  ;;  %v700_v50 = vor.u32 %v699_v57, %v698_v62  ;;  %v3783_v32 = vld [vmem:[%s3201_s22 + $0xb0] sm:$0xf]  ;;  %v3790_v62 = vld [vmem:[%s3201_s22 + $0xb8] sm:$0xf] }
  0x5e   : > { %6012 = vst [vmem:[#allocation44_spill] sm:$0xff] %v3755_v45  ;;  %v5786_v15 = vunpack.c.l.b16 %v3755_v45  ;;  %v3763_v10 = vsel %vm3523_vm5, %v2903_v26, %v637_v25  ;;  %v3767_v61 = vsel %vm3523_vm5, %v2904_v5, %v641_v27  ;;  %v5789_v6 = vunpack.c.l.b16 %v3758_v52 }
  0x5f   : > { %6011 = vst [vmem:[#allocation43_spill] sm:$0xff] %v3751_v28  ;;  %1520 = vrot.lane.b32.xlu1 %v3751_v28, %s3142_s28  ;;  %v3777_v36 = vsel %vm3711_vm8, %v695_v16, %v700_v50  ;;  %v5784_v39 = vunpack.c.l.b16 %v3763_v10  ;;  %v5785_v51 = vunpack.c.l.b16 %v3767_v61  ;;  %v5788_v25 = vunpack.c.l.b16 %v3770_v14 }
  0x60   : > { %6013 = vst [vmem:[#allocation45_spill] sm:$0xff] %v3763_v10  ;;  %v5787_v47 = vunpack.c.l.b16 %v3777_v36  ;;  %v1524_v2 = vunpack.c.l.b16 %v3783_v32  ;;  %v6021_v20 = vshll.u32 %v3255_v24, 16  ;;  %v666_v31 = vshrl.u32 %v3264_v29, 16  ;;  %v3842_v29 = vld [vmem:[%s3201_s22 + $0xe0] sm:$0xf] }
  0x61   : > { %6014 = vst [vmem:[#allocation46_spill] sm:$0xff] %v3767_v61  ;;  %v3796_v26 = vpack.c.b16 %v5785_v51, %v5784_v39  ;;  %v3811_v39 = vld [vmem:[%s3201_s22 + $0x108] sm:$0xf]  ;;  %v3814_v51 = vld [vmem:[%s3201_s22 + $0x110] sm:$0xf]  ;;  %v3820_v27 = vpack.c.b16 %v5788_v25, %v5789_v6  ;;  %v6022_v57 = vshrl.u32 %v3270_v33, 16 }
  0x62   : > { %6016 = vst [vmem:[#allocation48_spill] sm:$0xff] %v3777_v36  ;;  %v3805_v16 = vpack.c.b16 %v5787_v47, %v5786_v15  ;;  %v5793_v15 = vunpack.c.l.b16 %v3790_v62  ;;  %v6020_v47 = vshrl.u32 %v3255_v24, 16  ;;  %v663_v5 = vrot.slane %v6021_v20, 6 }
  0x63   : > { %6017 = vst [vmem:[#allocation49_spill] sm:$0xff] %v3796_v26  ;;  %v672_v40 = vrot.slane %v6022_v57, 5  ;;  %v6023_v25 = vshll.u32 %v3270_v33, 16  ;;  %1498 = vrot.lane.b32.xlu2 %v3796_v26, %s3141_s27  ;;  %v5794_v9 = vunpack.c.l.b16 %v3814_v51  ;;  %v668_v28 = vrot.slane %v666_v31, 5  ;;  %v3845_v33 = vld [vmem:[%s3201_s22 + $0xe8] sm:$0xf] }
  0x64   : > { %6018 = vst [vmem:[#allocation50_spill] sm:$0xff] %v3805_v16  ;;  %v662_v50 = vrot.slane %v6020_v47, 5  ;;  %1518 = vrot.lane.b32.xlu0 %v3805_v16, %s3142_s28  ;;  %v1532_v24 = vpack.c.b16 %v5793_v15, %v1524_v2  ;;  %v1544_v47 = vunpack.c.l.b16 %v3811_v39  ;;  %v678_v60 = vrot.slane %v676_v23, 5 }
  0x65   : > { %6019 = vst [vmem:[#allocation51_spill] sm:$0xff] %v3820_v27  ;;  %v673_v6 = vrot.slane %v6023_v25, 6  ;;  %v5796_v15 = vunpack.c.l.b16 %v3845_v33  ;;  %v872_v53 = vshll.u32 %v3814_v51, 16  ;;  %v6058_v13 = vshrl.u32 %v3783_v32, 16 }
  0x66   : > { %v664_v20 = vor.u32 %v663_v5, %v662_v50  ;;  %v1552_v2 = vpack.c.b16 %v5794_v9, %v1544_v47  ;;  %v680_v31 = vor.u32 %v3344_v11, %v678_v60  ;;  %v6024_v47 = vshrl.u32 %v3315_v54, 16 }
  0x67   : > { %v674_v57 = vor.u32 %v673_v6, %v672_v40  ;;  %1538 = vrot.lane.b32.xlu1 %v3820_v27, %s3143_s29  ;;  %v670_v40 = vor.u32 %v3329_v63, %v668_v28  ;;  %v6025_v5 = vshll.u32 %v3315_v54, 16  ;;  %v726_v60 = vshrl.u32 %v3323_v59, 16  ;;  %v3873_v6 = vld [vmem:[%s3201_s22 + $0x138] sm:$0xf] }
  0x68   : > { %v665_v25 = vrot.slane %v664_v20, 4  ;;  %v5795_v20 = vunpack.c.l.b16 %v3842_v29  ;;  %v722_v9 = vrot.slane %v6024_v47, 5  ;;  %v6027_v28 = vshll.u32 %v3323_v59, 16 }
  0x69   : > { %v675_v23 = vrot.slane %v674_v57, 4  ;;  %v723_v50 = vrot.slane %v6025_v5, 6  ;;  %v3883_v5 = vld [vmem:[%s3201_s22 + $0x140] sm:$0xf]  ;;  %v728_v59 = vrot.slane %v726_v60, 5  ;;  %v6034_v27 = vshll.u32 %v3350_v46, 16 }
  0x6a   : > { %v671_v63 = vsel %vm3711_vm8, %v665_v25, %v670_v40  ;;  %v729_v57 = vrot.slane %v6027_v28, 6  ;;  %v3880_v54 = vpack.c.b16 %v5796_v15, %v5795_v20  ;;  %v3886_v40 = vld [vmem:[%s3201_s22 + $0x128] sm:$0xf]  ;;  %v6032_v28 = vshll.u32 %v3332_v3, 16  ;;  %v3898_v15 = vld [vmem:[%s3201_s22 + $0xd0] sm:$0xf] }
  0x6b   : > { %v3867_v11 = vsel %vm3711_vm8, %v675_v23, %v680_v31  ;;  %v1504_v34 = vunpack.c.l.b16 %v671_v63  ;;  %v724_v25 = vor.u32 %v723_v50, %v722_v9  ;;  %6029 = vst [vmem:[#allocation54_spill] sm:$0xff] %v3886_v40  ;;  %v3889_v23 = vld [vmem:[%s3201_s22 + $0x130] sm:$0xf]  ;;  %v6031_v31 = vshrl.u32 %v3332_v3, 16 }
  0x6c   : > { %6026 = vst [vmem:[#allocation52_spill] sm:$0xff] %v3867_v11  ;;  %1536 = vrot.lane.b32.xlu0 %v1532_v24, %s3143_s29  ;;  %v733_v47 = vrot.slane %v6032_v28, 6  ;;  %v736_v20 = vshrl.u32 %v3350_v46, 16  ;;  %v6033_v9 = vunpack.c.l.b16 %v3867_v11  ;;  %v739_v26 = vrot.slane %v6034_v27, 6  ;;  %v3907_v28 = vld [vmem:[%s3201_s22 + $0xd8] sm:$0xf] }
  0x6d   : > { %6028 = vst [vmem:[#allocation53_spill] sm:$0xff] %v3880_v54  ;;  %v732_v63 = vrot.slane %v6031_v31, 5  ;;  %v725_v16 = vrot.slane %v724_v25, 4  ;;  %v5803_v24 = vunpack.c.l.b16 %v3873_v6  ;;  %v730_v60 = vor.u32 %v729_v57, %v728_v59  ;;  %v3926_v59 = vld [vmem:[%s3201_s22 + $0xd4] sm:$0x3] }
  0x6e   : > { %6030 = vst [vmem:[#allocation55_spill] sm:$0xff] %v3889_v23  ;;  %v1512_v50 = vpack.c.b16 %v6033_v9, %v1504_v34  ;;  %v738_v31 = vrot.slane %v736_v20, 5  ;;  %v5801_v3 = vunpack.c.l.b16 %v3883_v5  ;;  %v5802_v34 = vunpack.c.l.b16 %v3886_v40 }
  0x6f   : > { %v734_v43 = vor.u32 %v733_v47, %v732_v63  ;;  %1556 = vrot.lane.b32.xlu1 %v1552_v2, %s3144_s30  ;;  %v5804_v46 = vunpack.c.l.b16 %v3889_v23  ;;  %v5806_v27 = vshrl.u32 %v3898_v15, 16  ;;  %v5805_v57 = vshll.u32 %v3898_v15, 16 }
  0x70   : > { %1516 = vrot.lane.b32.xlu2 %v1512_v50, %s3142_s28  ;;  %v3917_v20 = vsel %vm3711_vm8, %v725_v16, %v730_v60  ;;  %v740_v25 = vor.u32 %v739_v26, %v738_v31  ;;  %v3923_v2 = vpack.c.b16 %v5801_v3, %v5803_v24  ;;  %v5814_v26 = vshll.u32 %v3907_v28, 16  ;;  %v3938_v16 = vld [vmem:[%s3201_s22 + $0xdc] sm:$0x3] }
  0x71   : > { %6035 = vst [vmem:[#allocation56_spill] sm:$0xff] %v3917_v20  ;;  %v735_v47 = vrot.slane %v734_v43, 4  ;;  %v3933_v9 = vpack.c.b16 %v5804_v46, %v5802_v34  ;;  %v5807_v43 = vshrl.u32 %v3907_v28, 16  ;;  %v5812_v60 = vunpack.c.l.b16 %v3898_v15  ;;  %v3969_v46 = vld [vmem:[%s3201_s22 + $0xcc] sm:$0x3] }
  0x72   : > { %6036 = vst [vmem:[#allocation57_spill] sm:$0xff] %v3923_v2  ;;  %v5813_v31 = vunpack.c.l.b16 %v3907_v28  ;;  %v801_v3 = vrot.slane %v5806_v27, 4  ;;  %v804_v24 = vrot.slane %v5805_v57, 5  ;;  %v818_v57 = vrot.slane %v5814_v26, 5 }
  0x73   : > { %6037 = vst [vmem:[#allocation58_spill] sm:$0xff] %v3933_v9  ;;  %v3942_v50 = vsel %vm3711_vm8, %v735_v47, %v740_v25  ;;  %v815_v63 = vrot.slane %v5807_v43, 4  ;;  %v3955_v47 = vld [vmem:[%s3201_s22 + $0xc4] sm:$0x3]  ;;  %v6040_v43 = vshrl.u32 %v3758_v52, 16  ;;  %v6041_v10 = vunpack.c.l.b16 %v3917_v20 }
  0x74   : > { %6038 = vst [vmem:[#allocation59_spill] sm:$0xff] %v3942_v50  ;;  %1542 = vrot.lane.b32.xlu0 %v3880_v54, %s3143_s29  ;;  %v3963_v25 = vpack.c.b16 %v5813_v31, %v5812_v60  ;;  %v6042_v54 = vunpack.c.l.b16 %v3942_v50  ;;  %v805_v11 = vor.u32 %v804_v24, %v801_v3  ;;  %v6044_v60 = vshll.u32 %v3926_v59, 16  ;;  %v3989_v50 = vld [vmem:[%s3201_s22 + $0x118] sm:$0xf] }
  0x75   : > { %v773_v34 = vrot.slane %v6040_v43, 4  ;;  %v6045_v26 = vshll.u32 %v3758_v52, 16  ;;  %v819_v27 = vor.u32 %v818_v57, %v815_v63  ;;  %v6046_v36 = vshll.u32 %v3938_v16, 16  ;;  %6048 = vst [vmem:[#allocation62_spill] sm:$0xff] %v3989_v50  ;;  %v3999_v57 = vld [vmem:[%s3201_s22 + $0x120] sm:$0xf] }
  0x76   : > { %6039 = vst [vmem:[#allocation60_spill] sm:$0xff] %v3963_v25  ;;  %v3977_v45 = vpack.c.b16 %v6042_v54, %v6041_v10  ;;  %v810_v31 = vrot.slane %v6044_v60, 5  ;;  %v5823_v43 = vshll.u32 %v3955_v47, 16  ;;  %v6047_v20 = vshrl.u32 %v3770_v14, 16 }
  0x77   : > { %v776_v30 = vrot.slane %v6045_v26, 5  ;;  %v824_v61 = vrot.slane %v6046_v36, 5  ;;  %1562 = vrot.lane.b32.xlu1 %v3923_v2, %s3144_s30  ;;  %v806_v10 = vrot.slane %v805_v11, 4  ;;  %v6049_v24 = vshll.u32 %v3770_v14, 16  ;;  %6050 = vst [vmem:[#allocation63_spill] sm:$0xff] %v3999_v57 }
  0x78   : > { %6043 = vst [vmem:[#allocation61_spill] sm:$0xff] %v3977_v45  ;;  %v787_v42 = vrot.slane %v6047_v20, 4  ;;  %1522 = vrot.lane.b32.xlu2 %v3977_v45, %s3142_s28  ;;  %v5826_v36 = vshll.u32 %v3969_v46, 16  ;;  %v820_v63 = vrot.slane %v819_v27, 4  ;;  %v782_v20 = vrot.slane %v5823_v43, 5 }
  0x79   : > { %v777_v54 = vor.u32 %v776_v30, %v773_v34  ;;  %v790_v3 = vrot.slane %v6049_v24, 5  ;;  %v5824_v26 = vunpack.c.l.b16 %v3989_v50  ;;  %v5825_v60 = vunpack.c.l.b16 %v3999_v57  ;;  %v4010_v2 = vld [vmem:[%s3201_s22 + $0x11c] sm:$0x3] }
  0x7a   : > { %v811_v11 = vsel %vm3338_vm2, %v806_v10, %v810_v31  ;;  %v796_v24 = vrot.slane %v5826_v36, 5  ;;  %v825_v27 = vsel %vm3338_vm2, %v820_v63, %v824_v61  ;;  %v883_v31 = vshrl.u32 %v3989_v50, 16  ;;  %v4045_v36 = vld [vmem:[%s3201_s22 + $0x10c] sm:$0x3] }
  0x7b   : > { %v778_v30 = vrot.slane %v777_v54, 4  ;;  %v791_v34 = vor.u32 %v790_v3, %v787_v42  ;;  %v4014_v45 = vunpack.c.l.b16 %v811_v11  ;;  %v4020_v43 = vpack.c.b16 %v5825_v60, %v5824_v26  ;;  %v4028_v3 = vld [vmem:[%s3201_s22 + $0x124] sm:$0x3] }
  0x7c   : > { %v4023_v42 = vunpack.c.l.b16 %v825_v27  ;;  %v886_v61 = vshll.u32 %v3989_v50, 16  ;;  %1560 = vrot.lane.b32.xlu0 %v3933_v9, %s3144_s30  ;;  %v885_v11 = vrot.slane %v883_v31, 4  ;;  %v892_v26 = vshll.u32 %v4010_v2, 16 }
  0x7d   : > { %6051 = vst [vmem:[#allocation64_spill] sm:$0xff] %v4014_v45  ;;  %v783_v10 = vsel %vm3338_vm2, %v778_v30, %v782_v20  ;;  %v792_v54 = vrot.slane %v791_v34, 4  ;;  %v897_v27 = vshrl.u32 %v3999_v57, 16  ;;  %v900_v34 = vshll.u32 %v3999_v57, 16 }
  0x7e   : > { %6052 = vst [vmem:[#allocation65_spill] sm:$0xff] %v4020_v43  ;;  %v4033_v63 = vunpack.c.l.b16 %v783_v10  ;;  %v4039_v60 = vpack.c.b16 %v4023_v42, %v4014_v45  ;;  %v888_v30 = vrot.slane %v886_v61, 5  ;;  %v894_v31 = vrot.slane %v892_v26, 5 }
  0x7f   : > { %6053 = vst [vmem:[#allocation66_spill] sm:$0xff] %v4023_v42  ;;  %v797_v20 = vsel %vm3338_vm2, %v792_v54, %v796_v24  ;;  %v899_v9 = vrot.slane %v897_v27, 4  ;;  %v906_v17 = vshll.u32 %v4028_v3, 16  ;;  %v902_v24 = vrot.slane %v900_v34, 5  ;;  %v4055_v54 = vld [vmem:[%s3201_s22 + $0x114] sm:$0x3] }
  0x80   : > { %6054 = vst [vmem:[#allocation67_spill] sm:$0xff] %v4033_v63  ;;  %v4047_v10 = vunpack.c.l.b16 %v797_v20  ;;  %1540 = vrot.lane.b32.xlu2 %v3963_v25, %s3143_s29  ;;  %1580 = vrot.lane.b32.xlu1 %v4039_v60, %s3145_s5  ;;  %v889_v42 = vor.u32 %v888_v30, %v885_v11  ;;  %v855_v61 = vshrl.u32 %v3811_v39, 16  ;;  %v858_v20 = vshll.u32 %v3811_v39, 16 }
  0x81   : > { %6055 = vst [vmem:[#allocation68_spill] sm:$0xff] %v4039_v60  ;;  %v908_v27 = vrot.slane %v906_v17, 5  ;;  %v864_v25 = vshll.u32 %v4045_v36, 16  ;;  %v869_v45 = vshrl.u32 %v3814_v51, 16  ;;  %v903_v60 = vor.u32 %v902_v24, %v899_v9  ;;  %v4079_v24 = vld [vmem:[%s3201_s22 + $0xbc] sm:$0x3] }
  0x82   : > { %6056 = vst [vmem:[#allocation69_spill] sm:$0xff] %v4047_v10  ;;  %v4061_v26 = vpack.c.b16 %v4047_v10, %v4033_v63  ;;  %v890_v48 = vrot.slane %v889_v42, 4  ;;  %v857_v11 = vrot.slane %v855_v61, 4  ;;  %v860_v30 = vrot.slane %v858_v20, 5 }
  0x83   : > { %v866_v34 = vrot.slane %v864_v25, 5  ;;  %v871_v35 = vrot.slane %v869_v45, 4  ;;  %v878_v12 = vshll.u32 %v4055_v54, 16  ;;  %v904_v63 = vrot.slane %v903_v60, 4 }
  0x84   : > { %6057 = vst [vmem:[#allocation70_spill] sm:$0xff] %v4061_v26  ;;  %v895_v17 = vsel %vm3338_vm2, %v890_v48, %v894_v31  ;;  %v861_v10 = vor.u32 %v860_v30, %v857_v11  ;;  %v745_v42 = vrot.slane %v6058_v13, 4  ;;  %1578 = vrot.lane.b32.xlu0 %v4061_v26, %s3145_s5  ;;  %v874_v45 = vrot.slane %v872_v53, 5 }
  0x85   : > { %v4076_v9 = vunpack.c.l.b16 %v895_v17  ;;  %v880_v25 = vrot.slane %v878_v12, 5  ;;  %v6060_v61 = vshll.u32 %v3783_v32, 16  ;;  %v909_v48 = vsel %vm3338_vm2, %v904_v63, %v908_v27 }
  0x86   : > { %v862_v60 = vrot.slane %v861_v10, 4  ;;  %v5843_v31 = vshll.u32 %v4068_v38, 16  ;;  %v6061_v13 = vshrl.u32 %v3790_v62, 16  ;;  %v4088_v30 = vunpack.c.l.b16 %v909_v48 }
  0x87   : > { %6059 = vst [vmem:[#allocation71_spill] sm:$0xff] %v4076_v9  ;;  %v748_v20 = vrot.slane %v6060_v61, 5  ;;  %v875_v17 = vor.u32 %v874_v45, %v871_v35  ;;  %v6063_v53 = vshll.u32 %v3790_v62, 16  ;;  %v5842_v10 = vshll.u32 %v4079_v24, 16 }
  0x88   : > { %v759_v11 = vrot.slane %v6061_v13, 4  ;;  %6062 = vst [vmem:[#allocation72_spill] sm:$0xff] %v4088_v30  ;;  %1558 = vrot.lane.b32.xlu2 %v4020_v43, %s3144_s30  ;;  %v867_v61 = vsel %vm3338_vm2, %v862_v60, %v866_v34  ;;  %v754_v63 = vrot.slane %v5843_v31, 5  ;;  %v2909_v27 = vrot.slane %v3783_v32, 9 }
  0x89   : > { %v749_v26 = vor.u32 %v748_v20, %v745_v42  ;;  %v762_v12 = vrot.slane %v6063_v53, 5  ;;  %v4102_v35 = vpack.c.b16 %v4088_v30, %v4076_v9  ;;  %v876_v42 = vrot.slane %v875_v17, 4  ;;  %v4143_v30 = vpop.permute.xlu1 %1420  ;;  %v4150_v9 = vld [vmem:[%s3201_s22 + $0xec] sm:$0x3] }
  0x8a   : > { %v1584_v45 = vunpack.c.l.b16 %v867_v61  ;;  %v768_v13 = vrot.slane %v5842_v10, 5  ;;  %v984_v34 = vrot.slane %v4068_v38, 5  ;;  %v2910_v60 = vrot.slane %v3790_v62, 9  ;;  %6068 = vst [vmem:[#allocation77_spill] sm:$0xff] %v4143_v30 }
  0x8b   : > { %6064 = vst [vmem:[#allocation73_spill] sm:$0xff] %v4102_v35  ;;  %v750_v20 = vrot.slane %v749_v26, 4  ;;  %v763_v48 = vor.u32 %v762_v12, %v759_v11  ;;  %1598 = vrot.lane.b32.xlu1 %v4102_v35, %s3146_s6  ;;  %v881_v53 = vsel %vm3338_vm2, %v876_v42, %v880_v25  ;;  %v988_v26 = vrot.slane %v4079_v24, 5  ;;  %v4116_v11 = vld [vmem:[%s3201_s22 + $0x13c] sm:$0x3] }
  0x8c   : > { %v939_v12 = vshrl.u32 %v3873_v6, 16  ;;  %v4119_v61 = vunpack.c.l.b16 %v881_v53  ;;  %v985_v35 = vsel %vm3523_vm5, %v2909_v27, %v984_v34  ;;  %v942_v43 = vshll.u32 %v3873_v6, 16 }
  0x8d   : > { %v755_v17 = vsel %vm3338_vm2, %v750_v20, %v754_v63  ;;  %v764_v10 = vrot.slane %v763_v48, 4  ;;  %v4125_v25 = vsel %vm3523_vm5, %v2910_v60, %v988_v26  ;;  %v1604_v42 = vunpack.c.l.b16 %v985_v35  ;;  %v4128_v63 = vld [vmem:[%s3201_s22 + $0x144] sm:$0x3] }
  0x8e   : > { %6065 = vst [vmem:[#allocation74_spill] sm:$0xff] %v4119_v61  ;;  %v1564_v31 = vunpack.c.l.b16 %v755_v17  ;;  %v941_v20 = vrot.slane %v939_v12, 4  ;;  %v1592_v53 = vpack.c.b16 %v4119_v61, %v1584_v45  ;;  %v5854_v17 = vunpack.c.l.b16 %v4125_v25  ;;  %v4141_v12 = vld [vmem:[%s3201_s22 + $0xe4] sm:$0x3] }
  0x8f   : > { %6066 = vst [vmem:[#allocation75_spill] sm:$0xff] %v4125_v25  ;;  %v769_v48 = vsel %vm3338_vm2, %v764_v10, %v768_v13  ;;  %v948_v27 = vshll.u32 %v4116_v11, 16  ;;  %v944_v60 = vrot.slane %v942_v43, 5  ;;  %v953_v35 = vshrl.u32 %v3883_v5, 16 }
  0x90   : > { %v4136_v34 = vunpack.c.l.b16 %v769_v48  ;;  %v956_v26 = vshll.u32 %v3883_v5, 16  ;;  %1596 = vrot.lane.b32.xlu0 %v1592_v53, %s3146_s6  ;;  %v1612_v10 = vpack.c.b16 %v5854_v17, %v1604_v42  ;;  %v962_v13 = vshll.u32 %v4128_v63, 16 }
  0x91   : > { %v950_v45 = vrot.slane %v948_v27, 5  ;;  %v6069_v43 = vshrl.u32 %v3842_v29, 16  ;;  %v945_v21 = vor.u32 %v944_v60, %v941_v20  ;;  %v955_v37 = vrot.slane %v953_v35, 4  ;;  %v4165_v35 = vpop.permute.xlu2 %1436 }
  0x92   : > { %6067 = vst [vmem:[#allocation76_spill] sm:$0xff] %v4136_v34  ;;  %v1572_v61 = vpack.c.b16 %v4136_v34, %v1564_v31  ;;  %v958_v41 = vrot.slane %v956_v26, 5  ;;  %v964_v18 = vrot.slane %v962_v13, 5  ;;  %v6070_v30 = vshll.u32 %v3842_v29, 16  ;;  %v4248_v34 = vld [vmem:[%s3201_s22 + $0x20] sm:$0xf] }
  0x93   : > { %v829_v48 = vrot.slane %v6069_v43, 4  ;;  %v5855_v25 = vshll.u32 %v4141_v12, 16  ;;  %v6071_v42 = vshrl.u32 %v3845_v33, 16  ;;  %1616 = vrot.lane.b32.xlu1 %v1612_v10, %s3147_s7  ;;  %v946_v43 = vrot.slane %v945_v21, 4  ;;  %6073 = vst [vmem:[#allocation78_spill] sm:$0xff] %v4165_v35 }
  0x94   : > { %v832_v53 = vrot.slane %v6070_v30, 5  ;;  %1576 = vrot.lane.b32.xlu2 %v1572_v61, %s3145_s5  ;;  %v959_v17 = vor.u32 %v958_v41, %v955_v37  ;;  %v6072_v31 = vshll.u32 %v3845_v33, 16  ;;  %v5856_v60 = vshll.u32 %v4150_v9, 16 }
  0x95   : > { %v843_v27 = vrot.slane %v6071_v42, 4  ;;  %v838_v26 = vrot.slane %v5855_v25, 5  ;;  %v2915_v13 = vrot.slane %v3842_v29, 9  ;;  %v1008_v61 = vrot.slane %v4141_v12, 5 }
  0x96   : > { %v846_v20 = vrot.slane %v6072_v31, 5  ;;  %v833_v30 = vor.u32 %v832_v53, %v829_v48  ;;  %v951_v10 = vsel %vm3338_vm2, %v946_v43, %v950_v45  ;;  %v960_v21 = vrot.slane %v959_v17, 4 }
  0x97   : > { %v852_v41 = vrot.slane %v5856_v60, 5  ;;  %v4175_v42 = vunpack.c.l.b16 %v951_v10  ;;  %v4179_v48 = vsel %vm3523_vm5, %v2915_v13, %v1008_v61  ;;  %v2916_v53 = vrot.slane %v3845_v33, 9  ;;  %v4192_v13 = vpop.permute.xlu0 %1416 }
  0x98   : > { %v847_v37 = vor.u32 %v846_v20, %v843_v27  ;;  %v834_v31 = vrot.slane %v833_v30, 4  ;;  %6075 = vst [vmem:[#allocation80_spill] sm:$0xff] %v4179_v48  ;;  %v965_v25 = vsel %vm3338_vm2, %v960_v21, %v964_v18  ;;  %v1012_v17 = vrot.slane %v4150_v9, 5  ;;  %v322_v21 = vld [vmem:[%s3201_s22 + $0x12c] sm:$0x3] }
  0x99   : > { %6074 = vst [vmem:[#allocation79_spill] sm:$0xff] %v4175_v42  ;;  %v4186_v27 = vunpack.c.l.b16 %v965_v25  ;;  %v2913_v20 = vrot.slane %v3898_v15, 9  ;;  %v1000_v30 = vrot.slane %v3926_v59, 5  ;;  %v2914_v25 = vrot.slane %v3907_v28, 9 }
  0x9a   : > { %v848_v35 = vrot.slane %v847_v37, 4  ;;  %v839_v43 = vsel %vm3338_vm2, %v834_v31, %v838_v26  ;;  %6077 = vst [vmem:[#allocation82_spill] sm:$0xff] %v4192_v13  ;;  %v4200_v10 = vsel %vm3523_vm5, %v2916_v53, %v1012_v17  ;;  %v4204_v26 = vpop.permute.xlu1 %1422  ;;  %v324_v17 = vld [vmem:[%s3201_s22 + $0x134] sm:$0x3]  ;;  %v914_v45 = vshll.u32 %v3886_v40, 16 }
  0x9b   : > { %6076 = vst [vmem:[#allocation81_spill] sm:$0xff] %v4186_v27  ;;  %v4196_v61 = vunpack.c.l.b16 %v839_v43  ;;  %v4208_v37 = vpack.c.b16 %v4186_v27, %v4175_v42  ;;  %v911_v43 = vshrl.u32 %v3886_v40, 16  ;;  %v6085_v60 = vunpack.c.l.b16 %v4179_v48  ;;  %v4242_v48 = vpop.permute.xlu2 %1438 }
  0x9c   : > { %v853_v18 = vsel %vm3338_vm2, %v848_v35, %v852_v41  ;;  %6079 = vst [vmem:[#allocation84_spill] sm:$0xff] %v4200_v10  ;;  %v4215_v35 = vsel %vm3523_vm5, %v2913_v20, %v1000_v30  ;;  %v1004_v41 = vrot.slane %v3938_v16, 5  ;;  %v6086_v20 = vunpack.c.l.b16 %v4200_v10 }
  0x9d   : > { %6078 = vst [vmem:[#allocation83_spill] sm:$0xff] %v4196_v61  ;;  %v4210_v31 = vunpack.c.l.b16 %v853_v18  ;;  %1602 = vrot.lane.b32.xlu0 %v4208_v37, %s3146_s6  ;;  %v920_v53 = vshll.u32 %v322_v21, 16  ;;  %v925_v42 = vshrl.u32 %v3889_v23, 16  ;;  %v916_v13 = vrot.slane %v914_v45, 5 }
  0x9e   : > { %6080 = vst [vmem:[#allocation85_spill] sm:$0xff] %v4204_v26  ;;  %v4232_v30 = vpack.c.b16 %v6086_v20, %v6085_v60  ;;  %v4237_v27 = vsel %vm3523_vm5, %v2914_v25, %v1004_v41  ;;  %v934_v10 = vshll.u32 %v324_v17, 16  ;;  %v5870_v45 = vunpack.c.l.b16 %v4248_v34 }
  0x9f   : > { %6081 = vst [vmem:[#allocation86_spill] sm:$0xff] %v4208_v37  ;;  %v4226_v18 = vpack.c.b16 %v4210_v31, %v4196_v61  ;;  %v913_v37 = vrot.slane %v911_v43, 4  ;;  %v928_v61 = vshll.u32 %v3889_v23, 16  ;;  %v5868_v60 = vunpack.c.l.b16 %v4237_v27 }
  0xa0   : > { %6082 = vst [vmem:[#allocation87_spill] sm:$0xff] %v4210_v31  ;;  %1622 = vrot.lane.b32.xlu1 %v4232_v30, %s3147_s7  ;;  %v927_v20 = vrot.slane %v925_v42, 4  ;;  %v922_v25 = vrot.slane %v920_v53, 5  ;;  %v6090_v43 = vunpack.c.l.b16 %v4215_v35  ;;  %v936_v7 = vrot.slane %v934_v10, 5  ;;  %v4268_v53 = vpop.permute.xlu0 %1418 }
  0xa1   : > { %6083 = vst [vmem:[#allocation88_spill] sm:$0xff] %v4215_v35  ;;  %1582 = vrot.lane.b32.xlu2 %v4226_v18, %s3145_s5  ;;  %v917_v31 = vor.u32 %v916_v13, %v913_v37  ;;  %v930_v41 = vrot.slane %v928_v61, 5  ;;  %v2921_v61 = vrot.slane %v3886_v40, 9  ;;  %v1048_v37 = vrot.slane %v322_v21, 5 }
  0xa2   : > { %6084 = vst [vmem:[#allocation89_spill] sm:$0xff] %v4226_v18  ;;  %v4255_v18 = vpack.c.b16 %v5868_v60, %v6090_v43  ;;  %v2922_v35 = vrot.slane %v3889_v23, 9  ;;  %v1052_v21 = vrot.slane %v324_v17, 5  ;;  %v2920_v17 = vrot.slane %v3999_v57, 9 }
  0xa3   : > { %6087 = vst [vmem:[#allocation90_spill] sm:$0xff] %v4232_v30  ;;  %v918_v26 = vrot.slane %v917_v31, 4  ;;  %v931_v42 = vor.u32 %v930_v41, %v927_v20  ;;  %v4273_v31 = vpop.permute.xlu1 %1442  ;;  %v4281_v20 = vsel %vm3523_vm5, %v2921_v61, %v1048_v37  ;;  %v1044_v61 = vrot.slane %v4028_v3, 5 }
  0xa4   : > { %6088 = vst [vmem:[#allocation91_spill] sm:$0xff] %v4237_v27 }
  0xa5   : > { %6089 = vst [vmem:[#allocation92_spill] sm:$0xff] %v4242_v48  ;;  %v4258_v48 = vld [vmem:[%s3201_s22 + $0x28] sm:$0xf]  ;;  %v923_v43 = vsel %vm3338_vm2, %v918_v26, %v922_v25  ;;  %v932_v60 = vrot.slane %v931_v42, 4  ;;  %1620 = vrot.lane.b32.xlu0 %v4255_v18, %s3147_s7  ;;  %v5874_v26 = vunpack.c.l.b16 %v4281_v20  ;;  %v2919_v25 = vrot.slane %v3989_v50, 9 }
  0xa6   : > { %6091 = vst [vmem:[#allocation93_spill] sm:$0xff] %v4255_v18  ;;  %v5871_v30 = vunpack.c.l.b16 %v4258_v48  ;;  %v4277_v10 = vunpack.c.l.b16 %v923_v43  ;;  %v1040_v43 = vrot.slane %v4010_v2, 5  ;;  %v2911_v2 = vrot.slane %v3758_v52, 9 }
  0xa7   : > { %6092 = vst [vmem:[#allocation94_spill] sm:$0xff] %v4268_v53  ;;  %v937_v41 = vsel %vm3338_vm2, %v932_v60, %v936_v7  ;;  %v4301_v60 = vpop.permute.xlu2 %1456  ;;  %v6109_v53 = vshll.u32 %v3758_v52, 16  ;;  %v6117_v50 = vshll.u32 %v3770_v14, 16 }
  0xa8   : > { %v4265_v13 = vpack.c.b16 %v5871_v30, %v5870_v45  ;;  %6093 = vst [vmem:[#allocation95_spill] sm:$0xff] %v4273_v31  ;;  %v4287_v42 = vunpack.c.l.b16 %v937_v41  ;;  %v4291_v45 = vsel %vm3523_vm5, %v2922_v35, %v1052_v21  ;;  %v4305_v37 = vsel %vm3523_vm5, %v2919_v25, %v1040_v43  ;;  %v4337_v41 = vld [vmem:[%s3201_s22 + $0x38] sm:$0xf]  ;;  %v4362_v27 = vpop.permute.xlu0 %1440 }
  0xa9   : > { %6094 = vst [vmem:[#allocation96_spill] sm:$0xff] %v4277_v10  ;;  %v5873_v30 = vunpack.c.l.b16 %v4291_v45  ;;  %v992_v35 = vrot.slane %v3955_v47, 5  ;;  %v4317_v21 = vsel %vm3523_vm5, %v2920_v17, %v1044_v61  ;;  %v2912_v25 = vrot.slane %v3770_v14, 9 }
  0xaa   : > { %6095 = vst [vmem:[#allocation97_spill] sm:$0xff] %v4281_v20  ;;  %v4299_v7 = vpack.c.b16 %v4287_v42, %v4277_v10  ;;  %v6104_v17 = vunpack.c.l.b16 %v4305_v37  ;;  %v6105_v18 = vunpack.c.l.b16 %v4317_v21  ;;  %v6108_v43 = vshrl.u32 %v3758_v52, 16 }
  0xab   : > { %6096 = vst [vmem:[#allocation98_spill] sm:$0xff] %v4287_v42  ;;  %v4313_v3 = vpack.c.b16 %v5873_v30, %v5874_v26  ;;  %v996_v30 = vrot.slane %v3969_v46, 5  ;;  %v4330_v26 = vld [vmem:[%s3201_s22 + $0x30] sm:$0xf]  ;;  %v4378_v42 = vpop.permute.xlu1 %1460  ;;  %v6115_v20 = vshll.u32 %v3955_v47, 16  ;;  %v1093_v40 = vrot.slane %v6117_v50, 6 }
  0xac   : > { %6097 = vst [vmem:[#allocation99_spill] sm:$0xff] %v4291_v45  ;;  %1600 = vrot.lane.b32.xlu2 %v4299_v7, %s3146_s6  ;;  %v4326_v45 = vsel %vm3523_vm5, %v2911_v2, %v992_v35  ;;  %v4345_v35 = vld [vmem:[%s3201_s22 + $0x18] sm:$0xf]  ;;  %v4352_v10 = vpack.c.b16 %v6105_v18, %v6104_v17  ;;  %v1083_v2 = vrot.slane %v6109_v53, 6 }
  0xad   : > { %6098 = vst [vmem:[#allocation100_spill] sm:$0xff] %v4299_v7  ;;  %1640 = vrot.lane.b32.xlu1 %v4313_v3, %s3148_s8  ;;  %v4341_v7 = vld [vmem:[%s3201_s22 + $0x10] sm:$0xf]  ;;  %v4356_v61 = vsel %vm3523_vm5, %v2912_v25, %v996_v30  ;;  %v6113_v30 = vunpack.c.l.b16 %v4345_v35 }
  0xae   : > { %6099 = vst [vmem:[#allocation101_spill] sm:$0xff] %v4301_v60  ;;  %v6112_v17 = vunpack.c.l.b16 %v4341_v7  ;;  %1638 = vrot.lane.b32.xlu0 %v4352_v10, %s3148_s8  ;;  %v1089_v60 = vrot.slane %v6115_v20, 6 }
  0xaf   : > { %6100 = vst [vmem:[#allocation102_spill] sm:$0xff] %v4305_v37  ;;  %v6110_v37 = vunpack.c.l.b16 %v4330_v26 }
  0xb0   : > { %6101 = vst [vmem:[#allocation103_spill] sm:$0xff] %v4313_v3  ;;  %v1082_v3 = vrot.slane %v6108_v43, 5  ;;  %v4375_v25 = vpack.c.b16 %v6113_v30, %v6112_v17  ;;  %v1086_v43 = vshrl.u32 %v3955_v47, 16  ;;  %v6118_v17 = vunpack.c.l.b16 %v4326_v45 }
  0xb1   : > { %6102 = vst [vmem:[#allocation104_spill] sm:$0xff] %v4317_v21  ;;  %v6111_v21 = vunpack.c.l.b16 %v4337_v41  ;;  %v6119_v30 = vunpack.c.l.b16 %v4356_v61  ;;  %v6121_v47 = vshll.u32 %v3969_v46, 16 }
  0xb2   : > { %6103 = vst [vmem:[#allocation105_spill] sm:$0xff] %v4326_v45  ;;  %v1084_v53 = vor.u32 %v1083_v2, %v1082_v3  ;;  %v1088_v57 = vrot.slane %v1086_v43, 5  ;;  %v1096_v3 = vshrl.u32 %v3969_v46, 16  ;;  %v4397_v2 = vpop.permute.xlu2 %1462  ;;  %v6123_v45 = vshll.u32 %v3783_v32, 16 }
  0xb3   : > { %6106 = vst [vmem:[#allocation106_spill] sm:$0xff] %v4352_v10  ;;  %v4369_v18 = vpack.c.b16 %v6111_v21, %v6110_v37  ;;  %v6116_v37 = vshrl.u32 %v3770_v14, 16  ;;  %v1099_v20 = vrot.slane %v6121_v47, 6  ;;  %v6122_v10 = vshrl.u32 %v3783_v32, 16 }
  0xb4   : > { %6107 = vst [vmem:[#allocation107_spill] sm:$0xff] %v4356_v61  ;;  %v1085_v23 = vrot.slane %v1084_v53, 4  ;;  %v1063_v14 = vrot.slane %v6123_v45, 6  ;;  %v1098_v43 = vrot.slane %v1096_v3, 5  ;;  %v6124_v53 = vshll.u32 %v4068_v38, 16 }
  0xb5   : > { %6114 = vst [vmem:[#allocation108_spill] sm:$0xff] %v4375_v25  ;;  %v1092_v21 = vrot.slane %v6116_v37, 5  ;;  %v4392_v25 = vpack.c.b16 %v6119_v30, %v6118_v17  ;;  %v1090_v37 = vor.u32 %v1089_v60, %v1088_v57  ;;  %v1062_v50 = vrot.slane %v6122_v10, 5 }
  0xb6   : > { %v1066_v17 = vshrl.u32 %v4068_v38, 16  ;;  %v1069_v46 = vrot.slane %v6124_v53, 6  ;;  %v6127_v45 = vshll.u32 %v3790_v62, 16  ;;  %v1100_v47 = vor.u32 %v1099_v20, %v1098_v43 }
  0xb7   : > { %6120 = vst [vmem:[#allocation109_spill] sm:$0xff] %v4392_v25  ;;  %v1094_v31 = vor.u32 %v1093_v40, %v1092_v21  ;;  %1618 = vrot.lane.b32.xlu2 %v4392_v25, %s3147_s7  ;;  %v6125_v21 = vshrl.u32 %v3790_v62, 16  ;;  %v4412_v57 = vsel %vm3711_vm8, %v1085_v23, %v1090_v37  ;;  %v1064_v10 = vor.u32 %v1063_v14, %v1062_v50 }
  0xb8   : > { %6126 = vst [vmem:[#allocation110_spill] sm:$0xff] %v4412_v57  ;;  %v1068_v32 = vrot.slane %v1066_v17, 5  ;;  %v1073_v60 = vrot.slane %v6127_v45, 6  ;;  %v5895_v25 = vunpack.c.l.b16 %v4412_v57  ;;  %v6128_v38 = vshll.u32 %v4079_v24, 16  ;;  %v4427_v17 = vpop.permute.xlu0 %1458 }
  0xb9   : > { %v1095_v40 = vrot.slane %v1094_v31, 4  ;;  %v1072_v30 = vrot.slane %v6125_v21, 5  ;;  %v1076_v31 = vshrl.u32 %v4079_v24, 16  ;;  %v1065_v53 = vrot.slane %v1064_v10, 4  ;;  %v4436_v10 = vld [vmem:[%s3201_s22 + $0x8] sm:$0xf] }
  0xba   : > { %v1079_v3 = vrot.slane %v6128_v38, 6  ;;  %v1070_v21 = vor.u32 %v1069_v46, %v1068_v32  ;;  %v2917_v23 = vrot.slane %v3811_v39, 9  ;;  %v1032_v20 = vrot.slane %v4045_v36, 5  ;;  %v4433_v39 = vpop.permute.xlu1 %1478  ;;  %v4441_v45 = vpop.permute.xlu2 %1480 }
  0xbb   : > { %v1074_v61 = vor.u32 %v1073_v60, %v1072_v30  ;;  %v4423_v14 = vsel %vm3711_vm8, %v1095_v40, %v1100_v47  ;;  %v1078_v37 = vrot.slane %v1076_v31, 5  ;;  %v2918_v50 = vrot.slane %v3814_v51, 9 }
  0xbc   : > { %6129 = vst [vmem:[#allocation111_spill] sm:$0xff] %v4423_v14  ;;  %v5894_v24 = vunpack.c.l.b16 %v4423_v14  ;;  %v1071_v43 = vsel %vm3711_vm8, %v1065_v53, %v1070_v21  ;;  %v1036_v30 = vrot.slane %v4055_v54, 5  ;;  %v5896_v40 = vunpack.c.l.b16 %v4436_v10 }
  0xbd   : > { %v1075_v46 = vrot.slane %v1074_v61, 4  ;;  %v1080_v32 = vor.u32 %v1079_v3, %v1078_v37  ;;  %v1033_v36 = vsel %vm3523_vm5, %v2917_v23, %v1032_v20  ;;  %v1644_v61 = vunpack.c.l.b16 %v1071_v43 }
  0xbe   : > { %v4447_v60 = vpack.c.b16 %v5894_v24, %v5895_v25  ;;  %v4451_v54 = vsel %vm3523_vm5, %v2918_v50, %v1036_v30  ;;  %v1624_v47 = vunpack.c.l.b16 %v1033_v36  ;;  %v6132_v3 = vunpack.c.l.b16 %v4341_v7 }
  0xbf   : > { %v4455_v31 = vsel %vm3711_vm8, %v1075_v46, %v1080_v32  ;;  %v5898_v38 = vunpack.c.l.b16 %v4451_v54  ;;  %v6133_v23 = vshrl.u32 %v3842_v29, 16  ;;  %v6134_v20 = vshll.u32 %v3842_v29, 16 }
  0xc0   : > { %6130 = vst [vmem:[#allocation112_spill] sm:$0xff] %v4447_v60  ;;  %v1665_v53 = vpack.c.b16 %v6132_v3, %v5896_v40  ;;  %1658 = vrot.lane.b32.xlu1 %v4447_v60, %s3149_s9  ;;  %v5901_v21 = vunpack.c.l.b16 %v4455_v31  ;;  %v1126_v43 = vshrl.u32 %v4141_v12, 16  ;;  %v6135_v7 = vshll.u32 %v4141_v12, 16  ;;  %v6210_v60 = vld [vmem:[#allocation36_spill] sm:$0xff] }
  0xc1   : > { %6131 = vst [vmem:[#allocation113_spill] sm:$0xff] %v4455_v31  ;;  %v1122_v37 = vrot.slane %v6133_v23, 5  ;;  %v1123_v50 = vrot.slane %v6134_v20, 6  ;;  %v1632_v46 = vpack.c.b16 %v5898_v38, %v1624_v47  ;;  %v6136_v32 = vshrl.u32 %v3845_v33, 16  ;;  %v4486_v38 = vpop.permute.xlu0 %1476  ;;  %v6207_v31 = vld [vmem:[#allocation77_spill] sm:$0xff] }
  0xc2   : > { %v1129_v30 = vrot.slane %v6135_v7, 6  ;;  %v6137_v3 = vshll.u32 %v3845_v33, 16  ;;  %v1652_v23 = vpack.c.b16 %v5901_v21, %v1644_v61  ;;  %v1128_v40 = vrot.slane %v1126_v43, 5 }
  0xc3   : > { %v1132_v36 = vrot.slane %v6136_v32, 5  ;;  %v1124_v25 = vor.u32 %v1123_v50, %v1122_v37  ;;  %v1136_v20 = vshrl.u32 %v4150_v9, 16  ;;  %1636 = vrot.lane.b32.xlu2 %v1632_v46, %s3148_s8  ;;  %v6138_v47 = vshll.u32 %v4150_v9, 16 }
  0xc4   : > { %v1133_v24 = vrot.slane %v6137_v3, 6  ;;  %v2923_v7 = vrot.slane %v3873_v6, 9  ;;  %v1056_v32 = vrot.slane %v4116_v11, 5  ;;  %1656 = vrot.lane.b32.xlu0 %v1652_v23, %s3149_s9  ;;  %v1130_v37 = vor.u32 %v1129_v30, %v1128_v40  ;;  %v4490_v3 = vpop.permute.xlu1 %1496  ;;  %v4505_v30 = vld [vmem:[%s3201_s22 + $0x40] sm:$0xf] }
  0xc5   : > { %v1139_v12 = vrot.slane %v6138_v47, 6  ;;  %v1125_v61 = vrot.slane %v1124_v25, 4  ;;  %v1138_v50 = vrot.slane %v1136_v20, 5  ;;  %v2924_v43 = vrot.slane %v3883_v5, 9  ;;  %6141 = vst [vmem:[#allocation116_spill] sm:$0xff] %v4505_v30 }
  0xc6   : > { %v1134_v14 = vor.u32 %v1133_v24, %v1132_v36  ;;  %v4494_v9 = vsel %vm3523_vm5, %v2923_v7, %v1056_v32  ;;  %v1060_v46 = vrot.slane %v4128_v63, 5  ;;  %v4497_v36 = vpop.permute.xlu2 %1498  ;;  %v6145_v32 = vshrl.u32 %v3898_v15, 16 }
  0xc7   : > { %6139 = vst [vmem:[#allocation114_spill] sm:$0xff] %v4494_v9  ;;  %v4501_v11 = vsel %vm3711_vm8, %v1125_v61, %v1130_v37  ;;  %v1140_v25 = vor.u32 %v1139_v12, %v1138_v50  ;;  %v5900_v40 = vunpack.c.l.b16 %v4494_v9  ;;  %v5904_v12 = vunpack.c.l.b16 %v4505_v30 }
  0xc8   : > { %v1135_v24 = vrot.slane %v1134_v14, 4  ;;  %6140 = vst [vmem:[#allocation115_spill] sm:$0xff] %v4501_v11  ;;  %v5903_v23 = vunpack.c.l.b16 %v4501_v11  ;;  %v4510_v14 = vsel %vm3523_vm5, %v2924_v43, %v1060_v46  ;;  %1669 = vrot.lane.b32.xlu1 %v1665_v53, %s3150_s10  ;;  %v1102_v61 = vrot.slane %v6145_v32, 5 }
  0xc9   : > { %6142 = vst [vmem:[#allocation117_spill] sm:$0xff] %v4510_v14  ;;  %v5899_v20 = vunpack.c.l.b16 %v4510_v14  ;;  %v6146_v53 = vshll.u32 %v3898_v15, 16  ;;  %v1106_v50 = vshrl.u32 %v3926_v59, 16 }
  0xca   : > { %v4515_v63 = vsel %vm3711_vm8, %v1135_v24, %v1140_v25  ;;  %v6148_v24 = vunpack.c.l.b16 %v4337_v41  ;;  %v6150_v25 = vshll.u32 %v3926_v59, 16  ;;  %v6152_v41 = vshll.u32 %v3907_v28, 16 }
  0xcb   : > { %6143 = vst [vmem:[#allocation118_spill] sm:$0xff] %v4515_v63  ;;  %v5902_v47 = vunpack.c.l.b16 %v4515_v63  ;;  %v4524_v7 = vpack.c.b16 %v5899_v20, %v5900_v40  ;;  %v1103_v37 = vrot.slane %v6146_v53, 6  ;;  %v6151_v20 = vshrl.u32 %v3907_v28, 16  ;;  %v4547_v40 = vpop.permute.xlu0 %1482 }
  0xcc   : > { %v4541_v46 = vpack.c.b16 %v5904_v12, %v6148_v24  ;;  %v1109_v32 = vrot.slane %v6150_v25, 6  ;;  %v1116_v24 = vshrl.u32 %v3938_v16, 16  ;;  %v6153_v59 = vshll.u32 %v3938_v16, 16  ;;  %v4569_v16 = vld [vmem:[%s3201_s22 + $0x98] sm:$0xf] }
  0xcd   : > { %6144 = vst [vmem:[#allocation119_spill] sm:$0xff] %v4524_v7  ;;  %v4535_v43 = vpack.c.b16 %v5902_v47, %v5903_v23  ;;  %v1112_v53 = vrot.slane %v6151_v20, 5  ;;  %1642 = vrot.lane.b32.xlu2 %v4524_v7, %s3148_s8  ;;  %v1104_v21 = vor.u32 %v1103_v37, %v1102_v61  ;;  %v1108_v47 = vrot.slane %v1106_v50, 5  ;;  %v4558_v20 = vpop.permute.xlu1 %1502  ;;  %v6177_v7 = vld [vmem:[#allocation20_spill] sm:$0xff] }
  0xce   : > { %6149 = vst [vmem:[#allocation121_spill] sm:$0xff] %v4541_v46  ;;  %v1113_v23 = vrot.slane %v6152_v41, 6  ;;  %v1119_v25 = vrot.slane %v6153_v59, 6  ;;  %v1118_v11 = vrot.slane %v1116_v24, 5  ;;  %v4560_v61 = vpop.permute.xlu2 %1516  ;;  %v6156_v59 = vunpack.c.l.b16 %v4258_v48 }
  0xcf   : > { %6147 = vst [vmem:[#allocation120_spill] sm:$0xff] %v4535_v43  ;;  %1662 = vrot.lane.b32.xlu0 %v4535_v43, %s3149_s9  ;;  %v1105_v12 = vrot.slane %v1104_v21, 4  ;;  %v1110_v63 = vor.u32 %v1109_v32, %v1108_v47  ;;  %v6157_v21 = vunpack.c.l.b16 %v4330_v26  ;;  %v6161_v48 = vunpack.c.l.b16 %v3220_v8  ;;  %v4606_v8 = vld [vmem:[%s3201_s22 + $0x9c] sm:$0x3] }
  0xd0   : > { %v1114_v14 = vor.u32 %v1113_v23, %v1112_v53  ;;  %1675 = vrot.lane.b32.xlu1 %v4541_v46, %s3150_s10  ;;  %v1120_v41 = vor.u32 %v1119_v25, %v1118_v11  ;;  %6155 = vst [vmem:[#allocation123_spill] sm:$0xff] %v4569_v16  ;;  %v1157_v11 = vshrl.u32 %v4569_v16, 16  ;;  %v1160_v26 = vshll.u32 %v4569_v16, 16  ;;  %v6175_v46 = vld [vmem:[#allocation24_spill] sm:$0xff] }
  0xd1   : > { %v4566_v37 = vsel %vm3711_vm8, %v1105_v12, %v1110_v63  ;;  %v4575_v23 = vpack.c.b16 %v6157_v21, %v6156_v59  ;;  %v6164_v59 = vunpack.c.l.b16 %v3244_v19  ;;  %v6165_v21 = vunpack.c.l.b16 %v3204_v0 }
  0xd2   : > { %6154 = vst [vmem:[#allocation122_spill] sm:$0xff] %v4566_v37  ;;  %v1115_v50 = vrot.slane %v1114_v14, 4  ;;  %v5909_v47 = vunpack.c.l.b16 %v4566_v37  ;;  %v6160_v14 = vunpack.c.l.b16 %v3207_v1  ;;  %v1159_v25 = vrot.slane %v1157_v11, 4 }
  0xd3   : > { %6158 = vst [vmem:[#allocation124_spill] sm:$0xff] %v4575_v23  ;;  %v4583_v12 = vpop.permute.xlu0 %1500  ;;  %v4616_v11 = vpack.c.b16 %v6165_v21, %v6164_v59  ;;  %v6171_v59 = vld [vmem:[#allocation2_spill] sm:$0xff]  ;;  %v6176_v9 = vunpack.c.l.b16 %v6175_v46  ;;  %v6178_v37 = vunpack.c.l.b16 %v6177_v7  ;;  %v6181_v7 = vld [vmem:[#allocation35_spill] sm:$0xff] }
  0xd4   : > { %v4580_v32 = vsel %vm3711_vm8, %v1115_v50, %v1120_v41  ;;  %v4590_v53 = vpack.c.b16 %v6161_v48, %v6160_v14  ;;  %v1162_v50 = vrot.slane %v1160_v26, 5  ;;  %v1166_v48 = vshll.u32 %v4606_v8, 16 }
  0xd5   : > { %6159 = vst [vmem:[#allocation125_spill] sm:$0xff] %v4580_v32  ;;  %v5908_v63 = vunpack.c.l.b16 %v4580_v32  ;;  %v4608_v41 = vpop.permute.xlu1 %1520  ;;  %v6167_v26 = vunpack.c.l.b16 %v4345_v35  ;;  %v4627_v32 = vpack.c.b16 %v3476_v55, %v3543_v44  ;;  %v1839_v55 = vpack.c.b16 %v3519_v49, %v3536_v58 }
  0xd6   : > { %6162 = vst [vmem:[#allocation126_spill] sm:$0xff] %v4590_v53  ;;  %v4603_v1 = vpop.permute.xlu2 %1522  ;;  %v1163_v14 = vor.u32 %v1162_v50, %v1159_v25  ;;  %v1168_v19 = vrot.slane %v1166_v48, 5  ;;  %v4634_v25 = vld [vmem:[%s3201_s22 + $0x44] sm:$0x3]  ;;  %v6172_v21 = vunpack.c.l.b16 %v6171_v59 }
  0xd7   : > { %1673 = vrot.lane.b32.xlu0 %v4575_v23, %s3150_s10  ;;  %v4599_v24 = vpack.c.b16 %v5908_v63, %v5909_v47  ;;  %6166 = vst [vmem:[#allocation128_spill] sm:$0xff] %v4616_v11  ;;  %v6168_v63 = vunpack.c.l.b16 %v4248_v34  ;;  %v2925_v34 = vrot.slane %v4505_v30, 9 }
  0xd8   : > { %1686 = vrot.lane.b32.xlu1 %v4590_v53, %s3151_s11  ;;  %6170 = vst [vmem:[#allocation130_spill] sm:$0xff] %v4627_v32  ;;  %v1164_v0 = vrot.slane %v1163_v14, 4  ;;  %v6173_v14 = vld [vmem:[#allocation5_spill] sm:$0xff] }
  0xd9   : > { %6163 = vst [vmem:[#allocation127_spill] sm:$0xff] %v4599_v24  ;;  %1660 = vrot.lane.b32.xlu2 %v4599_v24, %s3149_s9  ;;  %v4623_v47 = vpack.c.b16 %v6168_v63, %v6167_v26  ;;  %v1174_v63 = vrot.slane %v4634_v25, 5  ;;  %v6174_v48 = vunpack.c.l.b16 %v6173_v14  ;;  %v1852_v24 = vpack.c.b16 %v6178_v37, %v6176_v9  ;;  %v6183_v37 = vld [vmem:[#allocation3_spill] sm:$0xff] }
  0xda   : > { %v1169_v50 = vsel %vm3338_vm2, %v1164_v0, %v1168_v19  ;;  %v5919_v0 = vunpack.c.l.b16 %v4569_v16 }
  0xdb   : > { %6169 = vst [vmem:[#allocation129_spill] sm:$0xff] %v4623_v47  ;;  %v4629_v43 = vpop.permute.xlu0 %1518  ;;  %v1678_v26 = vpack.c.b16 %v6174_v48, %v6172_v21  ;;  %v4661_v58 = vunpack.c.l.b16 %v1169_v50  ;;  %v4665_v23 = vsel %vm3523_vm5, %v2925_v34, %v1174_v63  ;;  %v6186_v50 = vld [vmem:[#allocation27_spill] sm:$0xff]  ;;  %v6189_v48 = vld [vmem:[#allocation38_spill] sm:$0xff] }
  0xdc   : > { %6180 = vst [vmem:[#allocation5_spill] sm:$0xff] %v4665_v23  ;;  %v5918_v9 = vunpack.c.l.b16 %v4665_v23  ;;  %v6187_v59 = vunpack.c.l.b16 %v6186_v50  ;;  %v5927_v50 = vshrl.u32 %v4505_v30, 16 }
  0xdd   : > { %v4638_v35 = vpop.permute.xlu1 %1538  ;;  %6179 = vst [vmem:[#allocation2_spill] sm:$0xff] %v4661_v58  ;;  %v4675_v46 = vpack.c.b16 %v4661_v58, %v6181_v7  ;;  %v6191_v7 = vld [vmem:[#allocation26_spill] sm:$0xff]  ;;  %v6197_v58 = vld [vmem:[#allocation33_spill] sm:$0xff] }
  0xde   : > { %v4644_v44 = vpop.permute.xlu2 %1540  ;;  %v4689_v21 = vpack.c.b16 %v5918_v9, %v6187_v59  ;;  %v5929_v59 = vshll.u32 %v4505_v30, 16  ;;  %v6194_v9 = vld [vmem:[#allocation16_spill] sm:$0xff] }
  0xdf   : > { %1684 = vrot.lane.b32.xlu0 %v4616_v11, %s3151_s11  ;;  %6182 = vst [vmem:[#allocation24_spill] sm:$0xff] %v4675_v46 }
  0xe0   : > { %1845 = vrot.lane.b32.xlu1 %v4627_v32, %s3137_s23  ;;  %6188 = vst [vmem:[#allocation35_spill] sm:$0xff] %v4689_v21  ;;  %v6208_v32 = vld [vmem:[#allocation21_spill] sm:$0xff] }
  0xe1   : > { %1671 = vrot.lane.b32.xlu2 %v4623_v47, %s3150_s10  ;;  %v6211_v47 = vunpack.c.l.b16 %v6210_v60 }
  0xe3   : > { %v4658_v49 = vpop.permute.xlu0 %1536 }
  0xe5   : > { %v4669_v19 = vpop.permute.xlu1 %1556 }
  0xe6   : > { %v4683_v63 = vpop.permute.xlu2 %1558 }
  0xe7   : > { %1843 = vrot.lane.b32.xlu0 %v1839_v55, %s3137_s23  ;;  %v6184_v55 = vunpack.c.l.b16 %v6183_v37  ;;  %v6192_v37 = vunpack.c.l.b16 %v6191_v7 }
  0xe8   : > { %1856 = vrot.lane.b32.xlu1 %v1852_v24, %s3138_s24 }
  0xe9   : > { %1682 = vrot.lane.b32.xlu2 %v1678_v26, %s3151_s11  ;;  %v4681_v34 = vpack.c.b16 %v5919_v0, %v6184_v55  ;;  %v6190_v26 = vunpack.c.l.b16 %v6189_v48  ;;  %v6195_v0 = vld [vmem:[#allocation32_spill] sm:$0xff] }
  0xea   : > { %v4711_v23 = vpack.c.b16 %v6195_v0, %v6194_v9  ;;  %v1183_v0 = vrot.slane %v5929_v59, 6  ;;  %v6202_v9 = vld [vmem:[#allocation46_spill] sm:$0xff]  ;;  %v6206_v59 = vshll.u32 %v4634_v25, 16 }
  0xeb   : > { %6185 = vst [vmem:[#allocation20_spill] sm:$0xff] %v4681_v34  ;;  %v4691_v24 = vpop.permute.xlu0 %1542  ;;  %v4705_v55 = vpack.c.b16 %v6192_v37, %v6190_v26  ;;  %v1182_v37 = vrot.slane %v5927_v50, 5 }
  0xec   : > { %6196 = vst [vmem:[#allocation27_spill] sm:$0xff] %v4711_v23  ;;  %v1189_v57 = vrot.slane %v6206_v59, 6 }
  0xed   : > { %v4697_v14 = vpop.permute.xlu1 %1562  ;;  %6193 = vst [vmem:[#allocation3_spill] sm:$0xff] %v4705_v55  ;;  %v1184_v50 = vor.u32 %v1183_v0, %v1182_v37  ;;  %v6212_v37 = vld [vmem:[#allocation48_spill] sm:$0xff] }
  0xee   : > { %v4721_v48 = vpop.permute.xlu2 %1576  ;;  %v6213_v0 = vunpack.c.l.b16 %v6212_v37 }
  0xef   : > { %1849 = vrot.lane.b32.xlu0 %v4675_v46, %s3137_s23  ;;  %v6198_v46 = vunpack.c.l.b16 %v6197_v58  ;;  %v1186_v58 = vshrl.u32 %v4634_v25, 16 }
  0xf0   : > { %1862 = vrot.lane.b32.xlu1 %v4689_v21, %s3138_s24 }
  0xf1   : > { %1688 = vrot.lane.b32.xlu2 %v4681_v34, %s3151_s11  ;;  %v6199_v34 = vld [vmem:[#allocation29_spill] sm:$0xff]  ;;  %v1188_v11 = vrot.slane %v1186_v58, 5 }
  0xf2   : > { %v6200_v53 = vunpack.c.l.b16 %v6199_v34  ;;  %v6204_v34 = vld [vmem:[#allocation31_spill] sm:$0xff]  ;;  %v6214_v58 = vld [vmem:[#allocation41_spill] sm:$0xff] }
  0xf3   : > { %v1561_v26 = vpop.permute.xlu0 %1560  ;;  %v6205_v7 = vunpack.c.l.b16 %v6204_v34  ;;  %v6218_v34 = vld [vmem:[#allocation44_spill] sm:$0xff] }
  0xf4   : > { %v4717_v21 = vpack.c.b16 %v6200_v53, %v6198_v46  ;;  %v6203_v46 = vunpack.c.l.b16 %v6202_v9  ;;  %v6215_v9 = vunpack.c.l.b16 %v6214_v58  ;;  %v6220_v58 = vld [vmem:[#allocation25_spill] sm:$0xff] }
  0xf5   : > { %v1581_v53 = vpop.permute.xlu1 %1580 }
  0xf6   : > { %6201 = vst [vmem:[#allocation38_spill] sm:$0xff] %v4717_v21  ;;  %v4757_v59 = vpack.c.b16 %v6215_v9, %v6213_v0  ;;  %v6221_v9 = vunpack.c.l.b16 %v6220_v58 }
  0xf7   : > { %1860 = vrot.lane.b32.xlu0 %v4705_v55, %s3138_s24  ;;  %v4738_v55 = vpack.c.b16 %v6205_v7, %v6203_v46  ;;  %v1180_v46 = vrot.slane %v4606_v8, 5 }
  0xf8   : > { %1873 = vrot.lane.b32.xlu1 %v4717_v21, %s3139_s25  ;;  %v6209_v21 = vunpack.c.l.b16 %v6208_v32  ;;  %v3045_v32 = vld [vmem:[%s4762_s19 + $0x38] sm:$0xff] }
  0xf9   : > { %1847 = vrot.lane.b32.xlu2 %v4711_v23, %s3137_s23  ;;  %v1699_v23 = vsel %vm5946_vm9, %v4265_v13, %v6207_v31  ;;  %v1190_v31 = vor.u32 %v1189_v57, %v1188_v11  ;;  %v6216_v11 = vld [vmem:[#allocation52_spill] sm:$0xff]  ;;  %2643 = vmatpush.bf16.msra.mxu0 %v3045_v32 }
  0xfa   : > { %v4749_v30 = vpack.c.b16 %v6211_v47, %v6209_v21  ;;  %v1709_v7 = vsel %vm5947_vm10, %v1699_v23, %v4362_v27  ;;  %v1185_v27 = vrot.slane %v1184_v50, 4  ;;  %v6217_v50 = vunpack.c.l.b16 %v6216_v11 }
  0xfb   : > { %v1718_v60 = vsel %vm1712_vm11, %v1709_v7, %v4378_v42  ;;  %v1583_v23 = vpop.permute.xlu2 %1582  ;;  %v4770_v47 = vpop.permute.xlu0 %1578  ;;  %v2926_v42 = vrot.slane %v4569_v16, 9  ;;  %v6219_v7 = vunpack.c.l.b16 %v6218_v34  ;;  %v6224_v11 = vunpack.c.l.b16 %v3790_v62  ;;  %v4813_v34 = vld [vmem:[%s3201_s22 + $0xf0] sm:$0xf] }
  0xfc   : > { %v1727_v21 = vsel %vm1721_vm12, %v1718_v60, %v4441_v45  ;;  %v4789_v0 = vsel %vm3711_vm8, %v1185_v27, %v1190_v31  ;;  %v6222_v60 = vld [vmem:[#allocation45_spill] sm:$0xff] }
  0xfd   : > { %v1736_v57 = vsel %vm1730_vm13, %v1727_v21, %v4583_v12  ;;  %v1878_v37 = vpack.c.b16 %v6219_v7, %v6217_v50  ;;  %v4791_v8 = vpop.permute.xlu1 %1598  ;;  %v6223_v12 = vunpack.c.l.b16 %v6222_v60  ;;  %v6225_v50 = vunpack.c.l.b16 %v3758_v52  ;;  %v6227_v52 = vld [vmem:[#allocation95_spill] sm:$0xff] }
  0xfe   : > { %v1745_v45 = vsel %vm1739_vm14, %v1736_v57, %v4608_v41  ;;  %v4803_v41 = vsel %vm3523_vm5, %v2926_v42, %v1180_v46  ;;  %v6226_v57 = vld [vmem:[#allocation85_spill] sm:$0xff]  ;;  %v5942_v62 = vunpack.c.l.b16 %v4789_v0 }
  0xff   : > { %1871 = vrot.lane.b32.xlu0 %v4738_v55, %s3139_s25  ;;  %v1865_v21 = vpack.c.b16 %v6223_v12, %v6221_v9  ;;  %v1891_v32 = vpack.c.b16 %v6225_v50, %v6224_v11  ;;  %v1702_v27 = vsel %vm5946_vm9, %v4369_v18, %v6226_v57  ;;  %v1754_v31 = vsel %vm1748_vm15, %v1745_v45, %v4644_v44  ;;  %v3044_v45 = vld [vmem:[%s4762_s19 + $0x30] sm:$0xff]  ;;  %v6228_v9 = vld [vmem:[#allocation59_spill] sm:$0xff] }
 0x100   : > { %1884 = vrot.lane.b32.xlu1 %v4757_v59, %s3140_s26  ;;  %v1711_v7 = vsel %vm5947_vm10, %v1702_v27, %v6227_v52  ;;  %v1763_v42 = vsel %vm5950_vm0, %v1754_v31, %v1561_v26  ;;  %v5944_v46 = vunpack.c.l.b16 %v4803_v41  ;;  %v6229_v60 = vunpack.c.l.b16 %v6228_v9  ;;  %2644 = vmatpush.bf16.msra.mxu0 %v3044_v45 }
 0x101   : > { %1858 = vrot.lane.b32.xlu2 %v4749_v30, %s3138_s24  ;;  %v1772_v44 = vsel %vm5949_vm1, %v1763_v42, %v1581_v53  ;;  %v1720_v58 = vsel %vm1712_vm11, %v1711_v7, %v4397_v2  ;;  %v3043_v53 = vld [vmem:[%s4762_s19 + $0x28] sm:$0xff]  ;;  %v6232_v52 = vunpack.c.l.b16 %v3845_v33  ;;  %v3042_v42 = vld [vmem:[%s4762_s19 + $0x20] sm:$0xff]  ;;  %v6234_v45 = vunpack.c.l.b16 %v3842_v29 }
 0x102   : > { %v4830_v26 = vpack.c.b16 %v5942_v62, %v6229_v60  ;;  %v1729_v11 = vsel %vm1721_vm12, %v1720_v58, %v4547_v40  ;;  %v5940_v9 = vshll.u32 %v4813_v34, 16  ;;  %v3041_v60 = vld [vmem:[%s4762_s19 + $0x18] sm:$0xff]  ;;  %v6250_v62 = vld [vmem:[#allocation64_spill] sm:$0xff] }
 0x103   : > { %v1738_v2 = vsel %vm1730_vm13, %v1729_v11, %v4558_v20 }
 0x104   : > { %2645 = vmatpush.bf16.msra.mxu0 %v3043_v53  ;;  %v1747_v20 = vsel %vm1739_vm14, %v1738_v2, %v4603_v1  ;;  %v5941_v1 = vshrl.u32 %v4813_v34, 16  ;;  %v6235_v53 = vld [vmem:[#allocation42_spill] sm:$0xff] }
 0x105   : > { %v4848_v31 = vpop.permute.xlu1 %1616  ;;  %v1756_v7 = vsel %vm1748_vm15, %v1747_v20, %v4691_v24  ;;  %v4873_v24 = vld [vmem:[%s3201_s22 + $0x148] sm:$0xf]  ;;  %v6236_v11 = vunpack.c.l.b16 %v6235_v53 }
 0x106   : > { %v1601_v12 = vpop.permute.xlu2 %1600  ;;  %v1765_v33 = vsel %vm5950_vm0, %v1756_v7, %v4697_v14  ;;  %v6237_v14 = vld [vmem:[#allocation56_spill] sm:$0xff] }
 0x107   : > { %1882 = vrot.lane.b32.xlu0 %v1878_v37, %s3140_s26  ;;  %v5939_v37 = vunpack.c.l.b16 %v4813_v34  ;;  %v4838_v50 = vsel %vm5948_vm3, %v1772_v44, %v1601_v12  ;;  %v6233_v44 = vunpack.c.l.b16 %v3907_v28  ;;  %v1774_v12 = vsel %vm5949_vm1, %v1765_v33, %v1583_v23 }
 0x108   : > { %1895 = vrot.lane.b32.xlu1 %v1891_v32, %s3141_s27  ;;  %v6230_v32 = vld [vmem:[#allocation30_spill] sm:$0xff]  ;;  %2646 = vmatpush.bf16.msra.mxu0 %v3042_v42  ;;  %v6238_v2 = vunpack.c.l.b16 %v6237_v14  ;;  %v1207_v42 = vshrl.u32 %v4873_v24, 16  ;;  %v1210_v33 = vshll.u32 %v4873_v24, 16 }
 0x109   : > { %1869 = vrot.lane.b32.xlu2 %v1865_v21, %s3139_s25  ;;  %v4832_v21 = vpop.permute.xlu0 %1596  ;;  %v6231_v57 = vunpack.c.l.b16 %v6230_v32  ;;  %v1894_v40 = vpack.c.b16 %v5939_v37, %v6232_v52  ;;  %v1893_v58 = vpack.c.b16 %v6234_v45, %v6233_v44  ;;  %v1195_v45 = vrot.slane %v5941_v1, 4  ;;  %v6246_v37 = vld [vmem:[#allocation47_spill] sm:$0xff] }
 0x10a   : > { %v4881_v32 = vpack.c.b16 %v6238_v2, %v6236_v11  ;;  %v6244_v11 = vld [vmem:[#allocation54_spill] sm:$0xff] }
 0x10b   : > { %v4846_v27 = vpack.c.b16 %v5944_v46, %v6231_v57  ;;  %v6239_v57 = vld [vmem:[#allocation55_spill] sm:$0xff]  ;;  %v6245_v14 = vunpack.c.l.b16 %v6244_v11 }
 0x10c   : > { %v6240_v52 = vunpack.c.l.b16 %v6239_v57  ;;  %2647 = vmatpush.bf16.msra.mxu0 %v3041_v60  ;;  %v3040_v60 = vld [vmem:[%s4762_s19 + $0x10] sm:$0xff]  ;;  %v1212_v57 = vrot.slane %v1210_v33, 5  ;;  %v6258_v46 = vld [vmem:[#allocation71_spill] sm:$0xff] }
 0x10f   : > { %1888 = vrot.lane.b32.xlu0 %v4830_v26, %s3140_s26 }
 0x110   : > { %1901 = vrot.lane.b32.xlu1 %v1894_v40, %s3141_s27  ;;  %v6241_v40 = vunpack.c.l.b16 %v3873_v6  ;;  %v1198_v6 = vrot.slane %v5940_v9, 5  ;;  %2648 = vmatpush.bf16.msra.mxu0 %v3040_v60  ;;  %v6247_v9 = vunpack.c.l.b16 %v6246_v37  ;;  %v3038_v37 = vld [vmem:[%s4762_s19] sm:$0xff] }
 0x111   : > { %1875 = vrot.lane.b32.xlu2 %v4846_v27, %s3139_s25  ;;  %v4883_v29 = vpop.permute.xlu2 %1618  ;;  %v1603_v28 = vpop.permute.xlu0 %1602 }
 0x112   : > { %v1906_v20 = vpack.c.b16 %v6241_v40, %v6240_v52  ;;  %v1783_v7 = vsel %vm5948_vm3, %v1774_v12, %v1603_v28  ;;  %v1623_v23 = vpop.permute.xlu1 %1622  ;;  %v6242_v12 = vld [vmem:[#allocation63_spill] sm:$0xff]  ;;  %v1209_v28 = vrot.slane %v1207_v42, 4  ;;  %v1199_v52 = vor.u32 %v1198_v6, %v1195_v45 }
 0x113   : > { %v1792_v44 = vsel %vm1784_vm4, %v1783_v7, %v1623_v23  ;;  %v6243_v53 = vunpack.c.l.b16 %v6242_v12  ;;  %v4911_v7 = vld [vmem:[%s3201_s22 + $0x14c] sm:$0x3]  ;;  %v6249_v12 = vld [vmem:[#allocation69_spill] sm:$0xff] }
 0x114   : > { %v3039_v23 = vld [vmem:[%s4762_s19 + $0x8] sm:$0xff]  ;;  %v1918_v11 = vpack.c.b16 %v6250_v62, %v6249_v12  ;;  %v1213_v33 = vor.u32 %v1212_v57, %v1209_v28  ;;  %v1216_v45 = vshll.u32 %v4911_v7, 16  ;;  %v1200_v6 = vrot.slane %v1199_v52, 4  ;;  %v6251_v62 = vld [vmem:[#allocation76_spill] sm:$0xff] }
 0x115   : > { %v1905_v2 = vpack.c.b16 %v6245_v14, %v6243_v53  ;;  %2649 = vmatpush.bf16.msra.mxu0 %v3039_v23  ;;  %v6252_v53 = vld [vmem:[#allocation67_spill] sm:$0xff]  ;;  %v6253_v52 = vunpack.c.l.b16 %v3814_v51  ;;  %v6254_v23 = vld [vmem:[#allocation62_spill] sm:$0xff] }
 0x116   : > { %v1917_v14 = vpack.c.b16 %v6252_v53, %v6251_v62  ;;  %v6260_v62 = vld [vmem:[#allocation87_spill] sm:$0xff] }
 0x117   : > { %1899 = vrot.lane.b32.xlu0 %v1893_v58, %s3141_s27  ;;  %v4901_v58 = vld [vmem:[%s3201_s22 + $0xf4] sm:$0x3] }
 0x118   : > { %1912 = vrot.lane.b32.xlu1 %v1906_v20, %s3142_s28  ;;  %v5943_v40 = vshll.u32 %v4901_v58, 16  ;;  %v6248_v20 = vunpack.c.l.b16 %v3898_v15  ;;  %v3112_v15 = vld [vmem:[%s3201_s22] sm:$0xf] }
 0x119   : > { %1886 = vrot.lane.b32.xlu2 %v4881_v32, %s3140_s26  ;;  %2650 = vmatpush.bf16.msra.mxu0 %v3038_v37  ;;  %v4932_v28 = vpop.permute.xlu0 %1620 }
 0x11a   : > { %v1892_v1 = vpack.c.b16 %v6248_v20, %v6247_v9  ;;  %v1204_v60 = vrot.slane %v5943_v40, 5  ;;  %v1392_v9 = vunpack.c.l.b16 %v3112_v15  ;;  %v1218_v20 = vrot.slane %v1216_v45, 5 }
 0x11b   : > { %v6256_v15 = vunpack.c.l.b16 %v4436_v10  ;;  %v1903_v10 = vunpack.c.l.b16 %v4873_v24 }
 0x11c   : > { %v1205_v57 = vsel %vm3338_vm2, %v1200_v6, %v1204_v60  ;;  %v6259_v60 = vld [vmem:[#allocation82_spill] sm:$0xff] }
 0x11d   : > { %v4921_v42 = vpop.permute.xlu2 %1636  ;;  %v1400_v40 = vpack.c.b16 %v6256_v15, %v1392_v9  ;;  %v6265_v15 = vld [vmem:[#allocation98_spill] sm:$0xff] }
 0x11f   : > { %1910 = vrot.lane.b32.xlu0 %v1905_v2, %s3142_s28  ;;  %v1214_v2 = vrot.slane %v1213_v33, 4  ;;  %v4945_v33 = vunpack.c.l.b16 %v1205_v57  ;;  %v1693_v37 = vsel %vm5946_vm9, %v1400_v40, %v6259_v60  ;;  %v6263_v40 = vld [vmem:[#allocation81_spill] sm:$0xff] }
 0x120   : > { %1923 = vrot.lane.b32.xlu1 %v1918_v11, %s3143_s29  ;;  %v6257_v11 = vld [vmem:[#allocation74_spill] sm:$0xff] }
 0x121   : > { %1897 = vrot.lane.b32.xlu2 %v1892_v1, %s3141_s27  ;;  %v6255_v1 = vunpack.c.l.b16 %v6254_v23  ;;  %v1930_v16 = vpack.c.b16 %v6258_v46, %v6257_v11  ;;  %v1219_v45 = vsel %vm3338_vm2, %v1214_v2, %v1218_v20  ;;  %v4957_v46 = vpop.permute.xlu1 %1640  ;;  %v1920_v53 = vpack.c.b16 %v4945_v33, %v6260_v62  ;;  %v4969_v57 = vpop.permute.xlu0 %1638  ;;  %v6266_v11 = vld [vmem:[#allocation79_spill] sm:$0xff] }
 0x122   : > { %v4959_v9 = vunpack.c.l.b16 %v1219_v45  ;;  %v1932_v45 = vpack.c.b16 %v6266_v11, %v6265_v15  ;;  %v6268_v62 = vld [vmem:[#allocation83_spill] sm:$0xff]  ;;  %v6277_v11 = vld [vmem:[#allocation88_spill] sm:$0xff] }
 0x123   : > { %v1904_v12 = vpack.c.b16 %v6255_v1, %v6253_v52  ;;  %v6264_v52 = vld [vmem:[#allocation101_spill] sm:$0xff]  ;;  %v6275_v15 = vld [vmem:[#allocation107_spill] sm:$0xff] }
 0x127   : > { %1921 = vrot.lane.b32.xlu0 %v1917_v14, %s3143_s29  ;;  %v1643_v6 = vpop.permute.xlu2 %1642  ;;  %v6261_v14 = vld [vmem:[#allocation78_spill] sm:$0xff] }
 0x128   : > { %v4951_v51 = vsel %vm1793_vm6, %v1792_v44, %v1643_v6  ;;  %1934 = vrot.lane.b32.xlu1 %v1930_v16, %s3144_s30  ;;  %v1705_v2 = vsel %vm5947_vm10, %v1693_v37, %v6261_v14  ;;  %v6262_v44 = vunpack.c.l.b16 %v3883_v5  ;;  %v1933_v16 = vpack.c.b16 %v4959_v9, %v6263_v40  ;;  %v6267_v37 = vld [vmem:[#allocation66_spill] sm:$0xff]  ;;  %v6269_v14 = vld [vmem:[#allocation91_spill] sm:$0xff] }
 0x129   : > { %1908 = vrot.lane.b32.xlu2 %v1904_v12, %s3142_s28  ;;  %v1714_v23 = vsel %vm1712_vm11, %v1705_v2, %v6264_v52  ;;  %v6270_v2 = vunpack.c.l.b16 %v6269_v14  ;;  %v6274_v52 = vld [vmem:[#allocation108_spill] sm:$0xff] }
 0x12a   : > { %v1907_v20 = vpack.c.b16 %v1903_v10, %v6262_v44  ;;  %v1723_v1 = vsel %vm1721_vm12, %v1714_v23, %v4486_v38  ;;  %v6280_v14 = vld [vmem:[#allocation72_spill] sm:$0xff] }
 0x12b   : > { %v1732_v5 = vsel %vm1730_vm13, %v1723_v1, %v4490_v3  ;;  %v6271_v3 = vld [vmem:[#allocation80_spill] sm:$0xff] }
 0x12c   : > { %v1741_v60 = vsel %vm1739_vm14, %v1732_v5, %v4560_v61  ;;  %v6272_v44 = vunpack.c.l.b16 %v6271_v3  ;;  %v6273_v61 = vld [vmem:[#allocation94_spill] sm:$0xff] }
 0x12d   : > { %v1750_v38 = vsel %vm1748_vm15, %v1741_v60, %v4658_v49  ;;  %v1696_v23 = vsel %vm5946_vm9, %v6274_v52, %v6273_v61  ;;  %vm1811_vm9 = vcmask 916480   ;;  %v1224_v61 = vrot.slane %v4901_v58, 5 }
 0x12e   : > { %v1759_v40 = vsel %vm5950_vm0, %v1750_v38, %v4669_v19  ;;  %v6276_v19 = vunpack.c.l.b16 %v6275_v15 }
 0x12f   : > { %1927 = vrot.lane.b32.xlu0 %v1920_v53, %s3143_s29  ;;  %v1919_v53 = vpack.c.b16 %v6268_v62, %v6267_v37  ;;  %v1768_v49 = vsel %vm5949_vm1, %v1759_v40, %v4721_v48  ;;  %v6281_v48 = vld [vmem:[#allocation96_spill] sm:$0xff] }
 0x130   : > { %1940 = vrot.lane.b32.xlu1 %v1933_v16, %s3144_s30  ;;  %v1777_v1 = vsel %vm5948_vm3, %v1768_v49, %v4832_v21  ;;  %v6283_v49 = vunpack.c.l.b16 %v4451_v54 }
 0x131   : > { %1914 = vrot.lane.b32.xlu2 %v1907_v20, %s3142_s28  ;;  %v1945_v20 = vpack.c.b16 %v6272_v44, %v6270_v2  ;;  %v1786_v37 = vsel %vm1784_vm4, %v1777_v1, %v4848_v31  ;;  %v1931_v2 = vpack.c.b16 %v6281_v48, %v6280_v14  ;;  %v6284_v1 = vld [vmem:[#allocation102_spill] sm:$0xff] }
 0x132   : > { %v1659_v6 = vpop.permute.xlu1 %1658  ;;  %v1795_v44 = vsel %vm1793_vm6, %v1786_v37, %v4921_v42  ;;  %v2927_v42 = vrot.slane %v4813_v34, 9  ;;  %v6285_v15 = vunpack.c.l.b16 %v6284_v1  ;;  %v6297_v1 = vld [vmem:[#allocation17_spill] sm:$0xff] }
 0x133   : > { %v4982_v12 = vpop.permute.xlu2 %1660 }
 0x136   : > { %v1657_v16 = vpop.permute.xlu0 %1656 }
 0x137   : > { %1938 = vrot.lane.b32.xlu0 %v1932_v45, %s3144_s30  ;;  %v6278_v45 = vunpack.c.l.b16 %v6277_v11  ;;  %v1804_v31 = vsel %vm1802_vm7, %v1795_v44, %v1657_v16 }
 0x138   : > { %1951 = vrot.lane.b32.xlu1 %v1945_v20, %s3145_s5 }
 0x139   : > { %1925 = vrot.lane.b32.xlu2 %v1919_v53, %s3143_s29  ;;  %v1944_v60 = vpack.c.b16 %v6278_v45, %v6276_v19  ;;  %v6279_v53 = vld [vmem:[#allocation92_spill] sm:$0xff]  ;;  %v1956_v19 = vpack.c.b16 %v6285_v15, %v6283_v49  ;;  %v6296_v49 = vld [vmem:[#allocation51_spill] sm:$0xff]  ;;  %v6298_v15 = vld [vmem:[#allocation13_spill] sm:$0xff] }
 0x13a   : > { %v1670_v62 = vpop.permute.xlu1 %1669  ;;  %v1707_v38 = vsel %vm5947_vm10, %v1696_v23, %v6279_v53  ;;  %vm1820_vm10 = vcmask 982016  }
 0x13b   : > { %v1672_v5 = vpop.permute.xlu2 %1671  ;;  %v1716_v3 = vsel %vm1712_vm11, %v1707_v38, %v4427_v17  ;;  %v1813_v20 = vsel %vm1811_vm9, %v1804_v31, %v1670_v62  ;;  %v6288_v62 = vld [vmem:[#allocation105_spill] sm:$0xff]  ;;  %v6291_v31 = vld [vmem:[#allocation84_spill] sm:$0xff] }
 0x13c   : > { %v1725_v21 = vsel %vm1721_vm12, %v1716_v3, %v4433_v39  ;;  %v6282_v39 = vld [vmem:[#allocation49_spill] sm:$0xff]  ;;  %v6289_v53 = vunpack.c.l.b16 %v6288_v62 }
 0x13d   : > { %v1734_v17 = vsel %vm1730_vm13, %v1725_v21, %v4497_v36  ;;  %v6290_v3 = vld [vmem:[#allocation65_spill] sm:$0xff] }
 0x13e   : > { %v1743_v16 = vsel %vm1739_vm14, %v1734_v17, %v4629_v43  ;;  %v5053_v43 = vsel %vm3523_vm5, %v2927_v42, %v1224_v61  ;;  %v6293_v17 = vld [vmem:[#allocation116_spill] sm:$0xff] }
 0x13f   : > { %1949 = vrot.lane.b32.xlu0 %v1944_v60, %s3145_s5  ;;  %v1752_v11 = vsel %vm1748_vm15, %v1743_v16, %v4638_v35  ;;  %v6286_v60 = vld [vmem:[#allocation75_spill] sm:$0xff]  ;;  %v6295_v61 = vshll.u32 %v6293_v17, 16 }
 0x140   : > { %2153 = vrot.lane.b32.xlu1 %v6282_v39, %s3137_s23  ;;  %v6287_v37 = vunpack.c.l.b16 %v6286_v60  ;;  %v1761_v54 = vsel %vm5950_vm0, %v1752_v11, %v4683_v63  ;;  %v6294_v39 = vshrl.u32 %v6293_v17, 16  ;;  %v6299_v60 = vld [vmem:[#allocation109_spill] sm:$0xff] }
 0x141   : > { %1936 = vrot.lane.b32.xlu2 %v1931_v2, %s3144_s30  ;;  %v5028_v40 = vpop.permute.xlu0 %1662  ;;  %v1770_v35 = vsel %vm5949_vm1, %v1761_v54, %v4770_v47  ;;  %v1942_v2 = vunpack.c.l.b16 %v5053_v43  ;;  %v1148_v16 = vrot.slane %v6295_v61, 5  ;;  %v6302_v54 = vld [vmem:[#allocation73_spill] sm:$0xff] }
 0x142   : > { %v5045_v45 = vpop.permute.xlu1 %1675  ;;  %v1943_v38 = vpack.c.b16 %v6289_v53, %v6287_v37  ;;  %v1779_v14 = vsel %vm5948_vm3, %v1770_v35, %v4791_v8  ;;  %v1145_v42 = vrot.slane %v6294_v39, 4  ;;  %vm6300_vm3 = vcmask 64512  }
 0x143   : > { %v1683_v23 = vpop.permute.xlu2 %1682  ;;  %v1788_v63 = vsel %vm1784_vm4, %v1779_v14, %v4883_v29  ;;  %v6303_v14 = vld [vmem:[#allocation50_spill] sm:$0xff]  ;;  %vm6307_vm1 = vmmov %vm6300_vm3 }
 0x144   : > { %v1822_v36 = vsel %vm1820_vm10, %v1813_v20, %v1683_v23  ;;  %v1797_v47 = vsel %vm1793_vm6, %v1788_v63, %v4969_v57  ;;  %v6292_v20 = vunpack.c.l.b16 %v6291_v31  ;;  %v1149_v11 = vor.u32 %v1148_v16, %v1145_v42  ;;  %v6304_v63 = vld [vmem:[#allocation9_spill] sm:$0xff] }
 0x145   : > { %2651 = vmatmul.bf16.vlgmr.msra.gmra.mxu0 %v1822_v36  ;;  %v1806_v23 = vsel %vm1802_vm7, %v1797_v47, %v1659_v6  ;;  %v6305_v47 = vld [vmem:[#allocation8_spill] sm:$0xff] }
 0x146   : > { %v1946_v8 = vpack.c.b16 %v1942_v2, %v6292_v20  ;;  %v1815_v29 = vsel %vm1811_vm9, %v1806_v23, %v1672_v5  ;;  %v1150_v53 = vrot.slane %v1149_v11, 4  ;;  %v6301_v5 = vshll.u32 %v4634_v25, 16  ;;  %v6313_v11 = vld [vmem:[#allocation70_spill] sm:$0xff] }
 0x147   : > { %1960 = vrot.lane.b32.xlu0 %v1956_v19, %s3146_s6  ;;  %v1835_v19 = vpack.c.b16 %v6298_v15, %v6297_v1  ;;  %v6306_v31 = vpack.c.b16 %v6304_v63, %v6305_v47  ;;  %v1790_v23 = vsel %vm1784_vm4, %v4838_v50, %v4932_v28  ;;  %v6322_v63 = vld [vmem:[#allocation113_spill] sm:$0xff] }
 0x148   : > { %2183 = vrot.lane.b32.xlu1 %v6290_v3, %s3140_s26  ;;  %v6323_v47 = vunpack.c.l.b16 %v6322_v63 }
 0x149   : > { %1947 = vrot.lane.b32.xlu2 %v1943_v38, %s3145_s5  ;;  %v1674_v48 = vpop.permute.xlu0 %1673  ;;  %v1154_v38 = vrot.slane %v6301_v5, 5  ;;  %v6316_v5 = vld [vmem:[#allocation14_spill] sm:$0xff] }
 0x14a   : > { %v1687_v44 = vpop.permute.xlu1 %1686 }
 0x14b   : > { %v5066_v21 = vpop.permute.xlu2 %1688  ;;  %v1155_v3 = vsel %vm3338_vm2, %v1150_v53, %v1154_v38  ;;  %v6317_v38 = vld [vmem:[#allocation10_spill] sm:$0xff] }
 0x14c   : > { %v5106_v61 = vunpack.c.l.b16 %v1155_v3 }
 0x14f   : > { %2173 = vrot.lane.b32.xlu0 %v6296_v49, %s3139_s25  ;;  %v1799_v49 = vsel %vm1793_vm6, %v1790_v23, %v4957_v46  ;;  %v6326_v23 = vld [vmem:[#allocation128_spill] sm:$0xff] }
 0x150   : > { %2213 = vrot.lane.b32.xlu1 %v6299_v60, %s3143_s29  ;;  %v6314_v60 = vld [vmem:[#allocation130_spill] sm:$0xff] }
 0x151   : > { %1953 = vrot.lane.b32.xlu2 %v1946_v8, %s3145_s5  ;;  %v1685_v57 = vpop.permute.xlu0 %1684  ;;  %v6308_v8 = vld [vmem:[#allocation129_spill] sm:$0xff] }
 0x152   : > { %v1825_v36 = vsel %vm1820_vm10, %v1815_v29, %v1685_v57  ;;  %v1846_v62 = vpop.permute.xlu1 %1845  ;;  %v6311_v29 = vld [vmem:[#allocation112_spill] sm:$0xff]  ;;  %v6312_v57 = vld [vmem:[#allocation11_spill] sm:$0xff] }
 0x153   : > { %v1848_v37 = vpop.permute.xlu2 %1847  ;;  %v2026_v6 = vsel %vm6300_vm3, %v1835_v19, %v1846_v62  ;;  %vm6309_vm3 = vcmask 130048   ;;  %v5118_v1 = vpack.c.b16 %v5106_v61, %v6312_v57 }
 0x154   : > { %vm6310_vm0 = vmmov %vm6309_vm3 }
 0x155   : > { %2656 = vmatmul.bf16.gmra.mxu0 %v1825_v36  ;;  %v1808_v36 = vsel %vm1802_vm7, %v1799_v49, %v4982_v12 }
 0x156   : > { %v1817_v50 = vsel %vm1811_vm9, %v1808_v36, %v1674_v48 }
 0x157   : > { %2203 = vrot.lane.b32.xlu0 %v6302_v54, %s3142_s28  ;;  %v5133_v54 = vpack.c.b16 %v6317_v38, %v6316_v5 }
 0x158   : > { %2243 = vrot.lane.b32.xlu1 %v6308_v8, %s3146_s6 }
 0x159   : > { %v1844_v35 = vpop.permute.xlu0 %1843  ;;  %2163 = vrot.lane.b32.xlu2 %v6303_v14, %s3138_s24  ;;  %v6320_v14 = vld [vmem:[#allocation106_spill] sm:$0xff] }
 0x15a   : > { %v2023_v20 = vsel %vm6307_vm1, %v6306_v31, %v1844_v35  ;;  %v1857_v42 = vpop.permute.xlu1 %1856  ;;  %v6324_v31 = vld [vmem:[#allocation110_spill] sm:$0xff] }
 0x15b   : > { %v1859_v25 = vpop.permute.xlu2 %1858  ;;  %v2034_v16 = vsel %vm6310_vm0, %v2023_v20, %v1857_v42  ;;  %vm6315_vm0 = vmmov %vm6307_vm1  ;;  %v6325_v20 = vunpack.c.l.b16 %v6324_v31  ;;  %v1810_v42 = vsel %vm1802_vm7, %v4951_v51, %v5028_v40  ;;  %v6328_v40 = vld [vmem:[#allocation7_spill] sm:$0xff] }
 0x15c   : > { %v2036_v39 = vsel %vm6309_vm3, %v2026_v6, %v1859_v25  ;;  %v1828_v6 = vsel %vm1820_vm10, %v1817_v50, %v1687_v44  ;;  %vm6318_vm1 = vmmov %vm6309_vm3 }
 0x15d   : > { %vm6319_vm3 = vmmov %vm6315_vm0  ;;  %v1969_v8 = vpack.c.b16 %v6325_v20, %v6323_v47 }
 0x15e   : > { %v2029_v48 = vsel %vm6319_vm3, %v5133_v54, %v1848_v37 }
 0x15f   : > { %2233 = vrot.lane.b32.xlu0 %v6311_v29, %s3145_s5  ;;  %v6327_v29 = vld [vmem:[#allocation37_spill] sm:$0xff] }
 0x160   : > { %2273 = vrot.lane.b32.xlu1 %v6314_v60, %s3149_s9  ;;  %v6329_v60 = vld [vmem:[#allocation22_spill] sm:$0xff] }
 0x161   : > { %v1850_v15 = vpop.permute.xlu0 %1849  ;;  %2193 = vrot.lane.b32.xlu2 %v6313_v11, %s3141_s27 }
 0x162   : > { %v2032_v46 = vsel %vm6315_vm0, %v5118_v1, %v1850_v15  ;;  %v1863_v53 = vpop.permute.xlu1 %1862  ;;  %vm6321_vm0 = vmmov %vm6318_vm1 }
 0x163   : > { %v1870_v28 = vpop.permute.xlu2 %1869  ;;  %v2040_v12 = vsel %vm6318_vm1, %v2032_v46, %v1863_v53  ;;  %vm6344_vm1 = vcmask 523264  }
 0x164   : > { %v2042_v62 = vsel %vm1712_vm11, %v2034_v16, %v1870_v28  ;;  %vm6345_vm3 = vmmov %vm6344_vm1 }
 0x165   : > { %2661 = vmatmul.bf16.gmra.mxu0 %v1828_v6  ;;  %v6330_v6 = vld [vmem:[#allocation43_spill] sm:$0xff] }
 0x167   : > { %2263 = vrot.lane.b32.xlu0 %v1835_v19, %s3148_s8 }
 0x168   : > { %2293 = vrot.lane.b32.xlu1 %v4738_v55, %s3151_s11  ;;  %v1819_v55 = vsel %vm1811_vm9, %v1810_v42, %v5045_v45  ;;  %v6337_v42 = vld [vmem:[#allocation126_spill] sm:$0xff] }
 0x169   : > { %v1861_v35 = vpop.permute.xlu0 %1860  ;;  %2223 = vrot.lane.b32.xlu2 %v6320_v14, %s3144_s30  ;;  %v1831_v11 = vsel %vm1820_vm10, %v1819_v55, %v5066_v21 }
 0x16a   : > { %v2038_v3 = vsel %vm6321_vm0, %v2029_v48, %v1861_v35  ;;  %v1874_v25 = vpop.permute.xlu1 %1873  ;;  %v6332_v35 = vld [vmem:[#allocation58_spill] sm:$0xff]  ;;  %vm6353_vm0 = vmmov %vm6344_vm1 }
 0x16b   : > { %v1876_v44 = vpop.permute.xlu2 %1875  ;;  %v2046_v37 = vsel %vm1712_vm11, %v2038_v3, %v1874_v25  ;;  %v6333_v3 = vld [vmem:[#allocation19_spill] sm:$0xff]  ;;  %v6336_v25 = vld [vmem:[#allocation60_spill] sm:$0xff] }
 0x16c   : > { %v2048_v19 = vsel %vm1712_vm11, %v2040_v12, %v1876_v44  ;;  %v6334_v44 = vld [vmem:[#allocation103_spill] sm:$0xff] }
 0x16f   : > { %1973 = vrot.lane.b32.xlu0 %v1969_v8, %s3147_s7  ;;  %v6335_v8 = vld [vmem:[#allocation93_spill] sm:$0xff] }
 0x170   : > { %2155 = vrot.lane.b32.xlu1 %v6327_v29, %s3137_s23  ;;  %v6338_v29 = vld [vmem:[#allocation104_spill] sm:$0xff] }
 0x171   : > { %v1872_v16 = vpop.permute.xlu0 %1871  ;;  %2253 = vrot.lane.b32.xlu2 %v6326_v23, %s3147_s7 }
 0x172   : > { %v2044_v49 = vsel %vm1712_vm11, %v2036_v39, %v1872_v16  ;;  %v1885_v36 = vpop.permute.xlu1 %1884 }
 0x173   : > { %v1887_v57 = vpop.permute.xlu2 %1886  ;;  %v2052_v51 = vsel %vm1721_vm12, %v2044_v49, %v1885_v36 }
 0x174   : > { %v2054_v15 = vsel %vm1721_vm12, %v2046_v37, %v1887_v57  ;;  %v6339_v57 = vunpack.c.l.b16 %v6338_v29  ;;  %v6361_v29 = vld [vmem:[#allocation18_spill] sm:$0xff] }
 0x175   : > { %2666 = vmatmul.bf16.gmra.mxu0 %v1831_v11 }
 0x177   : > { %1993 = vrot.lane.b32.xlu0 %v6328_v40, %s3149_s9 }
 0x178   : > { %2013 = vrot.lane.b32.xlu1 %v6329_v60, %s3151_s11 }
 0x179   : > { %v1883_v45 = vpop.permute.xlu0 %1882  ;;  %2283 = vrot.lane.b32.xlu2 %v4749_v30, %s3150_s10 }
 0x17a   : > { %v2050_v39 = vsel %vm1721_vm12, %v2042_v62, %v1883_v45  ;;  %v1896_v21 = vpop.permute.xlu1 %1895  ;;  %v6331_v62 = vld [vmem:[#allocation68_spill] sm:$0xff] }
 0x17b   : > { %v1898_v50 = vpop.permute.xlu2 %1897  ;;  %v2058_v46 = vsel %vm1730_vm13, %v2050_v39, %v1896_v21  ;;  %v6343_v45 = vld [vmem:[#allocation100_spill] sm:$0xff] }
 0x17c   : > { %v2060_v28 = vsel %vm1730_vm13, %v2052_v51, %v1898_v50  ;;  %v6342_v51 = vld [vmem:[#allocation124_spill] sm:$0xff] }
 0x17f   : > { %2165 = vrot.lane.b32.xlu0 %v6330_v6, %s3138_s24 }
 0x180   : > { %2195 = vrot.lane.b32.xlu1 %v6331_v62, %s3141_s27  ;;  %v6348_v62 = vld [vmem:[#allocation38_spill] sm:$0xff] }
 0x181   : > { %v1889_v53 = vpop.permute.xlu0 %1888  ;;  %1983 = vrot.lane.b32.xlu2 %v6274_v52, %s3148_s8 }
 0x182   : > { %v2056_v30 = vsel %vm1721_vm12, %v2048_v19, %v1889_v53  ;;  %v1902_v12 = vpop.permute.xlu1 %1901  ;;  %v6347_v53 = vld [vmem:[#allocation127_spill] sm:$0xff] }
 0x183   : > { %v1909_v5 = vpop.permute.xlu2 %1908  ;;  %v2064_v48 = vsel %vm1730_vm13, %v2056_v30, %v1902_v12 }
 0x184   : > { %v2066_v38 = vsel %vm1739_vm14, %v2058_v46, %v1909_v5  ;;  %v6346_v46 = vld [vmem:[#allocation27_spill] sm:$0xff] }
 0x187   : > { %2185 = vrot.lane.b32.xlu0 %v6332_v35, %s3140_s26 }
 0x188   : > { %2225 = vrot.lane.b32.xlu1 %v6334_v44, %s3144_s30 }
 0x189   : > { %v1900_v14 = vpop.permute.xlu0 %1899  ;;  %2003 = vrot.lane.b32.xlu2 %v6333_v3, %s3150_s10 }
 0x18a   : > { %v2062_v52 = vsel %vm1730_vm13, %v2054_v15, %v1900_v14  ;;  %v1913_v31 = vpop.permute.xlu1 %1912  ;;  %v6340_v15 = vld [vmem:[#allocation97_spill] sm:$0xff] }
 0x18b   : > { %v1915_v63 = vpop.permute.xlu2 %1914  ;;  %v2070_v20 = vsel %vm1739_vm14, %v2062_v52, %v1913_v31  ;;  %v6341_v11 = vunpack.c.l.b16 %v6340_v15  ;;  %v3061_v52 = vld [vmem:[%s4762_s19 + $0xb8] sm:$0xff] }
 0x18c   : > { %v2072_v47 = vsel %vm1739_vm14, %v2064_v48, %v1915_v63  ;;  %v6351_v48 = vld [vmem:[#allocation122_spill] sm:$0xff]  ;;  %2701 = vmatpush.bf16.msra.mxu2 %v3061_v52  ;;  %v3060_v63 = vld [vmem:[%s4762_s19 + $0xb0] sm:$0xff] }
 0x18d   : > { %v1957_v36 = vpack.c.b16 %v6341_v11, %v6339_v57  ;;  %v6352_v35 = vunpack.c.l.b16 %v6351_v48  ;;  %v3053_v11 = vld [vmem:[%s4762_s19 + $0x78] sm:$0xff]  ;;  %v6367_v48 = vld [vmem:[#allocation15_spill] sm:$0xff] }
 0x18e   : > { %2672 = vmatpush.bf16.msra.mxu1 %v3053_v11  ;;  %v6373_v11 = vld [vmem:[#allocation99_spill] sm:$0xff] }
 0x18f   : > { %2215 = vrot.lane.b32.xlu0 %v6335_v8, %s3143_s29 }
 0x190   : > { %2255 = vrot.lane.b32.xlu1 %v6337_v42, %s3147_s7  ;;  %2702 = vmatpush.bf16.msra.mxu2 %v3060_v63 }
 0x191   : > { %v1911_v19 = vpop.permute.xlu0 %1910  ;;  %2175 = vrot.lane.b32.xlu2 %v6336_v25, %s3139_s25 }
 0x192   : > { %v2068_v37 = vsel %vm1739_vm14, %v2060_v28, %v1911_v19  ;;  %v1924_v23 = vpop.permute.xlu1 %1923 }
 0x193   : > { %v1926_v55 = vpop.permute.xlu2 %1925  ;;  %v2076_v49 = vsel %vm1748_vm15, %v2068_v37, %v1924_v23  ;;  %v3059_v37 = vld [vmem:[%s4762_s19 + $0xa8] sm:$0xff] }
 0x194   : > { %v2078_v16 = vsel %vm1748_vm15, %v2070_v20, %v1926_v55  ;;  %v6355_v20 = vld [vmem:[#allocation34_spill] sm:$0xff]  ;;  %2703 = vmatpush.bf16.msra.mxu2 %v3059_v37  ;;  %v6359_v23 = vld [vmem:[#allocation3_spill] sm:$0xff]  ;;  %v6372_v37 = vld [vmem:[#allocation20_spill] sm:$0xff] }
 0x195   : > { %v3058_v55 = vld [vmem:[%s4762_s19 + $0xa0] sm:$0xff] }
 0x197   : > { %2245 = vrot.lane.b32.xlu0 %v6342_v51, %s3146_s6  ;;  %v6362_v51 = vld [vmem:[#allocation61_spill] sm:$0xff] }
 0x198   : > { %1962 = vrot.lane.b32.xlu1 %v1957_v36, %s3146_s6  ;;  %2704 = vmatpush.bf16.msra.mxu2 %v3058_v55  ;;  %v3057_v36 = vld [vmem:[%s4762_s19 + $0x98] sm:$0xff] }
 0x199   : > { %v1922_v40 = vpop.permute.xlu0 %1921  ;;  %2205 = vrot.lane.b32.xlu2 %v6343_v45, %s3142_s28  ;;  %v3056_v45 = vld [vmem:[%s4762_s19 + $0x90] sm:$0xff] }
 0x19a   : > { %v2074_v39 = vsel %vm1748_vm15, %v2066_v38, %v1922_v40  ;;  %v1935_v28 = vpop.permute.xlu1 %1934  ;;  %v6349_v38 = vld [vmem:[#allocation111_spill] sm:$0xff]  ;;  %v3052_v40 = vld [vmem:[%s4762_s19 + $0x70] sm:$0xff] }
 0x19b   : > { %v1937_v60 = vpop.permute.xlu2 %1936  ;;  %v5213_v21 = vsel %vm6345_vm3, %v2074_v39, %v1935_v28  ;;  %v6350_v12 = vunpack.c.l.b16 %v6349_v38  ;;  %vm6356_vm3 = vcmask 588800   ;;  %2673 = vmatpush.bf16.msra.mxu1 %v3052_v40  ;;  %v6365_v38 = vld [vmem:[#allocation23_spill] sm:$0xff] }
 0x19c   : > { %v2084_v50 = vsel %vm6344_vm1, %v2076_v49, %v1937_v60  ;;  %vm6354_vm1 = vmmov %vm6353_vm0  ;;  %2705 = vmatpush.bf16.msra.mxu2 %v3057_v36  ;;  %v6363_v60 = vld [vmem:[#allocation89_spill] sm:$0xff]  ;;  %v6374_v36 = vunpack.c.l.b16 %v6373_v11 }
 0x19d   : > { %v1970_v14 = vpack.c.b16 %v6352_v35, %v6350_v12  ;;  %v6368_v35 = vld [vmem:[#allocation119_spill] sm:$0xff] }
 0x19f   : > { %2275 = vrot.lane.b32.xlu0 %v6346_v46, %s3149_s9  ;;  %v3051_v46 = vld [vmem:[%s4762_s19 + $0x68] sm:$0xff] }
 0x1a0   : > { %2295 = vrot.lane.b32.xlu1 %v6348_v62, %s3151_s11  ;;  %2706 = vmatpush.bf16.msra.mxu2 %v3056_v45  ;;  %v3054_v62 = vld [vmem:[%s4762_s19 + $0x80] sm:$0xff] }
 0x1a1   : > { %v1928_v6 = vpop.permute.xlu0 %1927  ;;  %2235 = vrot.lane.b32.xlu2 %v6347_v53, %s3145_s5  ;;  %2674 = vmatpush.bf16.msra.mxu1 %v3051_v46  ;;  %v6364_v53 = vld [vmem:[#allocation57_spill] sm:$0xff]  ;;  %v5301_v46 = vld [vmem:[%s3201_s22 + $0xa0] sm:$0xf] }
 0x1a2   : > { %v2080_v30 = vsel %vm1748_vm15, %v2072_v47, %v1928_v6  ;;  %v1941_v3 = vpop.permute.xlu1 %1940  ;;  %v3055_v6 = vld [vmem:[%s4762_s19 + $0x88] sm:$0xff] }
 0x1a3   : > { %v5222_v5 = vpop.permute.xlu2 %1947  ;;  %v2088_v44 = vsel %vm6353_vm0, %v2080_v30, %v1941_v3  ;;  %vm6357_vm0 = vmmov %vm6356_vm3  ;;  %v3050_v30 = vld [vmem:[%s4762_s19 + $0x60] sm:$0xff]  ;;  %v3049_v3 = vld [vmem:[%s4762_s19 + $0x58] sm:$0xff] }
 0x1a4   : > { %2707 = vmatpush.bf16.msra.mxu2 %v3055_v6  ;;  %v5304_v6 = vld [vmem:[%s3201_s22 + $0xa4] sm:$0x3] }
 0x1a5   : > { %2675 = vmatpush.bf16.msra.mxu1 %v3050_v30 }
 0x1a7   : > { %1975 = vrot.lane.b32.xlu0 %v1970_v14, %s3147_s7 }
 0x1a8   : > { %2157 = vrot.lane.b32.xlu1 %v6355_v20, %s3137_s23  ;;  %2708 = vmatpush.bf16.msra.mxu2 %v3054_v62  ;;  %v5308_v62 = vld [vmem:[%s3201_s22 + $0x48] sm:$0xf] }
 0x1a9   : > { %v1939_v47 = vpop.permute.xlu0 %1938  ;;  %2265 = vrot.lane.b32.xlu2 %v5133_v54, %s3148_s8  ;;  %v6358_v54 = vld [vmem:[#allocation4_spill] sm:$0xff]  ;;  %2676 = vmatpush.bf16.msra.mxu1 %v3049_v3 }
 0x1aa   : > { %v2086_v31 = vsel %vm6354_vm1, %v2078_v16, %v1939_v47  ;;  %v1952_v25 = vpop.permute.xlu1 %1951  ;;  %vm6360_vm1 = vmmov %vm6357_vm0  ;;  %v6370_v47 = vld [vmem:[#allocation90_spill] sm:$0xff] }
 0x1ab   : > { %v1954_v8 = vpop.permute.xlu2 %1953  ;;  %v5242_v42 = vsel %vm6357_vm0, %v2086_v31, %v1952_v25  ;;  %vm6369_vm0 = vcmask 130048   ;;  %v3048_v31 = vld [vmem:[%s4762_s19 + $0x50] sm:$0xff]  ;;  %v6371_v25 = vld [vmem:[#allocation53_spill] sm:$0xff] }
 0x1ac   : > { %v5238_v19 = vsel %vm6356_vm3, %v2088_v44, %v1954_v8  ;;  %vm6366_vm3 = vcmask 64512  }
 0x1ad   : > { %2677 = vmatpush.bf16.msra.mxu1 %v3048_v31  ;;  %v5322_v31 = vld [vmem:[%s3201_s22 + $0xf8] sm:$0xf] }
 0x1af   : > { %1995 = vrot.lane.b32.xlu0 %v6358_v54, %s3149_s9 }
 0x1b0   : > { %2015 = vrot.lane.b32.xlu1 %v6361_v29, %s3151_s11 }
 0x1b1   : > { %v1950_v16 = vpop.permute.xlu0 %1949  ;;  %2285 = vrot.lane.b32.xlu2 %v6359_v23, %s3150_s10  ;;  %v2479_v23 = vld [vmem:[%s4762_s19 + $0xc0] sm:$0xf] }
 0x1b2   : > { %v5250_v49 = vsel %vm6360_vm1, %v2084_v50, %v1950_v16  ;;  %v2154_v15 = vpop.permute.xlu1 %2153  ;;  %v3047_v16 = vld [vmem:[%s4762_s19 + $0x48] sm:$0xff]  ;;  %vm2639_vm1 = vcmask 1043456  }
 0x1b3   : > { %v2164_v57 = vpop.permute.xlu2 %2163  ;;  %2678 = vmatpush.bf16.msra.mxu1 %v3047_v16  ;;  %v1296_v16 = vshll.u32 %v5322_v31, 16 }
 0x1b7   : > { %2167 = vrot.lane.b32.xlu0 %v6362_v51, %s3138_s24  ;;  %v6375_v51 = vld [vmem:[#allocation114_spill] sm:$0xff] }
 0x1b8   : > { %2197 = vrot.lane.b32.xlu1 %v6363_v60, %s3141_s27  ;;  %v6376_v40 = vunpack.c.l.b16 %v6375_v51  ;;  %v6384_v51 = vld [vmem:[#allocation120_spill] sm:$0xff] }
 0x1b9   : > { %v5260_v39 = vpop.permute.xlu0 %1960  ;;  %1985 = vrot.lane.b32.xlu2 %v4265_v13, %s3148_s8  ;;  %v2303_v13 = vsel %vm6366_vm3, %v6365_v38, %v2154_v15  ;;  %v2577_v15 = vunpack.c.l.b16 %v2479_v23  ;;  %vm6379_vm3 = vcmask 523264   ;;  %v2928_v23 = vrot.slane %v4873_v24, 9 }
 0x1ba   : > { %v2184_v28 = vpop.permute.xlu1 %2183  ;;  %v2314_v52 = vsel %vm6369_vm0, %v2303_v13, %v2164_v57  ;;  %v1958_v45 = vpack.c.b16 %v6376_v40, %v6374_v36  ;;  %v6378_v13 = vld [vmem:[#allocation86_spill] sm:$0xff]  ;;  %vm6380_vm0 = vcmask 588800  }
 0x1bb   : > { %v2194_v50 = vpop.permute.xlu2 %2193  ;;  %v2602_v60 = vpack.c.b16 %v2577_v15, %v2577_v15 }
 0x1bd   : > { %v2641_v30 = vsel %vm2639_vm1, %v2602_v60, 0  ;;  %vm6381_vm1 = vcmask 64512  }
 0x1be   : > { %2737 = vmatpush.bf16.msra.mxu3 %v2641_v30 }
 0x1bf   : > { %2187 = vrot.lane.b32.xlu0 %v6364_v53, %s3140_s26  ;;  %v3046_v53 = vld [vmem:[%s4762_s19 + $0x40] sm:$0xff] }
 0x1c0   : > { %2227 = vrot.lane.b32.xlu1 %v6368_v35, %s3144_s30  ;;  %v1280_v35 = vrot.slane %v5304_v6, 5  ;;  %2679 = vmatpush.bf16.msra.mxu1 %v3046_v53 }
 0x1c1   : > { %v2174_v12 = vpop.permute.xlu0 %2173  ;;  %2005 = vrot.lane.b32.xlu2 %v6367_v48, %s3150_s10  ;;  %v2930_v48 = vrot.slane %v5301_v46, 9  ;;  %3031 = vmatmul.msk.bf16.vlgmr.msra.gmra.mxu3 %vm6381_vm1, %v4757_v59  ;;  %v1293_v59 = vshrl.u32 %v5322_v31, 16 }
 0x1c2   : > { %v2214_v44 = vpop.permute.xlu1 %2213  ;;  %v2322_v63 = vsel %vm1712_vm11, %v2314_v52, %v2174_v12 }
 0x1c3   : > { %v2224_v14 = vpop.permute.xlu2 %2223  ;;  %v2330_v20 = vsel %vm1721_vm12, %v2322_v63, %v2184_v28  ;;  %v1246_v63 = vshll.u32 %v5308_v62, 16 }
 0x1c4   : > { %v2338_v54 = vsel %vm1730_vm13, %v2330_v20, %v2194_v50  ;;  %v6377_v50 = vld [vmem:[#allocation121_spill] sm:$0xff] }
 0x1c7   : > { %2217 = vrot.lane.b32.xlu0 %v6370_v47, %s3143_s29 }
 0x1c8   : > { %2257 = vrot.lane.b32.xlu1 %v6372_v37, %s3147_s7 }
 0x1c9   : > { %v2204_v8 = vpop.permute.xlu0 %2203  ;;  %2177 = vrot.lane.b32.xlu2 %v6371_v25, %s3139_s25  ;;  %v6383_v25 = vld [vmem:[#allocation24_spill] sm:$0xff] }
 0x1ca   : > { %v2346_v29 = vsel %vm1739_vm14, %v2338_v54, %v2204_v8  ;;  %v2244_v57 = vpop.permute.xlu1 %2243  ;;  %v5330_v8 = vsel %vm3523_vm5, %v2930_v48, %v1280_v35  ;;  %v1283_v54 = vrot.slane %v1246_v63, 6 }
 0x1cb   : > { %v2254_v55 = vpop.permute.xlu2 %2253  ;;  %v2354_v28 = vsel %vm1748_vm15, %v2346_v29, %v2214_v44  ;;  %v1243_v44 = vshrl.u32 %v5308_v62, 16  ;;  %v1230_v29 = vrot.slane %v4911_v7, 5  ;;  %v2151_v53 = vunpack.c.l.b16 %v5330_v8 }
 0x1cc   : > { %v2362_v12 = vsel %vm6379_vm3, %v2354_v28, %v2224_v14  ;;  %v5325_v14 = vld [vmem:[%s3201_s22 + $0x4c] sm:$0x3]  ;;  %vm6382_vm3 = vcmask 654336  }
 0x1cd   : > { %v1282_v37 = vrot.slane %v1243_v44, 5  ;;  %v1286_v15 = vshrl.u32 %v5325_v14, 16  ;;  %v6387_v28 = vld [vmem:[#allocation115_spill] sm:$0xff] }
 0x1ce   : > { %v6388_v7 = vunpack.c.l.b16 %v6387_v28 }
 0x1cf   : > { %2247 = vrot.lane.b32.xlu0 %v6377_v50, %s3146_s6  ;;  %v1288_v35 = vrot.slane %v1286_v15, 5 }
 0x1d0   : > { %1964 = vrot.lane.b32.xlu1 %v1958_v45, %s3146_s6  ;;  %v6385_v45 = vld [vmem:[#allocation125_spill] sm:$0xff] }
 0x1d1   : > { %v2234_v38 = vpop.permute.xlu0 %2233  ;;  %2207 = vrot.lane.b32.xlu2 %v6378_v13, %s3142_s28  ;;  %v6386_v60 = vunpack.c.l.b16 %v6385_v45  ;;  %v1295_v13 = vrot.slane %v1293_v59, 4  ;;  %3032 = vmatmul.msk.bf16.gmra.mxu3 %vm6381_vm1, %v4881_v32  ;;  %v6391_v32 = vld [vmem:[#allocation35_spill] sm:$0xff] }
 0x1d2   : > { %v2370_v3 = vsel %vm6380_vm0, %v2362_v12, %v2234_v38  ;;  %v2274_v47 = vpop.permute.xlu1 %2273  ;;  %v1284_v38 = vor.u32 %v1283_v54, %v1282_v37  ;;  %v1298_v12 = vrot.slane %v1296_v16, 5  ;;  %v6389_v37 = vunpack.c.l.b16 %v4803_v41 }
 0x1d3   : > { %v2284_v52 = vpop.permute.xlu2 %2283  ;;  %v2378_v20 = vsel %vm6382_vm3, %v2370_v3, %v2244_v57  ;;  %v1252_v57 = vshll.u32 %v5325_v14, 16  ;;  %v1971_v50 = vpack.c.b16 %v6388_v7, %v6386_v60  ;;  %v6390_v7 = vld [vmem:[#allocation6_spill] sm:$0xff] }
 0x1d4   : > { %v2386_v11 = vsel %vm1784_vm4, %v2378_v20, %v2254_v55  ;;  %v5364_v20 = vld [vmem:[%s3201_s22 + $0xfc] sm:$0x3]  ;;  %v2152_v54 = vpack.c.b16 %v2151_v53, %v6389_v37 }
 0x1d5   : > { %v1289_v3 = vrot.slane %v1252_v57, 6  ;;  %v1302_v15 = vshll.u32 %v5364_v20, 16 }
 0x1d7   : > { %2277 = vrot.lane.b32.xlu0 %v6383_v25, %s3149_s9  ;;  %v1304_v41 = vrot.slane %v1302_v15, 5 }
 0x1d8   : > { %2297 = vrot.lane.b32.xlu1 %v4846_v27, %s3151_s11 }
 0x1d9   : > { %v2264_v36 = vpop.permute.xlu0 %2263  ;;  %2237 = vrot.lane.b32.xlu2 %v6384_v51, %s3145_s5 }
 0x1da   : > { %v2394_v40 = vsel %vm1793_vm6, %v2386_v11, %v2264_v36  ;;  %v2294_v27 = vpop.permute.xlu1 %2293  ;;  %v1285_v11 = vrot.slane %v1284_v38, 4  ;;  %v1290_v36 = vor.u32 %v1289_v3, %v1288_v35 }
 0x1db   : > { %v2402_v30 = vsel %vm1802_vm7, %v2394_v40, %v2274_v47  ;;  %v1984_v55 = vpop.permute.xlu2 %1983  ;;  %v5368_v47 = vsel %vm3523_vm5, %v2928_v23, %v1230_v29  ;;  %v2090_v40 = vsel %vm6380_vm0, %v5213_v21, %v5222_v5  ;;  %vm6397_vm0 = vmmov %vm6381_vm1 }
 0x1dc   : > { %v2410_v48 = vsel %vm1811_vm9, %v2402_v30, %v2284_v52  ;;  %v1299_v52 = vor.u32 %v1298_v12, %v1295_v13  ;;  %v5389_v60 = vsel %vm3711_vm8, %v1285_v11, %v1290_v36  ;;  %v6392_v13 = vld [vmem:[#allocation39_spill] sm:$0xff]  ;;  %vm6399_vm1 = vmmov %vm6397_vm0 }
 0x1dd   : > { %v2418_v25 = vsel %vm1820_vm10, %v2410_v48, %v2294_v27  ;;  %v2161_v21 = vunpack.c.l.b16 %v5389_v60  ;;  %v331_v48 = vld [vmem:[%s3201_s22 + $0x150] sm:$0xf]  ;;  %v6393_v27 = vunpack.c.l.b16 %v4789_v0 }
 0x1de   : > { %2709 = vmatmul.bf16.vlgmr.msra.gmra.mxu2 %v2418_v25  ;;  %v1300_v29 = vrot.slane %v1299_v52, 4  ;;  %v2932_v25 = vrot.slane %v331_v48, 9  ;;  %v1307_v11 = vshrl.u32 %v331_v48, 16  ;;  %v1310_v36 = vshll.u32 %v331_v48, 16 }
 0x1df   : > { %1977 = vrot.lane.b32.xlu0 %v1971_v50, %s3147_s7  ;;  %v5402_v50 = vld [vmem:[%s3201_s22 + $0x154] sm:$0x3]  ;;  %v2162_v35 = vpack.c.b16 %v2161_v21, %v6393_v27  ;;  %v2181_v0 = vunpack.c.l.b16 %v331_v48 }
 0x1e0   : > { %2159 = vrot.lane.b32.xlu1 %v2152_v54, %s3137_s23  ;;  %v1305_v5 = vsel %vm3338_vm2, %v1300_v29, %v1304_v41  ;;  %v2931_v41 = vrot.slane %v5322_v31, 9 }
 0x1e1   : > { %v1974_v51 = vpop.permute.xlu0 %1973  ;;  %2267 = vrot.lane.b32.xlu2 %v5118_v1, %s3148_s8  ;;  %v2098_v1 = vsel %vm6382_vm3, %v2090_v40, %v5260_v39  ;;  %v2191_v12 = vunpack.c.l.b16 %v1305_v5  ;;  %v1324_v40 = vrot.slane %v5364_v20, 5  ;;  %v2182_v27 = vpack.c.b16 %v2181_v0, %v1903_v10  ;;  %3033 = vmatmul.msk.bf16.gmra.mxu3 %vm6397_vm0, %v4830_v26 }
 0x1e2   : > { %v5385_v45 = vpop.permute.xlu1 %2155  ;;  %v2106_v28 = vsel %vm1784_vm4, %v2098_v1, %v1974_v51  ;;  %v1316_v10 = vshll.u32 %v5402_v50, 16  ;;  %vm6400_vm3 = vcmask 130048   ;;  %vm6405_vm0 = vcmask 523264  }
 0x1e3   : > { %v2004_v23 = vpop.permute.xlu2 %2003  ;;  %v2114_v30 = vsel %vm1793_vm6, %v2106_v28, %v1984_v55  ;;  %v1330_v55 = vrot.slane %v5402_v50, 5  ;;  %v2192_v51 = vpack.c.b16 %v2191_v12, %v4945_v33  ;;  %v6395_v28 = vshll.u32 %v4813_v34, 16  ;;  %v5433_v33 = vld [vmem:[%s3201_s22 + $0xa8] sm:$0xf] }
 0x1e4   : > { %v1955_v12 = vunpack.c.l.b16 %v5368_v47 }
 0x1e5   : > { %v1331_v29 = vsel %vm3523_vm5, %v2932_v25, %v1330_v55  ;;  %v1257_v25 = vshrl.u32 %v5301_v46, 16  ;;  %v1260_v55 = vshll.u32 %v5301_v46, 16 }
 0x1e6   : > { %v2221_v48 = vunpack.c.l.b16 %v1331_v29 }
 0x1e7   : > { %1997 = vrot.lane.b32.xlu0 %v6390_v7, %s3149_s9  ;;  %v1233_v7 = vrot.slane %v6395_v28, 6 }
 0x1e8   : > { %2017 = vrot.lane.b32.xlu1 %v6392_v13, %s3151_s11 }
 0x1e9   : > { %v1994_v38 = vpop.permute.xlu0 %1993  ;;  %2287 = vrot.lane.b32.xlu2 %v6391_v32, %s3150_s10  ;;  %v1236_v32 = vshrl.u32 %v4901_v58, 16 }
 0x1ea   : > { %v2122_v39 = vsel %vm1802_vm7, %v2114_v30, %v1994_v38  ;;  %v2014_v54 = vpop.permute.xlu1 %2013  ;;  %v1309_v30 = vrot.slane %v1307_v11, 4  ;;  %v1312_v38 = vrot.slane %v1310_v36, 5  ;;  %v2222_v36 = vpack.c.b16 %v2221_v48, %v1955_v12 }
 0x1eb   : > { %v5415_v3 = vpop.permute.xlu2 %2175  ;;  %v2130_v37 = vsel %vm1811_vm9, %v2122_v39, %v2004_v23  ;;  %v6394_v23 = vshrl.u32 %v4813_v34, 16  ;;  %v6396_v39 = vshll.u32 %v4901_v58, 16  ;;  %v1357_v58 = vshrl.u32 %v5433_v33, 16 }
 0x1ec   : > { %v2138_v52 = vsel %vm1820_vm10, %v2130_v37, %v2014_v54  ;;  %v1360_v54 = vshll.u32 %v5433_v33, 16  ;;  %v1238_v11 = vrot.slane %v1236_v32, 5  ;;  %v1313_v24 = vor.u32 %v1312_v38, %v1309_v30  ;;  %v6401_v32 = vld [vmem:[#allocation12_spill] sm:$0xff] }
 0x1ed   : > { %2680 = vmatmul.bf16.vlgmr.msra.gmra.mxu1 %v2138_v52  ;;  %v1232_v1 = vrot.slane %v6394_v23, 5  ;;  %v1239_v13 = vrot.slane %v6396_v39, 6  ;;  %v1262_v23 = vrot.slane %v1260_v55, 5  ;;  %v1359_v28 = vrot.slane %v1357_v58, 4 }
 0x1ee   : > { %v2171_v39 = vunpack.c.l.b16 %v5322_v31  ;;  %v1314_v48 = vrot.slane %v1313_v24, 4 }
 0x1ef   : > { %2169 = vrot.lane.b32.xlu0 %v2162_v35, %s3138_s24  ;;  %v1234_v52 = vor.u32 %v1233_v7, %v1232_v1  ;;  %v1240_v0 = vor.u32 %v1239_v13, %v1238_v11  ;;  %v6398_v1 = vld [vmem:[#allocation40_spill] sm:$0xff]  ;;  %v1362_v7 = vrot.slane %v1360_v54, 5  ;;  %v292_v13 = vld [vmem:[%s3201_s22 + $0xac] sm:$0x3]  ;;  %v1266_v11 = vshll.u32 %v5304_v6, 16 }
 0x1f0   : > { %2199 = vrot.lane.b32.xlu1 %v2192_v51, %s3141_s27  ;;  %v2306_v26 = vsel %vm6399_vm1, %v6398_v1, %v5385_v45  ;;  %v2251_v45 = vunpack.c.l.b16 %v5433_v33  ;;  %v5481_v54 = vld [vmem:[%s3201_s22 + $0x50] sm:$0xf]  ;;  %vm6406_vm1 = vcmask 588800  }
 0x1f1   : > { %v2166_v5 = vpop.permute.xlu0 %2165  ;;  %1987 = vrot.lane.b32.xlu2 %v4369_v18, %s3148_s8  ;;  %v1325_v18 = vsel %vm3523_vm5, %v2931_v41, %v1324_v40  ;;  %v1235_v51 = vrot.slane %v1234_v52, 4  ;;  %v1991_v41 = vunpack.c.l.b16 %v5301_v46  ;;  %v1259_v40 = vrot.slane %v1257_v25, 4 }
 0x1f2   : > { %v2196_v37 = vpop.permute.xlu1 %2195  ;;  %v2211_v29 = vunpack.c.l.b16 %v1325_v18  ;;  %v2316_v30 = vsel %vm6400_vm3, %v2306_v26, %v2166_v5  ;;  %v1332_v18 = vrot.slane %v1293_v59, 5  ;;  %v1333_v25 = vrot.slane %v1296_v16, 6 }
 0x1f3   : > { %v5442_v35 = vpop.permute.xlu2 %2205  ;;  %v5462_v50 = vsel %vm3711_vm8, %v1235_v51, %v1240_v0  ;;  %v1336_v5 = vshrl.u32 %v5364_v20, 16  ;;  %v1263_v52 = vor.u32 %v1262_v23, %v1259_v40  ;;  %v2324_v24 = vsel %vm1712_vm11, %v2316_v30, %v5415_v3 }
 0x1f4   : > { %v2212_v55 = vpack.c.b16 %v2211_v29, %v1942_v2  ;;  %v1343_v59 = vshrl.u32 %v5481_v54, 16  ;;  %v1363_v31 = vor.u32 %v1362_v7, %v1359_v28  ;;  %v1366_v16 = vshll.u32 %v292_v13, 16 }
 0x1f5   : > { %v1346_v43 = vshll.u32 %v5481_v54, 16  ;;  %v6402_v2 = vunpack.c.l.b16 %v4813_v34  ;;  %v2252_v6 = vpack.c.b16 %v2251_v45, %v1991_v41  ;;  %v1334_v29 = vor.u32 %v1333_v25, %v1332_v18  ;;  %v5517_v25 = vld [vmem:[%s3201_s22 + $0x54] sm:$0x3]  ;;  %s3037_s22 = sshll.u32 %s6435_s15, 6 }
 0x1f6   : > { %v1338_v3 = vrot.slane %v1336_v5, 5  ;;  %v1339_v40 = vrot.slane %v1302_v15, 6  ;;  %v1981_v23 = vunpack.c.l.b16 %v5308_v62  ;;  %v2241_v1 = vunpack.c.l.b16 %v5481_v54  ;;  %s5663_s27 = scalar_lea.vmem %s5717_s4, %s3037_s22 }
 0x1f7   : > { %2189 = vrot.lane.b32.xlu0 %v2182_v27, %s3140_s26  ;;  %v1318_v27 = vrot.slane %v1316_v10, 5  ;;  %v2172_v51 = vpack.c.b16 %v2171_v39, %v6402_v2  ;;  %v1264_v26 = vrot.slane %v1263_v52, 4  ;;  %v1268_v34 = vrot.slane %v1266_v11, 5  ;;  %v6403_v11 = vld [vmem:[#allocation117_spill] sm:$0xff] }
 0x1f8   : > { %2229 = vrot.lane.b32.xlu1 %v2222_v36, %s3144_s30  ;;  %v1364_v7 = vrot.slane %v1363_v31, 4  ;;  %v1368_v30 = vrot.slane %v1366_v16, 5  ;;  %v2934_v20 = vrot.slane %v5433_v33, 9  ;;  %v1380_v15 = vrot.slane %v292_v13, 5 }
 0x1f9   : > { %v2186_v38 = vpop.permute.xlu0 %2185  ;;  %2007 = vrot.lane.b32.xlu2 %v6401_v32, %s3150_s10  ;;  %v1319_v0 = vsel %vm3338_vm2, %v1314_v48, %v1318_v27  ;;  %v1245_v39 = vrot.slane %v1243_v44, 4  ;;  %v1248_v48 = vrot.slane %v1246_v63, 5  ;;  %v1335_v27 = vrot.slane %v1334_v29, 4 }
 0x1fa   : > { %v2226_v10 = vpop.permute.xlu1 %2225  ;;  %v2332_v36 = vsel %vm1721_vm12, %v2324_v24, %v2186_v38  ;;  %v2201_v38 = vunpack.c.l.b16 %v1319_v0  ;;  %v1345_v45 = vrot.slane %v1343_v59, 4  ;;  %v1348_v18 = vrot.slane %v1346_v43, 5 }
 0x1fb   : > { %v5478_v58 = vpop.permute.xlu2 %2235  ;;  %v2340_v28 = vsel %vm1730_vm13, %v2332_v36, %v2196_v37  ;;  %v1340_v37 = vor.u32 %v1339_v40, %v1338_v3  ;;  %v2242_v13 = vpack.c.b16 %v2241_v1, %v1981_v23  ;;  %v1369_v52 = vsel %vm3338_vm2, %v1364_v7, %v1368_v30 }
 0x1fc   : > { %v2348_v33 = vsel %vm1739_vm14, %v2340_v28, %v5442_v35  ;;  %v6404_v24 = vunpack.c.l.b16 %v6403_v11  ;;  %v2202_v31 = vpack.c.b16 %v2201_v38, %v4959_v9  ;;  %v1249_v16 = vor.u32 %v1248_v48, %v1245_v39 }
 0x1fd   : > { %v1381_v36 = vsel %vm3523_vm5, %v2934_v20, %v1380_v15  ;;  %v1341_v2 = vsel %vm3711_vm8, %v1335_v27, %v1340_v37  ;;  %v1352_v0 = vshll.u32 %v5517_v25, 16  ;;  %v2271_v47 = vunpack.c.l.b16 %v1369_v52 }
 0x1fe   : > { %v1959_v35 = vpack.c.b16 %v1955_v12, %v6404_v24  ;;  %v2291_v9 = vunpack.c.l.b16 %v1381_v36  ;;  %v1968_v3 = vunpack.c.l.b16 %v5462_v50  ;;  %v2231_v40 = vunpack.c.l.b16 %v1341_v2  ;;  %v6410_v2 = vld [vmem:[#allocation123_spill] sm:$0xff] }
 0x1ff   : > { %2219 = vrot.lane.b32.xlu0 %v2212_v55, %s3143_s29  ;;  %v1269_v55 = vsel %vm3338_vm2, %v1264_v26, %v1268_v34  ;;  %v1250_v1 = vrot.slane %v1249_v16, 4  ;;  %v1354_v28 = vrot.slane %v1352_v0, 5  ;;  %vm6407_vm3 = vcmask 654336  }
 0x200   : > { %2259 = vrot.lane.b32.xlu1 %v2252_v6, %s3147_s7  ;;  %v5536_v29 = vunpack.c.l.b16 %v1269_v55  ;;  %v2933_v4 = vrot.slane %v5481_v54, 9 }
 0x201   : > { %v2216_v32 = vpop.permute.xlu0 %2215  ;;  %2179 = vrot.lane.b32.xlu2 %v2172_v51, %s3139_s25  ;;  %v1349_v51 = vor.u32 %v1348_v18, %v1345_v45  ;;  %v2929_v45 = vrot.slane %v5308_v62, 9  ;;  %v1374_v18 = vrot.slane %v5517_v25, 5 }
 0x202   : > { %v2356_v63 = vsel %vm1748_vm15, %v2348_v33, %v2216_v32  ;;  %v2256_v5 = vpop.permute.xlu1 %2255  ;;  %v2272_v30 = vpack.c.b16 %v2271_v47, %v5536_v29  ;;  %v2232_v32 = vpack.c.b16 %v2231_v40, %v1968_v3  ;;  %v6408_v33 = vld [vmem:[#allocation118_spill] sm:$0xff] }
 0x203   : > { %v2266_v44 = vpop.permute.xlu2 %2265  ;;  %v2364_v6 = vsel %vm6405_vm0, %v2356_v63, %v2226_v10  ;;  %v1254_v10 = vrot.slane %v1252_v57, 5  ;;  %v1350_v34 = vrot.slane %v1349_v51, 4  ;;  %v6411_v51 = vunpack.c.l.b16 %v6410_v2 }
 0x204   : > { %v2372_v26 = vsel %vm6406_vm1, %v2364_v6, %v5478_v58  ;;  %v2292_v58 = vpack.c.b16 %v2291_v9, %v2151_v53  ;;  %v1274_v53 = vrot.slane %v5325_v14, 5  ;;  %vm6417_vm0 = vcmask 130048  }
 0x205   : > { %v1255_v15 = vsel %vm3338_vm2, %v1250_v1, %v1254_v10  ;;  %v1355_v57 = vsel %vm3338_vm2, %v1350_v34, %v1354_v28  ;;  %vm6412_vm2 = vmmov %vm6407_vm3  ;;  %v6413_v10 = vunpack.c.l.b16 %v6293_v17  ;;  %vm6418_vm1 = vcmask 523264  }
 0x206   : > { %v2001_v27 = vunpack.c.l.b16 %v1255_v15  ;;  %v2261_v37 = vunpack.c.l.b16 %v1355_v57  ;;  %v5572_v14 = vsel %vm3523_vm5, %v2929_v45, %v1274_v53 }
 0x207   : > { %2249 = vrot.lane.b32.xlu0 %v2242_v13, %s3146_s6  ;;  %v6409_v13 = vunpack.c.l.b16 %v6408_v33  ;;  %v2149_v16 = vunpack.c.l.b16 %v5572_v14  ;;  %v1982_v34 = vpack.c.b16 %v1981_v23, %v6413_v10  ;;  %v1382_v10 = vrot.slane %v1343_v59, 5 }
 0x208   : > { %1966 = vrot.lane.b32.xlu1 %v1959_v35, %s3146_s6  ;;  %v2262_v11 = vpack.c.b16 %v2261_v37, %v2001_v27  ;;  %v2002_v24 = vpack.c.b16 %v2001_v27, %v5106_v61  ;;  %v1375_v35 = vsel %vm3523_vm5, %v2933_v4, %v1374_v18  ;;  %v1992_v61 = vpack.c.b16 %v1991_v41, %v6411_v51 }
 0x209   : > { %v2246_v12 = vpop.permute.xlu0 %2245  ;;  %2209 = vrot.lane.b32.xlu2 %v2202_v31, %s3142_s28  ;;  %v2281_v36 = vunpack.c.l.b16 %v1375_v35  ;;  %vm6416_vm5 = vcmask 64512  }
 0x20a   : > { %v2380_v7 = vsel %vm6407_vm3, %v2372_v26, %v2246_v12  ;;  %v1963_v50 = vpop.permute.xlu1 %1962  ;;  %vm6419_vm3 = vcmask 588800  }
 0x20b   : > { %v2286_v38 = vpop.permute.xlu2 %2285  ;;  %v2388_v20 = vsel %vm1784_vm4, %v2380_v7, %v2256_v5  ;;  %v2100_v22 = vsel %vm6412_vm2, %v5250_v49, %v1963_v50  ;;  %v2282_v12 = vpack.c.b16 %v2281_v36, %v2149_v16 }
 0x20c   : > { %v2396_v39 = vsel %vm1793_vm6, %v2388_v20, %v2266_v44  ;;  %v1972_v44 = vpack.c.b16 %v1968_v3, %v6409_v13 }
 0x20f   : > { %2279 = vrot.lane.b32.xlu0 %v2272_v30, %s3149_s9 }
 0x210   : > { %2299 = vrot.lane.b32.xlu1 %v2292_v58, %s3151_s11 }
 0x211   : > { %v2276_v48 = vpop.permute.xlu0 %2275  ;;  %2239 = vrot.lane.b32.xlu2 %v2232_v32, %s3145_s5  ;;  %v6415_v32 = vld [vmem:[#allocation28_spill] sm:$0xff] }
 0x212   : > { %v2404_v8 = vsel %vm1802_vm7, %v2396_v39, %v2276_v48  ;;  %v2296_v55 = vpop.permute.xlu1 %2295 }
 0x213   : > { %v1986_v63 = vpop.permute.xlu2 %1985  ;;  %v2412_v5 = vsel %vm1811_vm9, %v2404_v8, %v2286_v38  ;;  %v6414_v38 = vld [vmem:[#allocation2_spill] sm:$0xff] }
 0x214   : > { %v2421_v52 = vsel %vm1820_vm10, %v2412_v5, %v2296_v55  ;;  %v2012_v50 = vpack.c.b16 %v5536_v29, %v6414_v38  ;;  %v1389_v38 = vrot.slane %v1352_v0, 6 }
 0x215   : > { %2714 = vmatmul.bf16.gmra.mxu2 %v2421_v52 }
 0x217   : > { %1979 = vrot.lane.b32.xlu0 %v1972_v44, %s3147_s7 }
 0x218   : > { %2009 = vrot.lane.b32.xlu1 %v2002_v24, %s3150_s10 }
 0x219   : > { %v1976_v31 = vpop.permute.xlu0 %1975  ;;  %2269 = vrot.lane.b32.xlu2 %v2262_v11, %s3148_s8 }
 0x21a   : > { %v2158_v47 = vpop.permute.xlu1 %2157  ;;  %v2108_v9 = vsel %vm1784_vm4, %v2100_v22, %v1976_v31 }
 0x21b   : > { %v2006_v6 = vpop.permute.xlu2 %2005  ;;  %v2116_v3 = vsel %vm1793_vm6, %v2108_v9, %v1986_v63  ;;  %v2309_v20 = vsel %vm6416_vm5, %v6415_v32, %v2158_v47  ;;  %vm6420_vm5 = vmmov %vm6412_vm2 }
 0x21f   : > { %1999 = vrot.lane.b32.xlu0 %v1992_v61, %s3149_s9 }
 0x221   : > { %v1996_v40 = vpop.permute.xlu0 %1995  ;;  %2289 = vrot.lane.b32.xlu2 %v2282_v12, %s3150_s10 }
 0x222   : > { %v2124_v46 = vsel %vm1802_vm7, %v2116_v3, %v1996_v40  ;;  %v2016_v26 = vpop.permute.xlu1 %2015 }
 0x223   : > { %v2178_v41 = vpop.permute.xlu2 %2177  ;;  %v2132_v1 = vsel %vm1811_vm9, %v2124_v46, %v2006_v6 }
 0x224   : > { %v2141_v49 = vsel %vm1820_vm10, %v2132_v1, %v2016_v26  ;;  %v6421_v1 = vld [vmem:[#allocation5_spill] sm:$0xff] }
 0x225   : > { %2685 = vmatmul.bf16.gmra.mxu1 %v2141_v49  ;;  %v6422_v26 = vunpack.c.l.b16 %v6421_v1 }
 0x229   : > { %v2168_v28 = vpop.permute.xlu0 %2167  ;;  %1989 = vrot.lane.b32.xlu2 %v1982_v34, %s3148_s8  ;;  %v1383_v34 = vrot.slane %v1346_v43, 6 }
 0x22a   : > { %v2198_v30 = vpop.permute.xlu1 %2197  ;;  %v2318_v58 = vsel %vm6417_vm0, %v2309_v20, %v2168_v28  ;;  %v1386_v28 = vshrl.u32 %v5517_v25, 16  ;;  %vm6423_vm0 = vcmask 64512  }
 0x22b   : > { %v2208_v7 = vpop.permute.xlu2 %2207  ;;  %v2326_v62 = vsel %vm1712_vm11, %v2318_v58, %v2178_v41 }
 0x231   : > { %v2188_v15 = vpop.permute.xlu0 %2187  ;;  %2019 = vrot.lane.b32.xlu2 %v2012_v50, %s3151_s11  ;;  %v2652_v50 = vpop.f32.mrf.mxu0 }
 0x232   : > { %v2228_v23 = vpop.permute.xlu1 %2227  ;;  %v2334_v57 = vsel %vm1721_vm12, %v2326_v62, %v2188_v15 }
 0x233   : > { %v2238_v17 = vpop.permute.xlu2 %2237  ;;  %v2342_v39 = vsel %vm1730_vm13, %v2334_v57, %v2198_v30  ;;  %v1388_v30 = vrot.slane %v1386_v28, 5 }
 0x234   : > { %v2350_v27 = vsel %vm1739_vm14, %v2342_v39, %v2208_v7  ;;  %v1384_v7 = vor.u32 %v1383_v34, %v1382_v10 }
 0x235   : > { %v1390_v58 = vor.u32 %v1389_v38, %v1388_v30 }
 0x236   : > { %v1385_v20 = vrot.slane %v1384_v7, 4 }
 0x239   : > { %v2218_v48 = vpop.permute.xlu0 %2217 }
 0x23a   : > { %v2358_v37 = vsel %vm1748_vm15, %v2350_v27, %v2218_v48  ;;  %v2258_v45 = vpop.permute.xlu1 %2257  ;;  %v5646_v48 = vld [vmem:[%s5715_s2] ss:$0 sm:$0xff] }
 0x23b   : > { %v2268_v29 = vpop.permute.xlu2 %2267  ;;  %v2366_v8 = vsel %vm6418_vm1, %v2358_v37, %v2228_v23  ;;  %vm6424_vm1 = vcmask 130048   ;;  %v5655_v37 = vld [vmem:[%s5716_s3] ss:$0 sm:$0xff] }
 0x23c   : > { %v2374_v4 = vsel %vm6419_vm3, %v2366_v8, %v2238_v17  ;;  %v1391_v17 = vsel %vm3711_vm8, %v1385_v20, %v1390_v58  ;;  %vm6425_vm8 = vmmov %vm6423_vm0  ;;  %v2654_v8 = vpop.f32.mrf.mxu0 }
 0x23d   : > { %v2429_v23 = vunpack.c.l.b16 %v1391_v17 }
 0x23f   : > { %v2430_v27 = vpack.c.b16 %v2429_v23, %v2161_v21 }
 0x241   : > { %v2248_v53 = vpop.permute.xlu0 %2247  ;;  %3034 = vmatmul.msk.bf16.gmra.mxu3 %vm6425_vm8, %v2430_v27 }
 0x242   : > { %v2382_v18 = vsel %vm6412_vm2, %v2374_v4, %v2248_v53  ;;  %v1965_v13 = vpop.permute.xlu1 %1964 }
 0x243   : > { %v2288_v33 = vpop.permute.xlu2 %2287  ;;  %v2390_v44 = vsel %vm1784_vm4, %v2382_v18, %v2258_v45  ;;  %v2102_v51 = vsel %vm6420_vm5, %v5242_v42, %v1965_v13  ;;  %v2150_v42 = vpack.c.b16 %v2149_v16, %v6422_v26 }
 0x244   : > { %v2398_v63 = vsel %vm1793_vm6, %v2390_v44, %v2268_v29  ;;  %v2739_v15 = vpop.f32.mrf.mxu3  ;;  %v2657_v38 = vpop.f32.mrf.mxu0 }
 0x249   : > { %v2278_v5 = vpop.permute.xlu0 %2277 }
 0x24a   : > { %v2406_v55 = vsel %vm1802_vm7, %v2398_v63, %v2278_v5  ;;  %v2298_v24 = vpop.permute.xlu1 %2297 }
 0x24b   : > { %v1988_v52 = vpop.permute.xlu2 %1987  ;;  %v2414_v11 = vsel %vm1811_vm9, %v2406_v55, %v2288_v33 }
 0x24c   : > { %v2424_v35 = vsel %vm1820_vm10, %v2414_v11, %v2298_v24  ;;  %v2741_v5 = vpop.f32.mrf.mxu3 }
 0x24d   : > { %2719 = vmatmul.bf16.gmra.mxu2 %v2424_v35 }
 0x251   : > { %v1978_v31 = vpop.permute.xlu0 %1977 }
 0x252   : > { %v2160_v2 = vpop.permute.xlu1 %2159  ;;  %v2110_v61 = vsel %vm1784_vm4, %v2102_v51, %v1978_v31 }
 0x253   : > { %v2008_v36 = vpop.permute.xlu2 %2007  ;;  %v2118_v6 = vsel %vm1793_vm6, %v2110_v61, %v1988_v52  ;;  %v2312_v32 = vsel %vm6423_vm0, %v2150_v42, %v2160_v2 }
 0x259   : > { %v1998_v47 = vpop.permute.xlu0 %1997 }
 0x25a   : > { %v2126_v22 = vsel %vm1802_vm7, %v2118_v6, %v1998_v47  ;;  %v2018_v3 = vpop.permute.xlu1 %2017 }
 0x25b   : > { %v2180_v12 = vpop.permute.xlu2 %2179  ;;  %v2134_v9 = vsel %vm1811_vm9, %v2126_v22, %v2008_v36 }
 0x25c   : > { %v2144_v40 = vsel %vm1820_vm10, %v2134_v9, %v2018_v3 }
 0x25d   : > { %2690 = vmatmul.bf16.gmra.mxu1 %v2144_v40 }
 0x261   : > { %v2170_v46 = vpop.permute.xlu0 %2169  ;;  %v2710_v59 = vpop.f32.mrf.mxu2 }
 0x262   : > { %v2200_v49 = vpop.permute.xlu1 %2199  ;;  %v2320_v14 = vsel %vm6424_vm1, %v2312_v32, %v2170_v46 }
 0x263   : > { %v2210_v41 = vpop.permute.xlu2 %2209  ;;  %v2328_v62 = vsel %vm1712_vm11, %v2320_v14, %v2180_v12  ;;  %vm6426_vm11 = vcmask 523264  }
 0x269   : > { %v2190_v16 = vpop.permute.xlu0 %2189  ;;  %v2712_v63 = vpop.f32.mrf.mxu2 }
 0x26a   : > { %v2681_v54 = vpop.f32.mrf.mxu1  ;;  %v2230_v0 = vpop.permute.xlu1 %2229  ;;  %v2336_v57 = vsel %vm1721_vm12, %v2328_v62, %v2190_v16  ;;  %vm6427_vm12 = vmmov %vm6419_vm3 }
 0x26b   : > { %v2240_v43 = vpop.permute.xlu2 %2239  ;;  %v2682_v25 = vadd.f32 %v2681_v54, %v2652_v50  ;;  %v2344_v29 = vsel %vm1730_vm13, %v2336_v57, %v2200_v49  ;;  %vm6428_vm13 = vmmov %vm6412_vm2  ;;  %v2744_v50 = vpop.f32.mrf.mxu3 }
 0x26c   : > { %v2352_v4 = vsel %vm1739_vm14, %v2344_v29, %v2210_v41  ;;  %vm6429_vm14 = vmmov %vm6412_vm2 }
 0x26d   : > { %v2711_v39 = vadd.f32 %v2710_v59, %v2682_v25  ;;  %v2659_v59 = vpop.f32.mrf.mxu0 }
 0x26f   : > { %v2740_v56 = vadd.f32 %v2739_v15, %v2711_v39 }
 0x271   : > { %v2220_v45 = vpop.permute.xlu0 %2219  ;;  %v2763_v53 = vmul.f32 %v5646_v48, %v2740_v56 }
 0x272   : > { %v2683_v60 = vpop.f32.mrf.mxu1  ;;  %v2360_v18 = vsel %vm1748_vm15, %v2352_v4, %v2220_v45  ;;  %v2260_v44 = vpop.permute.xlu1 %2259 }
 0x273   : > { %v2270_v21 = vpop.permute.xlu2 %2269  ;;  %v2775_v33 = vadd.f32 %v5655_v37, %v2763_v53  ;;  %v2684_v13 = vadd.f32 %v2683_v60, %v2654_v8  ;;  %v2368_v52 = vsel %vm6426_vm11, %v2360_v18, %v2230_v0  ;;  %v2746_v62 = vpop.f32.mrf.mxu3 }
 0x274   : > { %v2376_v35 = vsel %vm6427_vm12, %v2368_v52, %v2240_v43 }
 0x275   : > { %2783 = vst [vmem:[%s5663_s27] sm:$0xff] %v2775_v33  ;;  %v2713_v55 = vadd.f32 %v2712_v63, %v2684_v13  ;;  %v2662_v39 = vpop.f32.mrf.mxu0 }
 0x277   : > { %v2742_v11 = vadd.f32 %v2741_v5, %v2713_v55 }
 0x279   : > { %v2250_v24 = vpop.permute.xlu0 %2249  ;;  %v2764_v31 = vmul.f32 %v5646_v48, %v2742_v11 }
 0x27a   : > { %v2384_v36 = vsel %vm6428_vm13, %v2376_v35, %v2250_v24  ;;  %v1967_v51 = vpop.permute.xlu1 %1966 }
 0x27b   : > { %v2776_v2 = vadd.f32 %v5655_v37, %v2764_v31  ;;  %v2290_v61 = vpop.permute.xlu2 %2289  ;;  %v2392_v6 = vsel %vm1784_vm4, %v2384_v36, %v2260_v44  ;;  %v2104_v1 = vsel %vm6429_vm14, %v5238_v19, %v1967_v51  ;;  %v2749_v27 = vpop.f32.mrf.mxu3 }
 0x27c   : > { %v2400_v47 = vsel %vm1793_vm6, %v2392_v6, %v2270_v21 }
 0x27d   : > { %2784 = vst [vmem:[%s5663_s27 + $0x8] sm:$0xff] %v2776_v2  ;;  %v2664_v60 = vpop.f32.mrf.mxu0 }
 0x281   : > { %v2280_v22 = vpop.permute.xlu0 %2279 }
 0x282   : > { %v2408_v12 = vsel %vm1802_vm7, %v2400_v47, %v2280_v22  ;;  %v2300_v3 = vpop.permute.xlu1 %2299 }
 0x283   : > { %v2416_v9 = vsel %vm1811_vm9, %v2408_v12, %v2290_v61  ;;  %v1990_v46 = vpop.permute.xlu2 %1989  ;;  %v2751_v44 = vpop.f32.mrf.mxu3 }
 0x284   : > { %v2427_v40 = vsel %vm1820_vm10, %v2416_v9, %v2300_v3 }
 0x285   : > { %2724 = vmatmul.bf16.gmra.mxu2 %v2427_v40  ;;  %v2667_v11 = vpop.f32.mrf.mxu0 }
 0x289   : > { %v1980_v41 = vpop.permute.xlu0 %1979 }
 0x28a   : > { %v2112_v26 = vsel %vm1784_vm4, %v2104_v1, %v1980_v41  ;;  %v2010_v42 = vpop.permute.xlu1 %2009 }
 0x28b   : > { %v2120_v49 = vsel %vm1793_vm6, %v2112_v26, %v1990_v46  ;;  %v2020_v34 = vpop.permute.xlu2 %2019 }
 0x28d   : > { %v2669_v6 = vpop.f32.mrf.mxu0 }
 0x291   : > { %v2000_v10 = vpop.permute.xlu0 %1999 }
 0x292   : > { %v2128_v28 = vsel %vm1802_vm7, %v2120_v49, %v2000_v10 }
 0x293   : > { %v2136_v7 = vsel %vm1811_vm9, %v2128_v28, %v2010_v42 }
 0x294   : > { %v2147_v30 = vsel %vm1820_vm10, %v2136_v7, %v2020_v34 }
 0x295   : > { %2695 = vmatmul.bf16.gmra.mxu1 %v2147_v30 }
 0x298   : > { %v2715_v32 = vpop.f32.mrf.mxu2 }
 0x2a0   : > { %v2717_v17 = vpop.f32.mrf.mxu2 }
 0x2a2   : > { %v2686_v14 = vpop.f32.mrf.mxu1 }
 0x2a3   : > { %v2687_v19 = vadd.f32 %v2686_v14, %v2657_v38 }
 0x2a5   : > { %v2716_v16 = vadd.f32 %v2715_v32, %v2687_v19 }
 0x2a7   : > { %v2745_v20 = vadd.f32 %v2744_v50, %v2716_v16 }
 0x2a9   : > { %v2765_v58 = vmul.f32 %v5646_v48, %v2745_v20 }
 0x2aa   : > { %v2688_v15 = vpop.f32.mrf.mxu1 }
 0x2ab   : > { %v2777_v54 = vadd.f32 %v5655_v37, %v2765_v58  ;;  %v2689_v43 = vadd.f32 %v2688_v15, %v2659_v59 }
 0x2ad   : > { %2785 = vst [vmem:[%s5663_s27 + $0x10] sm:$0xff] %v2777_v54  ;;  %v2718_v25 = vadd.f32 %v2717_v17, %v2689_v43 }
 0x2af   : > { %v2747_v0 = vadd.f32 %v2746_v62, %v2718_v25 }
 0x2b1   : > { %v2766_v23 = vmul.f32 %v5646_v48, %v2747_v0 }
 0x2b3   : > { %v2778_v57 = vadd.f32 %v5655_v37, %v2766_v23 }
 0x2b5   : > { %2786 = vst [vmem:[%s5663_s27 + $0x18] sm:$0xff] %v2778_v57 }
 0x2c4   : > { %v2754_v36 = vpop.f32.mrf.mxu3 }
 0x2cc   : > { %v2756_v40 = vpop.f32.mrf.mxu3 }
 0x2d0   : > { %v2720_v29 = vpop.f32.mrf.mxu2 }
 0x2d8   : > { %v2722_v13 = vpop.f32.mrf.mxu2 }
 0x2da   : > { %v2691_v56 = vpop.f32.mrf.mxu1 }
 0x2db   : > { %v2692_v45 = vadd.f32 %v2691_v56, %v2662_v39 }
 0x2dd   : > { %v2721_v8 = vadd.f32 %v2720_v29, %v2692_v45 }
 0x2df   : > { %v2750_v53 = vadd.f32 %v2749_v27, %v2721_v8 }
 0x2e1   : > { %v2767_v4 = vmul.f32 %v5646_v48, %v2750_v53 }
 0x2e2   : > { %v2693_v21 = vpop.f32.mrf.mxu1 }
 0x2e3   : > { %v2779_v18 = vadd.f32 %v5655_v37, %v2767_v4  ;;  %v2694_v33 = vadd.f32 %v2693_v21, %v2664_v60 }
 0x2e5   : > { %2787 = vst [vmem:[%s5663_s27 + $0x20] sm:$0xff] %v2779_v18  ;;  %v2723_v63 = vadd.f32 %v2722_v13, %v2694_v33 }
 0x2e7   : > { %v2752_v5 = vadd.f32 %v2751_v44, %v2723_v63 }
 0x2e9   : > { %v2768_v55 = vmul.f32 %v5646_v48, %v2752_v5 }
 0x2eb   : > { %v2780_v52 = vadd.f32 %v5655_v37, %v2768_v55 }
 0x2ed   : > { %2788 = vst [vmem:[%s5663_s27 + $0x28] sm:$0xff] %v2780_v52 }
 0x308   : > { %v2725_v24 = vpop.f32.mrf.mxu2 }
 0x310   : > { %v2727_v9 = vpop.f32.mrf.mxu2 }
 0x312   : > { %v2696_v35 = vpop.f32.mrf.mxu1 }
 0x313   : > { %v2697_v31 = vadd.f32 %v2696_v35, %v2667_v11 }
 0x315   : > { %v2726_v2 = vadd.f32 %v2725_v24, %v2697_v31 }
 0x317   : > { %v2755_v51 = vadd.f32 %v2754_v36, %v2726_v2 }
 0x319   : > { %v2769_v61 = vmul.f32 %v5646_v48, %v2755_v51 }
 0x31a   : > { %v2698_v47 = vpop.f32.mrf.mxu1 }
 0x31b   : > { %v2781_v22 = vadd.f32 %v5655_v37, %v2769_v61  ;;  %v2699_v12 = vadd.f32 %v2698_v47, %v2669_v6 }
 0x31d   : > { %2789 = vst [vmem:[%s5663_s27 + $0x30] sm:$0xff] %v2781_v22  ;;  %v2728_v3 = vadd.f32 %v2727_v9, %v2699_v12 }
 0x31f   : > { %v2757_v46 = vadd.f32 %v2756_v40, %v2728_v3 }
 0x321   : > { %v2770_v41 = vmul.f32 %v5646_v48, %v2757_v46 }
 0x323   : > { %v2782_v1 = vadd.f32 %v5655_v37, %v2770_v41 }
 0x325   : > { %2790 = vst [vmem:[%s5663_s27 + $0x38] sm:$0xff] %v2782_v1 }
 0x326 PF: > { %s14_s17 = sadd.s32 1, %s3135_s17   ;;  %s6430_s15 = smov %s3131_s16 }
 0x327   : > { %p11_p5 = scmp.ge.s32.totalorder %s14_s17, 4   ;;  %s6431_s16 = smov %s6433_s18 }
 0x329   :  { %13 = sbr.rel (!%p11_p5) target bundleno = 2 (0x2), region = 69 }

// kernel: spatial_path_forward.7
= control target key start
LH: loop header
LB: loop body
LE: loop exit
PB: predicated region body
PF: predicated region fallthrough
CT: control target
= control target key end

     0   :  { %s547_s15 = smov 0   ;;  %s549_s16 = smov 0   ;;  %s594_s0 = inlined_call_operand.vmem [shape: bf16[2,2,2,128], index: 0, kind: input, shape index: {}]   ;;  %s595_s1 = inlined_call_operand.vmem [shape: bf16[2,128,128], index: 1, kind: input, shape index: {}]   ;;  %s596_s2 = inlined_call_operand.vmem [shape: f32[1,128], index: 2, kind: input, shape index: {}]   ;;  %s597_s3 = inlined_call_operand.vmem [shape: f32[1,128], index: 3, kind: input, shape index: {}]   ;;  %s598_s4 = inlined_call_operand.vmem [shape: f32[2,4,128], index: 4, kind: output, shape index: {}]  }
   0x1   :  { %s551_s17 = smov 0  }
   0x2 LB: > { %s26_s18 = sadd.s32 1, %s516_s16  ;;  %p424_p0 = scmp.ge.s32.totalorder %s520_s17, 1  ;;  %s520_s17 = sphi %s551_s17, %s14_s17   ;;  %s516_s16 = sphi %s549_s16, %s600_s16   ;;  %s512_s15 = sphi %s547_s15, %s599_s15  }
   0x3   : > { %p28_p1 = scmp.ge.s32.totalorder %s26_s18, 2  ;;  %p189_p2 = scmp.lt.s32.totalorder %s520_s17, 3 }
   0x5   : > { %s602_s18 = smov (%p28_p1, %s26_s18), 0  ;;  %p190_p3 = pnand %p424_p0, %p189_p2 }
   0x6   : > { %p223_p4 = scmp.lt.s32.totalorder (!%p190_p3), %s512_s15, 1 }
   0x7   : > { %193 = sbr.rel (%p190_p3) target bundleno = 181 (0xb5), region = 36 }
   0xc   : > { %s604_s15 = smov (!%p223_p4, %s512_s15), 1  ;;  %v496_v11 = vld [vmem:[%s596_s2] ss:$0 sm:$0xff] }
   0xd   : > { %s463_s19 = sshll.u32 %s604_s15, 6  ;;  %s425_s20 = sshll.u32 %s604_s15, 1  ;;  %v497_v12 = vld [vmem:[%s597_s3] ss:$0 sm:$0xff] }
   0xe   : > { %s232_s23 = scalar_lea.vmem %s595_s1, %s463_s19  ;;  %s226_s26 = scalar_lea.vmem %s594_s0, %s425_s20 }
   0xf   : > { %v471_v0 = vld [vmem:[%s232_s23 + $0x38] sm:$0xff]  ;;  %v470_v1 = vld [vmem:[%s232_s23 + $0x30] sm:$0xff]  ;;  %v240_v2 = vld [vmem:[%s226_s26] sm:$0x1]  ;;  %s428_s29 = sshll.u32 %s604_s15, 2 }
  0x10   : > { %313 = vmatpush.bf16.msra.mxu0 %v471_v0  ;;  %v241_v3 = vld [vmem:[%s226_s26 + $0x1] sm:$0x1]  ;;  %259 = vst [vmem:[#allocation1] ss:$9 sm:$0xff] %v240_v2  ;;  %v469_v4 = vld [vmem:[%s232_s23 + $0x28] sm:$0xff]  ;;  %v467_v6 = vld [vmem:[%s232_s23 + $0x18] sm:$0xff]  ;;  %s239_s8 = scalar_lea.vmem %s598_s4, %s428_s29 }
  0x11   : > { %262 = vst [vmem:[#allocation1 + $0x1] ss:$9 sm:$0xff] %v241_v3  ;;  %v468_v5 = vld [vmem:[%s232_s23 + $0x20] sm:$0xff]  ;;  %v466_v7 = vld [vmem:[%s232_s23 + $0x10] sm:$0xff]  ;;  %v465_v8 = vld [vmem:[%s232_s23 + $0x8] sm:$0xff] }
  0x12   : > { %v464_v9 = vld [vmem:[%s232_s23] sm:$0xff] }
  0x14   : > { %314 = vmatpush.bf16.msra.mxu0 %v470_v1 }
  0x18   : > { %315 = vmatpush.bf16.msra.mxu0 %v469_v4  ;;  %v263_v10 = vld [vmem:[#allocation1] sm:$0xff] }
  0x1c   : > { %316 = vmatpush.bf16.msra.mxu0 %v468_v5 }
  0x20   : > { %317 = vmatpush.bf16.msra.mxu0 %v467_v6 }
  0x24   : > { %318 = vmatpush.bf16.msra.mxu0 %v466_v7 }
  0x28   : > { %319 = vmatpush.bf16.msra.mxu0 %v465_v8 }
  0x2c   : > { %320 = vmatpush.bf16.msra.mxu0 %v464_v9 }
  0x2f   : > { %321 = vmatmul.bf16.vlgmr.msra.gmra.mxu0 %v263_v10 }
  0xac   : > { %v322_v13 = vpop.f32.mrf.mxu0 }
  0xad   : > { %v330_v14 = vmul.f32 %v496_v11, %v322_v13 }
  0xaf   : > { %v335_v15 = vadd.f32 %v497_v12, %v330_v14 }
  0xb1   : > { %336 = vst [vmem:[%s239_s8] sm:$0xf] %v335_v15 }
  0xb4   : > { %v324_v16 = vpop.f32.mrf.mxu0 }
  0xb5 PF: > { %s14_s17 = sadd.s32 1, %s520_s17   ;;  %s599_s15 = smov %s516_s16 }
  0xb6   : > { %p11_p5 = scmp.ge.s32.totalorder %s14_s17, 4   ;;  %s600_s16 = smov %s602_s18 }
  0xb8   :  { %13 = sbr.rel (!%p11_p5) target bundleno = 2 (0x2), region = 70 }

</bundles_post_ra>
